<compile_context>
chip_gen: v7x
topology: tpu7x:2x2x1
jax: 0.10.0
libtpu: 0.0.40
codegen_flags: <defaults>
</compile_context>

<pallas_src>
import numpy as np
import jax
import jax.numpy as jnp
from jax import lax
from jax.experimental import pallas as pl
from jax.experimental.pallas import tpu as pltpu

HIGH = jax.lax.Precision.HIGHEST
C_IN0 = 32  # fixed by the module (conv1 in_channels)


def _conv3d_as_dense(W, b, g):
    """Exact dense equivalent of Conv3d(k=3, stride=1, pad=1) on a (g,g,g) volume.

    Flattening: flat_idx = voxel * C + channel, voxel = d*g*g + h*g + w.
    Returns (A, b_row) as float64 numpy arrays with
        out_flat = x_flat @ A + b_row ,  A: (g^3*C_in, g^3*C_out).
    """
    Wn = np.asarray(W, dtype=np.float64)
    bn = np.asarray(b, dtype=np.float64)
    C_out, C_in = Wn.shape[0], Wn.shape[1]
    G3 = g * g * g
    A = np.zeros((G3 * C_in, G3 * C_out), dtype=np.float64)
    for d in range(g):
        for h in range(g):
            for w in range(g):
                vo = (d * g + h) * g + w
                for kd in range(3):
                    di = d + kd - 1
                    if not (0 <= di < g):
                        continue
                    for kh in range(3):
                        hi = h + kh - 1
                        if not (0 <= hi < g):
                            continue
                        for kw in range(3):
                            wi = w + kw - 1
                            if not (0 <= wi < g):
                                continue
                            vi = (di * g + hi) * g + wi
                            A[vi * C_in:(vi + 1) * C_in,
                              vo * C_out:(vo + 1) * C_out] = Wn[:, :, kd, kh, kw].T
    b_row = np.tile(bn, G3)[None, :]  # (1, G3*C_out)
    return A, b_row


def _make_kernel(g):
    G3 = g * g * g

    def kernel(src_ref, tgt_ref, cand_ref, a_ref, b_ref, out_ref):
        src = src_ref[...]                       # (M, 32)
        tgt = tgt_ref[...]                       # (M, G3*32), order voxel*32+channel
        # Replicate src over the G3 voxels (lane concat == voxel-major tiling).
        # This replication is the only residual per-sample elementwise cost; it is
        # hidden under the HBM stream of tgt.
        src_rep = jnp.concatenate([src] * G3, axis=1)        # (M, G3*32)
        d = src_rep - tgt
        cost = d * d                                          # (M, G3*32)

        # Single fused (conv1∘conv2∘conv3) matmul.
        logits = jnp.dot(cost, a_ref[...],
                         preferred_element_type=jnp.float32,
                         precision=HIGH) + b_ref[...]         # (M, G3)

        # softmax over the G3 candidates; fold the (==1) denominator: one reciprocal.
        mx = jnp.max(logits, axis=-1, keepdims=True)
        e = jnp.exp(logits - mx)
        inv = 1.0 / jnp.sum(e, axis=-1, keepdims=True)        # (M, 1)

        nums = [jnp.sum(e * cand_ref[:, j * G3:(j + 1) * G3],
                        axis=-1, keepdims=True)               # (M, 1)
                for j in range(3)]
        out_ref[...] = jnp.concatenate(nums, axis=1) * inv    # single (M, 3) store

    return kernel


def _round_up(x, m):
    return (x + m - 1) // m * m


def cpg_forward(src_dfe_feat, tgt_dfe_feat, candidates, r, s, params, m_tile=1024):
    W1, b1, W2, b2, W3, b3 = params
    B, N, C, three = candidates.shape
    g = int(2 * r / s + 1)
    G3 = g * g * g
    assert C == G3 and three == 3
    BN = B * N

    # Host-side exact fold of the three convs (float64 -> float32).
    A1, b1r = _conv3d_as_dense(W1, b1, g)   # (G3*32, G3*16)
    A2, b2r = _conv3d_as_dense(W2, b2, g)   # (G3*16, G3*4)
    A3, b3r = _conv3d_as_dense(W3, b3, g)   # (G3*4,  G3*1)
    A_fused = A1 @ A2 @ A3                                  # (G3*32, G3)
    b_fused = b1r @ A2 @ A3 + b2r @ A3 + b3r                # (1, G3)
    A_fused = jnp.asarray(A_fused.astype(np.float32))
    b_fused = jnp.asarray(b_fused.astype(np.float32))

    # Pick tile / pad BN (no divisibility assert).  m_tile default 1024 is a
    # multiple of 256 (v6e/v7x MXU) and 128 (v5e); blocks fit default scoped VMEM.
    m_tile = min(m_tile, _round_up(BN, 8))
    BN_pad = _round_up(BN, m_tile)

    src2 = src_dfe_feat.reshape(BN, C_IN0).astype(jnp.float32)
    tgt2 = tgt_dfe_feat.reshape(BN, G3 * C_IN0).astype(jnp.float32)
    # lane-dense candidates: row = [cand_x(G3) | cand_y(G3) | cand_z(G3)]
    cand2 = jnp.transpose(candidates.reshape(BN, G3, 3), (0, 2, 1)) \
               .reshape(BN, 3 * G3).astype(jnp.float32)
    if BN_pad != BN:
        pad = BN_pad - BN
        src2 = jnp.pad(src2, ((0, pad), (0, 0)))
        tgt2 = jnp.pad(tgt2, ((0, pad), (0, 0)))
        cand2 = jnp.pad(cand2, ((0, pad), (0, 0)))

    kernel = _make_kernel(g)
    grid = (BN_pad // m_tile,)

    vcp = pl.pallas_call(
        kernel,
        out_shape=jax.ShapeDtypeStruct((BN_pad, 3), jnp.float32),
        grid_spec=pltpu.PrefetchScalarGridSpec(
            num_scalar_prefetch=0,
            grid=grid,
            in_specs=[
                pl.BlockSpec((m_tile, C_IN0), lambda i: (i, 0)),        # src
                pl.BlockSpec((m_tile, G3 * C_IN0), lambda i: (i, 0)),   # tgt
                pl.BlockSpec((m_tile, 3 * G3), lambda i: (i, 0)),       # candidates
                pl.BlockSpec((G3 * C_IN0, G3), lambda i: (0, 0)),       # A_fused (VMEM-resident)
                pl.BlockSpec((1, G3), lambda i: (0, 0)),                # b_fused
            ],
            out_specs=pl.BlockSpec((m_tile, 3), lambda i: (i, 0)),
        ),
        compiler_params=pltpu.CompilerParams(dimension_semantics=("parallel",)),
    )(src2, tgt2, cand2, A_fused, b_fused)

    return vcp[:BN].reshape(B, N, 3)


def init_params(key):
    """Deterministic Conv3d params (same shapes as the PyTorch module)."""
    shapes = [(16, 32, 3, 3, 3), (4, 16, 3, 3, 3), (1, 4, 3, 3, 3)]
    params = []
    for sh in shapes:
        key, kw, kb = jax.random.split(key, 3)
        fan_in = sh[1] * 27
        bound = 1.0 / np.sqrt(fan_in)
        W = jax.random.uniform(kw, sh, jnp.float32, -bound, bound)
        b = jax.random.uniform(kb, (sh[0],), jnp.float32, -bound, bound)
        params += [W, b]
    return tuple(params), key


def reference(src_dfe_feat, tgt_dfe_feat, candidates, r, s, params):
    """Pure-JAX replica of the PyTorch forward (for validation)."""
    W1, b1, W2, b2, W3, b3 = params
    B, N, C, _ = candidates.shape
    g = int(2 * r / s + 1)
    tgt6 = tgt_dfe_feat.reshape(B, N, g, g, g, C_IN0)
    src6 = src_dfe_feat.reshape(B, N, 1, 1, 1, C_IN0)
    cost = jnp.square(src6 - tgt6)
    x = jnp.transpose(cost, (0, 1, 5, 2, 3, 4)).reshape(B * N, C_IN0, g, g, g)

    def conv(x, W, b):
        y = lax.conv_general_dilated(
            x, W, (1, 1, 1), [(1, 1)] * 3,
            dimension_numbers=('NCDHW', 'OIDHW', 'NCDHW'), precision=HIGH)
        return y + b.reshape(1, -1, 1, 1, 1)

    x = conv(conv(conv(x, W1, b1), W2, b2), W3, b3)
    logits = x.reshape(B, N, C)
    w = jax.nn.softmax(logits, axis=-1)
    wr = jnp.repeat(w[..., None], 3, axis=-1)
    vcp = jnp.sum(wr * candidates, axis=-2) / jnp.sum(wr, axis=-2)
    return vcp


if __name__ == "__main__":
    key = jax.random.PRNGKey(0)
    B, N = 2, 8
    r, s = 1.0, 1.0
    g = int(2 * r / s + 1)
    C = g * g * g  # 27

    params, key = init_params(key)
    k1, k2, k3 = jax.random.split(key, 3)
    src_dfe_feat = jax.random.normal(k1, (B, N, C_IN0), jnp.float32)
    tgt_dfe_feat = jax.random.normal(k2, (B, N, C * C_IN0), jnp.float32)
    candidates = jax.random.normal(k3, (B, N, C, 3), jnp.float32)

    out = cpg_forward(src_dfe_feat, tgt_dfe_feat, candidates, r, s, params)
    out = jax.block_until_ready(out)

    ref = reference(src_dfe_feat, tgt_dfe_feat, candidates, r, s, params)
    np.testing.assert_allclose(np.asarray(out), np.asarray(ref), rtol=1e-3, atol=1e-4)

    print("KERNEL_OK")
</pallas_src>

<mosaic_0001>
module attributes {stable_mosaic.version = 11 : i64} {
  func.func @kernel(%arg0: i32, %arg1: memref<16x32xf32, #tpu.memory_space<vmem>>, %arg2: memref<16x864xf32, #tpu.memory_space<vmem>>, %arg3: memref<16x81xf32, #tpu.memory_space<vmem>>, %arg4: memref<864x27xf32, #tpu.memory_space<vmem>>, %arg5: memref<1x27xf32, #tpu.memory_space<vmem>>, %arg6: memref<16x3xf32, #tpu.memory_space<vmem>>) attributes {dimension_semantics = [#tpu.dimension_semantics<parallel>], iteration_bounds = array<i64: 1>, scalar_prefetch = 0 : i64, scratch_operands = 0 : i64, tpu.core_type = #tpu.core_type<tc>, window_params = [{transform_indices = @transform_0, window_bounds = array<i64: 16, 32>}, {transform_indices = @transform_1, window_bounds = array<i64: 16, 864>}, {transform_indices = @transform_2, window_bounds = array<i64: 16, 81>}, {pipeline_mode = #tpu.pipeline_mode<synchronous>, transform_indices = @transform_3, window_bounds = array<i64: 864, 27>}, {pipeline_mode = #tpu.pipeline_mode<synchronous>, transform_indices = @transform_4, window_bounds = array<i64: 1, 27>}, {transform_indices = @transform_5, window_bounds = array<i64: 16, 3>}]} {
    %c0 = arith.constant 0 : index
    %c0_0 = arith.constant 0 : index
    %0 = vector.load %arg1[%c0, %c0_0] : memref<16x32xf32, #tpu.memory_space<vmem>>, vector<16x32xf32>
    %c0_1 = arith.constant 0 : index
    %c0_2 = arith.constant 0 : index
    %1 = vector.load %arg2[%c0_1, %c0_2] : memref<16x864xf32, #tpu.memory_space<vmem>>, vector<16x864xf32>
    %2 = tpu.concatenate %0, %0, %0, %0, %0, %0, %0, %0, %0, %0, %0, %0, %0, %0, %0, %0 in 1 : vector<16x32xf32>, vector<16x32xf32>, vector<16x32xf32>, vector<16x32xf32>, vector<16x32xf32>, vector<16x32xf32>, vector<16x32xf32>, vector<16x32xf32>, vector<16x32xf32>, vector<16x32xf32>, vector<16x32xf32>, vector<16x32xf32>, vector<16x32xf32>, vector<16x32xf32>, vector<16x32xf32>, vector<16x32xf32> -> vector<16x512xf32>
    %3 = tpu.concatenate %0, %0, %0, %0, %0, %0, %0, %0, %0, %0, %0 in 1 : vector<16x32xf32>, vector<16x32xf32>, vector<16x32xf32>, vector<16x32xf32>, vector<16x32xf32>, vector<16x32xf32>, vector<16x32xf32>, vector<16x32xf32>, vector<16x32xf32>, vector<16x32xf32>, vector<16x32xf32> -> vector<16x352xf32>
    %4 = tpu.concatenate %2, %3 in 1 : vector<16x512xf32>, vector<16x352xf32> -> vector<16x864xf32>
    %5 = arith.subf %4, %1 : vector<16x864xf32>
    %6 = arith.mulf %5, %5 : vector<16x864xf32>
    %c0_3 = arith.constant 0 : index
    %c0_4 = arith.constant 0 : index
    %7 = vector.load %arg4[%c0_3, %c0_4] : memref<864x27xf32, #tpu.memory_space<vmem>>, vector<864x27xf32>
    %cst = arith.constant dense<0.000000e+00> : vector<16x27xf32>
    %8 = tpu.matmul %6, %7, %cst {dimension_numbers = #tpu.dot_dimension_numbers<[1], [0], [0], [1], [0, 0, 1, 1], [], []>, precision = #tpu.contract_precision<fp32>} : vector<16x864xf32>, vector<864x27xf32>, vector<16x27xf32> -> vector<16x27xf32>
    %c0_5 = arith.constant 0 : index
    %c0_6 = arith.constant 0 : index
    %9 = vector.load %arg5[%c0_5, %c0_6] : memref<1x27xf32, #tpu.memory_space<vmem>>, vector<1x27xf32>
    %10 = vector.broadcast %9 : vector<1x27xf32> to vector<16x27xf32>
    %11 = arith.addf %8, %10 : vector<16x27xf32>
    %cst_7 = arith.constant dense<0xFF800000> : vector<16xf32>
    %12 = vector.multi_reduction <maximumf>, %11, %cst_7 [1] : vector<16x27xf32> to vector<16xf32>
    %13 = vector.shape_cast %12 : vector<16xf32> to vector<16x1xf32>
    %14 = vector.broadcast %13 : vector<16x1xf32> to vector<16x27xf32>
    %15 = arith.subf %11, %14 : vector<16x27xf32>
    %16 = math.exp %15 : vector<16x27xf32>
    %cst_8 = arith.constant dense<0.000000e+00> : vector<16xf32>
    %17 = vector.multi_reduction <add>, %16, %cst_8 [1] : vector<16x27xf32> to vector<16xf32>
    %18 = vector.shape_cast %17 : vector<16xf32> to vector<16x1xf32>
    %cst_9 = arith.constant 1.000000e+00 : f32
    %19 = vector.broadcast %cst_9 : f32 to vector<16x1xf32>
    %20 = arith.divf %19, %18 : vector<16x1xf32>
    %c0_10 = arith.constant 0 : index
    %c0_11 = arith.constant 0 : index
    %21 = vector.load %arg3[%c0_10, %c0_11] : memref<16x81xf32, #tpu.memory_space<vmem>>, vector<16x27xf32>
    %22 = arith.mulf %16, %21 : vector<16x27xf32>
    %cst_12 = arith.constant dense<0.000000e+00> : vector<16xf32>
    %23 = vector.multi_reduction <add>, %22, %cst_12 [1] : vector<16x27xf32> to vector<16xf32>
    %24 = vector.shape_cast %23 : vector<16xf32> to vector<16x1xf32>
    %c0_13 = arith.constant 0 : index
    %c27 = arith.constant 27 : index
    %25 = vector.load %arg3[%c0_13, %c27] : memref<16x81xf32, #tpu.memory_space<vmem>>, vector<16x27xf32>
    %26 = arith.mulf %16, %25 : vector<16x27xf32>
    %cst_14 = arith.constant dense<0.000000e+00> : vector<16xf32>
    %27 = vector.multi_reduction <add>, %26, %cst_14 [1] : vector<16x27xf32> to vector<16xf32>
    %28 = vector.shape_cast %27 : vector<16xf32> to vector<16x1xf32>
    %c0_15 = arith.constant 0 : index
    %c54 = arith.constant 54 : index
    %29 = vector.load %arg3[%c0_15, %c54] : memref<16x81xf32, #tpu.memory_space<vmem>>, vector<16x27xf32>
    %30 = arith.mulf %16, %29 : vector<16x27xf32>
    %cst_16 = arith.constant dense<0.000000e+00> : vector<16xf32>
    %31 = vector.multi_reduction <add>, %30, %cst_16 [1] : vector<16x27xf32> to vector<16xf32>
    %32 = vector.shape_cast %31 : vector<16xf32> to vector<16x1xf32>
    %33 = tpu.concatenate %24, %28, %32 in 1 : vector<16x1xf32>, vector<16x1xf32>, vector<16x1xf32> -> vector<16x3xf32>
    %34 = vector.broadcast %20 : vector<16x1xf32> to vector<16x3xf32>
    %35 = arith.mulf %33, %34 : vector<16x3xf32>
    %c0_17 = arith.constant 0 : index
    %c0_18 = arith.constant 0 : index
    %36 = vector.load %arg6[%c0_17, %c0_18] : memref<16x3xf32, #tpu.memory_space<vmem>>, vector<16x3xf32>
    tpu.vector_store %arg6[%c0_17, %c0_18], %35 {strides = array<i32>} : memref<16x3xf32, #tpu.memory_space<vmem>>, vector<16x3xf32>,
    return
  }
  func.func @transform_0(%arg0: i32) -> (i32, i32) {
    %c0_i32 = arith.constant 0 : i32
    %c0_i32_0 = arith.constant 0 : i32
    return %arg0, %c0_i32 : i32, i32
  }
  func.func @transform_1(%arg0: i32) -> (i32, i32) {
    %c0_i32 = arith.constant 0 : i32
    %c0_i32_0 = arith.constant 0 : i32
    return %arg0, %c0_i32 : i32, i32
  }
  func.func @transform_2(%arg0: i32) -> (i32, i32) {
    %c0_i32 = arith.constant 0 : i32
    %c0_i32_0 = arith.constant 0 : i32
    return %arg0, %c0_i32 : i32, i32
  }
  func.func @transform_3(%arg0: i32) -> (i32, i32) {
    %c0_i32 = arith.constant 0 : i32
    %c0_i32_0 = arith.constant 0 : i32
    %c0_i32_1 = arith.constant 0 : i32
    return %c0_i32, %c0_i32_0 : i32, i32
  }
  func.func @transform_4(%arg0: i32) -> (i32, i32) {
    %c0_i32 = arith.constant 0 : i32
    %c0_i32_0 = arith.constant 0 : i32
    %c0_i32_1 = arith.constant 0 : i32
    return %c0_i32, %c0_i32_0 : i32, i32
  }
  func.func @transform_5(%arg0: i32) -> (i32, i32) {
    %c0_i32 = arith.constant 0 : i32
    %c0_i32_0 = arith.constant 0 : i32
    return %arg0, %c0_i32 : i32, i32
  }
}

</mosaic_0001>

<bundles_post_ra>
// kernel: tpu_custom_call.1
= control target key start
LH: loop header
LB: loop body
LE: loop exit
PB: predicated region body
PF: predicated region fallthrough
CT: control target
= control target key end

     0   :  { %s5354_s24 = smov 32   ;;  %s5355_s25 = smov 96   ;;  %vm56_vm0 = vcmask 261120   ;;  %vm59_vm1 = vcmask 523264   ;;  %vm62_vm2 = vcmask 785408   ;;  %vm3600_vm3 = vcmask 220160   ;;  %s7910_s0 = inlined_call_operand.vmem [shape: f32[16,32], index: 0, kind: input, shape index: {}]   ;;  %s7911_s3 = inlined_call_operand.vmem [shape: f32[864,27], index: 3, kind: input, shape index: {}]   ;;  %s7912_s1 = inlined_call_operand.vmem [shape: f32[16,864], index: 1, kind: input, shape index: {}]   ;;  %s7913_s4 = inlined_call_operand.vmem [shape: f32[1,27], index: 4, kind: input, shape index: {}]   ;;  %s7914_s2 = inlined_call_operand.vmem [shape: f32[16,81], index: 2, kind: input, shape index: {}]   ;;  %s7915_s5 = inlined_call_operand.vmem [shape: f32[16,3], index: 5, kind: output, shape index: {}]  }
   0x1   :  { %v5392_v0 = vld [vmem:[%s7910_s0] sm:$0xff]  ;;  %v5397_v1 = vld [vmem:[%s7910_s0 + $0x8] sm:$0xff]  ;;  %v111_v9 = vld [vmem:[%s7911_s3 + $0x90] sm:$0xff]  ;;  %s5356_s14 = smov 64   ;;  %s5357_s6 = smov 101   ;;  %vm3663_vm4 = vcmask 7168  }
   0x2   :  { %8263 = vst [vmem:[#allocation2_spill] sm:$0xff] %v5392_v0  ;;  %8264 = vst [vmem:[#allocation3_spill] sm:$0xff] %v5397_v1  ;;  %v109_v2 = vld [vmem:[%s7911_s3 + $0x80] sm:$0xff]  ;;  %38 = vrot.lane.b32.xlu0 %v5392_v0, %s5354_s24  ;;  %50 = vrot.lane.b32.xlu1 %v5392_v0, %s5355_s25  ;;  %v110_v3 = vld [vmem:[%s7911_s3 + $0x88] sm:$0xff]  ;;  %v269_v13 = vand.u32 4294901760, %v111_v9  ;;  %s5358_s9 = smov 74  }
   0x3   :  { %v263_v4 = vand.u32 4294901760, %v109_v2  ;;  %v93_v5 = vld [vmem:[%s7911_s3] sm:$0xff]  ;;  %v266_v6 = vand.u32 4294901760, %v110_v3  ;;  %v94_v7 = vld [vmem:[%s7911_s3 + $0x8] sm:$0xff]  ;;  %v112_v10 = vld [vmem:[%s7911_s3 + $0x98] sm:$0xff]  ;;  %vm3666_vm5 = vcmask 15360  }
   0x4   :  { %v215_v8 = vand.u32 4294901760, %v93_v5  ;;  %v218_v12 = vand.u32 4294901760, %v94_v7  ;;  %v272_v14 = vand.u32 4294901760, %v112_v10  ;;  %v95_v15 = vld [vmem:[%s7911_s3 + $0x10] sm:$0xff]  ;;  %v96_v16 = vld [vmem:[%s7911_s3 + $0x18] sm:$0xff]  ;;  %v5437_v23 = vsub.f32 %v111_v9, %v269_v13  ;;  %v113_v34 = vld [vmem:[%s7911_s3 + $0xa0] sm:$0xff] }
   0x5   :  { %v5420_v11 = vsub.f32 %v109_v2, %v263_v4  ;;  %v5428_v17 = vsub.f32 %v110_v3, %v266_v6  ;;  %v221_v19 = vand.u32 4294901760, %v95_v15  ;;  %v224_v20 = vand.u32 4294901760, %v96_v16  ;;  %v114_v35 = vld [vmem:[%s7911_s3 + $0xa8] sm:$0xff]  ;;  %v97_v39 = vld [vmem:[%s7911_s3 + $0x20] sm:$0xff]  ;;  %v5484_v44 = vld [vmem:[%s7911_s3 + $0xb0] sm:$0xff] }
   0x6   :  { %v5430_v18 = vsub.f32 %v93_v5, %v215_v8  ;;  %44 = vrot.lane.b32.xlu0 %v5392_v0, %s5356_s14  ;;  %40 = vrot.lane.b32.xlu1 %v5397_v1, %s5354_s24  ;;  %v5435_v22 = vsub.f32 %v94_v7, %v218_v12  ;;  %v5439_v24 = vsub.f32 %v112_v10, %v272_v14  ;;  %v7923_v30 = vand.u32 4294901760, %v5437_v23  ;;  %v98_v40 = vld [vmem:[%s7911_s3 + $0x28] sm:$0xff]  ;;  %v5489_v45 = vld [vmem:[%s7911_s3 + $0xb8] sm:$0xff] }
   0x7   :  { %8265 = vst [vmem:[#allocation4_spill] sm:$0xff] %v5420_v11  ;;  %8266 = vst [vmem:[#allocation5_spill] sm:$0xff] %v5428_v17  ;;  %v456_v21 = vand.u32 4294901760, %v5420_v11  ;;  %v463_v25 = vand.u32 4294901760, %v5428_v17  ;;  %v5443_v27 = vsub.f32 %v95_v15, %v221_v19  ;;  %v5445_v28 = vsub.f32 %v96_v16, %v224_v20  ;;  %v5505_v52 = vld [vmem:[%s7911_s3 + $0x30] sm:$0xff]  ;;  %v5515_v56 = vld [vmem:[%s7911_s3 + $0x38] sm:$0xff] }
   0x8   :  { %8267 = vst [vmem:[#allocation6_spill] sm:$0xff] %v5430_v18  ;;  %8268 = vst [vmem:[#allocation7_spill] sm:$0xff] %v5435_v22  ;;  %v7927_v26 = vand.u32 4294901760, %v5430_v18  ;;  %v7926_v29 = vand.u32 4294901760, %v5435_v22  ;;  %v7920_v31 = vand.u32 4294901760, %v5439_v24  ;;  %v5479_v41 = vpack.c.bf16 %v266_v6, %v263_v4  ;;  %v117_v7 = vld [vmem:[%s7911_s3 + $0xc0] sm:$0xff] }
   0x9   :  { %v4737_v32 = vpack.c.bf16 %v463_v25, %v456_v21  ;;  %v7925_v33 = vand.u32 4294901760, %v5443_v27  ;;  %v7924_v38 = vand.u32 4294901760, %v5445_v28  ;;  %v275_v42 = vand.u32 4294901760, %v113_v34 }
   0xa   :  { %46 = vrot.lane.b32.xlu0 %v5397_v1, %s5356_s14  ;;  %52 = vrot.lane.b32.xlu1 %v5397_v1, %s5355_s25  ;;  %v4739_v36 = vpack.c.bf16 %v7926_v29, %v7927_v26  ;;  %v4741_v37 = vpack.c.bf16 %v7920_v31, %v7923_v30  ;;  %8269 = vst [vmem:[#allocation8_spill] sm:$0xff] %v5479_v41  ;;  %v278_v43 = vand.u32 4294901760, %v114_v35  ;;  %v227_v50 = vand.u32 4294901760, %v97_v39  ;;  %v122_v31 = vld [vmem:[%s7911_s3 + $0xe8] sm:$0xff] }
   0xb   :  { %4738 = vmatprep.subr.bf16.mxu0 %v4737_v32  ;;  %v4743_v46 = vpack.c.bf16 %v7924_v38, %v7925_v33  ;;  %v5495_v47 = vpack.c.bf16 %v218_v12, %v215_v8  ;;  %4610 = vmatprep.subr.bf16.mxu1 %v5479_v41  ;;  %v5498_v48 = vsub.f32 %v113_v34, %v275_v42  ;;  %v230_v51 = vand.u32 4294901760, %v98_v40  ;;  %v118_v8 = vld [vmem:[%s7911_s3 + $0xc8] sm:$0xff]  ;;  %v5658_v38 = vld [vmem:[%s7911_s3 + $0x60] sm:$0xff]  ;;  %v5676_v33 = vld [vmem:[%s7911_s3 + $0xf0] sm:$0xff] }
   0xc   :  { %4740 = vmatpush3.bf16.msra.mxu0 %v4739_v36  ;;  %v5500_v49 = vsub.f32 %v114_v35, %v278_v43  ;;  %v5508_v53 = vpack.c.bf16 %v272_v14, %v269_v13  ;;  %v281_v54 = vand.u32 4294901760, %v5484_v44  ;;  %v284_v55 = vand.u32 4294901760, %v5489_v45 }
   0xd   :  { %4742 = vmatprep.subr.bf16.mxu0 %v4741_v37  ;;  %8270 = vst [vmem:[#allocation9_spill] sm:$0xff] %v5495_v47  ;;  %8271 = vst [vmem:[#allocation10_spill] sm:$0xff] %v5498_v48  ;;  %4612 = vmatpush3.bf16.msra.mxu1 %v5495_v47  ;;  %v7919_v57 = vand.u32 4294901760, %v5498_v48  ;;  %v5519_v59 = vsub.f32 %v97_v39, %v227_v50  ;;  %v5521_v60 = vsub.f32 %v98_v40, %v230_v51  ;;  %v102_v37 = vld [vmem:[%s7911_s3 + $0x48] sm:$0xff]  ;;  %vm3671_vm6 = vcmask 23552  }
   0xe   :  { %8272 = vst [vmem:[#allocation11_spill] sm:$0xff] %v5500_v49  ;;  %8273 = vst [vmem:[#allocation12_spill] sm:$0xff] %v5508_v53  ;;  %v7918_v58 = vand.u32 4294901760, %v5500_v49  ;;  %4614 = vmatprep.subr.bf16.mxu1 %v5508_v53  ;;  %v5525_v61 = vsub.f32 %v5484_v44, %v281_v54  ;;  %v5528_v62 = vsub.f32 %v5489_v45, %v284_v55  ;;  %v233_v2 = vand.u32 4294901760, %v5505_v52 }
   0xf   :  { %8274 = vst [vmem:[#allocation13_spill] sm:$0xff] %v5519_v59  ;;  %8275 = vst [vmem:[#allocation14_spill] sm:$0xff] %v5521_v60  ;;  %v5530_v63 = vpack.c.bf16 %v224_v20, %v221_v19  ;;  %v372_v4 = vand.u32 4294901760, %v5519_v59  ;;  %v379_v5 = vand.u32 4294901760, %v5521_v60  ;;  %v236_v6 = vand.u32 4294901760, %v5515_v56  ;;  %v5566_v20 = vld [vmem:[%s7911_s3 + $0x40] sm:$0xff] }
  0x10   :  { %4744 = vmatpush3.bf16.msra.mxu0 %v4743_v46  ;;  %8276 = vst [vmem:[#allocation15_spill] sm:$0xff] %v5525_v61  ;;  %8277 = vst [vmem:[#allocation16_spill] sm:$0xff] %v5528_v62  ;;  %v4745_v3 = vpack.c.bf16 %v7918_v58, %v7919_v57  ;;  %v7917_v9 = vand.u32 4294901760, %v5525_v61  ;;  %v7916_v10 = vand.u32 4294901760, %v5528_v62  ;;  %v5550_v12 = vsub.f32 %v5505_v52, %v233_v2  ;;  %v119_v46 = vld [vmem:[%s7911_s3 + $0xd0] sm:$0xff]  ;;  %v120_v52 = vld [vmem:[%s7911_s3 + $0xd8] sm:$0xff] }
  0x11   :  { %8278 = vst [vmem:[#allocation17_spill] sm:$0xff] %v5530_v63  ;;  %4616 = vmatpush3.bf16.msra.mxu1 %v5530_v63  ;;  %v5552_v13 = vpack.c.bf16 %v278_v43, %v275_v42  ;;  %v5555_v14 = vsub.f32 %v5519_v59, %v372_v4  ;;  %v5558_v15 = vsub.f32 %v5521_v60, %v379_v5  ;;  %v287_v35 = vand.u32 4294901760, %v117_v7  ;;  %v6175_v59 = vld [vmem:[%s7911_s3 + $0x1d8] sm:$0xff] }
  0x12   :  { %8279 = vst [vmem:[#allocation18_spill] sm:$0xff] %v5550_v12  ;;  %4746 = vmatprep.subr.bf16.mxu0 %v4745_v3  ;;  %v4747_v16 = vpack.c.bf16 %v379_v5, %v372_v4  ;;  %v5561_v19 = vsub.f32 %v5515_v56, %v236_v6  ;;  %v4749_v32 = vpack.c.bf16 %v7916_v10, %v7917_v9  ;;  %v386_v34 = vand.u32 4294901760, %v5550_v12  ;;  %v5603_v4 = vld [vmem:[%s7911_s3 + $0x50] sm:$0xff] }
  0x13   :  { %8280 = vst [vmem:[#allocation19_spill] sm:$0xff] %v5552_v13  ;;  %4618 = vmatprep.subr.bf16.mxu1 %v5552_v13  ;;  %v290_v36 = vand.u32 4294901760, %v118_v8  ;;  %v5578_v40 = vpack.c.bf16 %v230_v51, %v227_v50  ;;  %v5583_v43 = vsub.f32 %v117_v7, %v287_v35  ;;  %v239_v45 = vand.u32 4294901760, %v5566_v20 }
  0x14   :  { %8281 = vst [vmem:[#allocation20_spill] sm:$0xff] %v5561_v19  ;;  %4748 = vmatpush3.bf16.msra.mxu0 %v4747_v16  ;;  %v393_v39 = vand.u32 4294901760, %v5561_v19  ;;  %v5581_v42 = vsub.f32 %v5550_v12, %v386_v34  ;;  %v242_v56 = vand.u32 4294901760, %v102_v37  ;;  %v5598_v3 = vpack.c.bf16 %v284_v55, %v281_v54  ;;  %v5613_v16 = vld [vmem:[%s7911_s3 + $0x58] sm:$0xff] }
  0x15   :  { %8282 = vst [vmem:[#allocation21_spill] sm:$0xff] %v5578_v40  ;;  %4750 = vmatprep.subr.bf16.mxu0 %v4749_v32  ;;  %8283 = vst [vmem:[#allocation22_spill] sm:$0xff] %v5583_v43  ;;  %v5585_v44 = vsub.f32 %v118_v8, %v290_v36  ;;  %4620 = vmatpush3.bf16.msra.mxu1 %v5578_v40  ;;  %v7922_v5 = vand.u32 4294901760, %v5583_v43  ;;  %v5608_v8 = vsub.f32 %v5566_v20, %v239_v45 }
  0x16   :  { %v5595_v50 = vsub.f32 %v5561_v19, %v393_v39  ;;  %v4751_v51 = vpack.c.bf16 %v393_v39, %v386_v34  ;;  %8285 = vst [vmem:[#allocation24_spill] sm:$0xff] %v5598_v3  ;;  %v5615_v54 = vsub.f32 %v102_v37, %v242_v56  ;;  %4622 = vmatprep.subr.bf16.mxu1 %v5598_v3  ;;  %v293_v55 = vand.u32 4294901760, %v119_v46  ;;  %v5621_v34 = vld [vmem:[%s7911_s3 + $0xe0] sm:$0xff] }
  0x17   :  { %8284 = vst [vmem:[#allocation23_spill] sm:$0xff] %v5585_v44  ;;  %v7921_v7 = vand.u32 4294901760, %v5585_v44  ;;  %8286 = vst [vmem:[#allocation25_spill] sm:$0xff] %v5608_v8  ;;  %v296_v32 = vand.u32 4294901760, %v120_v52  ;;  %v400_v39 = vand.u32 4294901760, %v5608_v8  ;;  %v5628_v10 = vpack.c.bf16 %v236_v6, %v233_v2 }
  0x18   :  { %4752 = vmatpush3.bf16.msra.mxu0 %v4751_v51  ;;  %8287 = vst [vmem:[#allocation26_spill] sm:$0xff] %v5615_v54  ;;  %v245_v37 = vand.u32 4294901760, %v5603_v4  ;;  %v407_v51 = vand.u32 4294901760, %v5615_v54  ;;  %v5632_v9 = vsub.f32 %v119_v46, %v293_v55  ;;  %v248_v57 = vand.u32 4294901760, %v5613_v16 }
  0x19   :  { %v4753_v20 = vpack.c.bf16 %v7921_v7, %v7922_v5  ;;  %8288 = vst [vmem:[#allocation27_spill] sm:$0xff] %v5628_v10  ;;  %v5634_v58 = vsub.f32 %v120_v52, %v296_v32  ;;  %v5641_v7 = vsub.f32 %v5608_v8, %v400_v39  ;;  %4624 = vmatpush3.bf16.msra.mxu1 %v5628_v10  ;;  %v299_v46 = vand.u32 4294901760, %v5621_v34 }
  0x1a   :  { %8289 = vst [vmem:[#allocation28_spill] sm:$0xff] %v5632_v9  ;;  %v5645_v2 = vsub.f32 %v5603_v4, %v245_v37  ;;  %v5647_v6 = vpack.c.bf16 %v290_v36, %v287_v35  ;;  %v5651_v52 = vsub.f32 %v5615_v54, %v407_v51  ;;  %v4755_v5 = vpack.c.bf16 %v407_v51, %v400_v39  ;;  %v106_v51 = vld [vmem:[%s7911_s3 + $0x68] sm:$0xff] }
  0x1b   :  { %8290 = vst [vmem:[#allocation29_spill] sm:$0xff] %v5634_v58  ;;  %4754 = vmatprep.subr.bf16.mxu0 %v4753_v20  ;;  %v7935_v30 = vand.u32 4294901760, %v5632_v9  ;;  %v7934_v20 = vand.u32 4294901760, %v5634_v58  ;;  %v5663_v35 = vsub.f32 %v5420_v11, %v456_v21  ;;  %v5667_v4 = vsub.f32 %v5613_v16, %v248_v57 }
  0x1c   :  { %8291 = vst [vmem:[#allocation30_spill] sm:$0xff] %v5645_v2  ;;  %8292 = vst [vmem:[#allocation31_spill] sm:$0xff] %v5647_v6  ;;  %v414_v36 = vand.u32 4294901760, %v5645_v2  ;;  %4626 = vmatprep.subr.bf16.mxu1 %v5647_v6  ;;  %v302_v39 = vand.u32 4294901760, %v122_v31  ;;  %v5681_v21 = vsub.f32 %v5428_v17, %v463_v25  ;;  %4756 = vmatpush3.bf16.msra.mxu0 %v4755_v5  ;;  %v251_v25 = vand.u32 4294901760, %v5658_v38  ;;  %v124_v5 = vld [vmem:[%s7911_s3 + $0xf8] sm:$0xff] }
  0x1d   :  { %8293 = vst [vmem:[#allocation32_spill] sm:$0xff] %v5667_v4  ;;  %v4757_v16 = vpack.c.bf16 %v7934_v20, %v7935_v30  ;;  %v5688_v29 = vsub.f32 %v5621_v34, %v299_v46  ;;  %v5690_v26 = vpack.c.bf16 %v242_v56, %v239_v45  ;;  %v421_v10 = vand.u32 4294901760, %v5667_v4 }
  0x1e   :  { %v5693_v6 = vsub.f32 %v5645_v2, %v414_v36  ;;  %v5696_v3 = vsub.f32 %v122_v31, %v302_v39  ;;  %v254_v45 = vand.u32 4294901760, %v106_v51  ;;  %v5704_v56 = vpack.c.bf16 %v296_v32, %v293_v55  ;;  %v107_v31 = vld [vmem:[%s7911_s3 + $0x70] sm:$0xff] }
  0x1f   :  { %8294 = vst [vmem:[#allocation33_spill] sm:$0xff] %v5688_v29  ;;  %8295 = vst [vmem:[#allocation34_spill] sm:$0xff] %v5690_v26  ;;  %4758 = vmatprep.subr.bf16.mxu0 %v4757_v16  ;;  %4628 = vmatpush3.bf16.msra.mxu1 %v5690_v26  ;;  %v305_v34 = vand.u32 4294901760, %v5676_v33  ;;  %v8298_v30 = vand.u32 4294901760, %v5430_v18  ;;  %v5716_v16 = vsub.f32 %v5667_v4, %v421_v10  ;;  %v308_v13 = vand.u32 4294901760, %v124_v5  ;;  %v6053_v4 = vld [vmem:[%s7911_s3 + $0x1b0] sm:$0xff] }
  0x20   :  { %8296 = vst [vmem:[#allocation35_spill] sm:$0xff] %v5696_v3  ;;  %8297 = vst [vmem:[#allocation36_spill] sm:$0xff] %v5704_v56  ;;  %v4759_v20 = vpack.c.bf16 %v421_v10, %v414_v36  ;;  %v7954_v26 = vand.u32 4294901760, %v5696_v3  ;;  %v5720_v55 = vsub.f32 %v5658_v38, %v251_v25  ;;  %v5722_v32 = vsub.f32 %v106_v51, %v254_v45  ;;  %v141_v10 = vld [vmem:[%s7911_s3 + $0x180] sm:$0xff] }
  0x21   :  { %v5713_v40 = vsub.f32 %v5430_v18, %v8298_v30  ;;  %4630 = vmatprep.subr.bf16.mxu1 %v5704_v56  ;;  %v5726_v63 = vsub.f32 %v5676_v33, %v305_v34  ;;  %v108_v30 = vld [vmem:[%s7911_s3 + $0x78] sm:$0xff]  ;;  %v8302_v36 = vand.u32 4294901760, %v5435_v22  ;;  %v8303_v51 = vand.u32 4294901760, %v5688_v29 }
  0x22   :  { %8299 = vst [vmem:[#allocation37_spill] sm:$0xff] %v5720_v55  ;;  %8300 = vst [vmem:[#allocation38_spill] sm:$0xff] %v5722_v32  ;;  %4760 = vmatpush3.bf16.msra.mxu0 %v4759_v20  ;;  %v5741_v33 = vpack.c.bf16 %v248_v57, %v245_v37  ;;  %v257_v53 = vand.u32 4294901760, %v107_v31  ;;  %v428_v47 = vand.u32 4294901760, %v5720_v55  ;;  %v435_v41 = vand.u32 4294901760, %v5722_v32  ;;  %v142_v20 = vld [vmem:[%s7911_s3 + $0x188] sm:$0xff] }
  0x23   :  { %8301 = vst [vmem:[#allocation39_spill] sm:$0xff] %v5726_v63  ;;  %v352_v38 = vsub.f32 %v5435_v22, %v8302_v36  ;;  %v4761_v56 = vpack.c.bf16 %v7954_v26, %v8303_v51  ;;  %v5746_v17 = vsub.f32 %v124_v5, %v308_v13  ;;  %v260_v36 = vand.u32 4294901760, %v108_v30 }
  0x24   :  { %8304 = vst [vmem:[#allocation40_spill] sm:$0xff] %v5741_v33  ;;  %4632 = vmatpush3.bf16.msra.mxu1 %v5741_v33  ;;  %v5752_v51 = vsub.f32 %v107_v31, %v257_v53  ;;  %v5754_v57 = vpack.c.bf16 %v302_v39, %v299_v46  ;;  %v1181_v37 = vand.u32 4294901760, %v141_v10  ;;  %v5757_v26 = vsub.f32 %v5720_v55, %v428_v47 }
  0x25   :  { %8305 = vst [vmem:[#allocation41_spill] sm:$0xff] %v5746_v17  ;;  %4762 = vmatprep.subr.bf16.mxu0 %v4761_v56  ;;  %v5760_v18 = vsub.f32 %v5722_v32, %v435_v41  ;;  %v4763_v5 = vpack.c.bf16 %v435_v41, %v428_v47  ;;  %v7964_v22 = vand.u32 4294901760, %v5746_v17  ;;  %v5764_v56 = vsub.f32 %v108_v30, %v260_v36 }
  0x26   :  { %8306 = vst [vmem:[#allocation42_spill] sm:$0xff] %v5752_v51  ;;  %8307 = vst [vmem:[#allocation43_spill] sm:$0xff] %v5754_v57  ;;  %v442_v11 = vand.u32 4294901760, %v5752_v51  ;;  %4634 = vmatprep.subr.bf16.mxu1 %v5754_v57  ;;  %v1184_v31 = vand.u32 4294901760, %v142_v20  ;;  %v5767_v33 = vsub.f32 %v141_v10, %v1181_v37  ;;  %v458_v46 = vand.u32 4294901760, %v5663_v35 }
  0x27   :  { %8308 = vst [vmem:[#allocation44_spill] sm:$0xff] %v5764_v56  ;;  %4764 = vmatpush3.bf16.msra.mxu0 %v4763_v5  ;;  %v8310_v39 = vand.u32 4294901760, %v5726_v63  ;;  %v5774_v41 = vpack.c.bf16 %v254_v45, %v251_v25  ;;  %v465_v47 = vand.u32 4294901760, %v5681_v21  ;;  %v449_v57 = vand.u32 4294901760, %v5764_v56 }
  0x28   :  { %8309 = vst [vmem:[#allocation45_spill] sm:$0xff] %v5767_v33  ;;  %v5778_v30 = vsub.f32 %v5752_v51, %v442_v11  ;;  %v5781_v0 = vsub.f32 %v142_v20, %v1184_v31  ;;  %v346_v10 = vand.u32 4294901760, %v5713_v40  ;;  %v8312_v35 = vand.u32 4294901760, %v5443_v27 }
  0x29   :  { %v4765_v1 = vpack.c.bf16 %v7964_v22, %v8310_v39  ;;  %8311 = vst [vmem:[#allocation46_spill] sm:$0xff] %v5774_v41  ;;  %v5787_v33 = vpack.c.bf16 %v1184_v31, %v1181_v37  ;;  %4636 = vmatpush3.bf16.msra.mxu1 %v5774_v41  ;;  %v5790_v25 = vpack.c.bf16 %v308_v13, %v305_v34  ;;  %v353_v21 = vand.u32 4294901760, %v352_v38  ;;  %v5964_v41 = vld [vmem:[%s7911_s3 + $0x110] sm:$0xff] }
  0x2a   :  { %v359_v5 = vsub.f32 %v5443_v27, %v8312_v35  ;;  %v8315_v45 = vand.u32 4294901760, %v5445_v28  ;;  %v450_v20 = vsub.f32 %v5764_v56, %v449_v57  ;;  %v4767_v22 = vpack.c.bf16 %v449_v57, %v442_v11 }
  0x2b   :  { %4766 = vmatprep.subr.bf16.mxu0 %v4765_v1  ;;  %8313 = vst [vmem:[#allocation47_spill] sm:$0xff] %v5787_v33  ;;  %8314 = vst [vmem:[#allocation48_spill] sm:$0xff] %v5790_v25  ;;  %4638 = vmatprep.subr.bf16.mxu1 %v5790_v25  ;;  %v5797_v40 = vpack.c.bf16 %v260_v36, %v257_v53  ;;  %v4641_v1 = vpack.c.bf16 %v465_v47, %v458_v46  ;;  %v8317_v34 = vand.u32 4294901760, %v5437_v23 }
  0x2c   :  { %v366_v39 = vsub.f32 %v5445_v28, %v8315_v45  ;;  %4768 = vmatpush3.bf16.msra.mxu0 %v4767_v22  ;;  %v360_v37 = vand.u32 4294901760, %v359_v5  ;;  %v5801_v13 = vpack.c.bf16 %v353_v21, %v346_v10  ;;  %v8318_v11 = vand.u32 4294901760, %v5439_v24 }
  0x2d   :  { %8316 = vst [vmem:[#allocation49_spill] sm:$0xff] %v5797_v40  ;;  %4802 = vmatprep.subr.bf16.mxu0 %v5787_v33  ;;  %4640 = vmatpush3.bf16.msra.mxu1 %v5797_v40  ;;  %v471_v38 = vsub.f32 %v5437_v23, %v8317_v34  ;;  %v374_v53 = vand.u32 4294901760, %v5555_v14  ;;  %v381_v36 = vand.u32 4294901760, %v5558_v15  ;;  %v8319_v10 = vand.u32 4294901760, %v5498_v48  ;;  %v5945_v40 = vld [vmem:[%s7911_s3 + $0x190] sm:$0xff] }
  0x2e   :  { %v367_v31 = vand.u32 4294901760, %v366_v39  ;;  %4642 = vmatprep.subr.bf16.mxu1 %v4641_v1  ;;  %v478_v22 = vsub.f32 %v5439_v24, %v8318_v11  ;;  %v8320_v45 = vand.u32 4294901760, %v5500_v49  ;;  %v388_v1 = vand.u32 4294901760, %v5581_v42 }
  0x2f   :  { %v472_v46 = vand.u32 4294901760, %v471_v38  ;;  %v485_v35 = vsub.f32 %v5498_v48, %v8319_v10  ;;  %v395_v14 = vand.u32 4294901760, %v5595_v50  ;;  %v5823_v15 = vpack.c.bf16 %v381_v36, %v374_v53 }
  0x30   :  { %v5811_v57 = vpack.c.bf16 %v367_v31, %v360_v37  ;;  %v479_v47 = vand.u32 4294901760, %v478_v22  ;;  %v492_v39 = vsub.f32 %v5500_v49, %v8320_v45  ;;  %v8321_v31 = vand.u32 4294901760, %v5525_v61 }
  0x31   :  { %v486_v21 = vand.u32 4294901760, %v485_v35  ;;  %v8322_v38 = vand.u32 4294901760, %v5528_v62  ;;  %v409_v42 = vand.u32 4294901760, %v5651_v52  ;;  %v5835_v50 = vpack.c.bf16 %v395_v14, %v388_v1 }
  0x32   :  { %v5816_v5 = vpack.c.bf16 %v479_v47, %v472_v46  ;;  %v493_v37 = vand.u32 4294901760, %v492_v39  ;;  %v499_v34 = vsub.f32 %v5525_v61, %v8321_v31  ;;  %v402_v47 = vand.u32 4294901760, %v5641_v7 }
  0x33   :  { %v506_v11 = vsub.f32 %v5528_v62, %v8322_v38  ;;  %v8323_v53 = vand.u32 4294901760, %v5583_v43  ;;  %v8324_v35 = vand.u32 4294901760, %v5585_v44  ;;  %v423_v7 = vand.u32 4294901760, %v5716_v16  ;;  %v6155_v62 = vld [vmem:[%s7911_s3 + $0x140] sm:$0xff] }
  0x34   :  { %v5831_v22 = vpack.c.bf16 %v493_v37, %v486_v21  ;;  %v500_v46 = vand.u32 4294901760, %v499_v34  ;;  %v416_v37 = vand.u32 4294901760, %v5693_v6  ;;  %v5847_v52 = vpack.c.bf16 %v409_v42, %v402_v47 }
  0x35   :  { %v507_v10 = vand.u32 4294901760, %v506_v11  ;;  %v513_v36 = vsub.f32 %v5583_v43, %v8323_v53  ;;  %v520_v45 = vsub.f32 %v5585_v44, %v8324_v35  ;;  %v8325_v1 = vand.u32 4294901760, %v5632_v9  ;;  %v32_v44 = vld [vmem:[%s7912_s1 + $0x50] sm:$0xff] }
  0x36   :  { %v8326_v34 = vand.u32 4294901760, %v5634_v58  ;;  %v437_v6 = vand.u32 4294901760, %v5760_v18  ;;  %v5859_v16 = vpack.c.bf16 %v423_v7, %v416_v37  ;;  %v444_v47 = vand.u32 4294901760, %v5778_v30 }
  0x37   :  { %v5843_v39 = vpack.c.bf16 %v507_v10, %v500_v46  ;;  %v514_v21 = vand.u32 4294901760, %v513_v36  ;;  %v521_v31 = vand.u32 4294901760, %v520_v45  ;;  %v527_v14 = vsub.f32 %v5632_v9, %v8325_v1 }
  0x38   :  { %v534_v38 = vsub.f32 %v5634_v58, %v8326_v34  ;;  %v430_v10 = vand.u32 4294901760, %v5757_v26  ;;  %v451_v42 = vand.u32 4294901760, %v450_v20  ;;  %v8327_v36 = vand.u32 4294901760, %v5688_v29 }
  0x39   :  { %v5855_v11 = vpack.c.bf16 %v521_v31, %v514_v21  ;;  %v528_v46 = vand.u32 4294901760, %v527_v14  ;;  %v8328_v45 = vand.u32 4294901760, %v5696_v3  ;;  %v8329_v18 = vand.u32 4294901760, %v5726_v63 }
  0x3a   :  { %v535_v53 = vand.u32 4294901760, %v534_v38  ;;  %v541_v35 = vsub.f32 %v5688_v29, %v8327_v36  ;;  %v5870_v14 = vpack.c.bf16 %v437_v6, %v430_v10  ;;  %v8330_v30 = vand.u32 4294901760, %v5746_v17  ;;  %v8332_v6 = vld [vmem:[#allocation3_spill] sm:$0xff] }
  0x3b   :  { %v548_v21 = vsub.f32 %v5696_v3, %v8328_v45  ;;  %v555_v37 = vsub.f32 %v5726_v63, %v8329_v18  ;;  %v5878_v7 = vpack.c.bf16 %v451_v42, %v444_v47  ;;  %v5917_v18 = vld [vmem:[%s7911_s3 + $0x100] sm:$0xff]  ;;  %v23_v45 = vld [vmem:[%s7912_s1 + $0x8] sm:$0xff] }
  0x3c   :  { %v5868_v31 = vpack.c.bf16 %v535_v53, %v528_v46  ;;  %v542_v1 = vand.u32 4294901760, %v541_v35  ;;  %v562_v20 = vsub.f32 %v5746_v17, %v8330_v30  ;;  %v22_v42 = vld [vmem:[%s7912_s1] sm:$0xff]  ;;  %v5930_v47 = vld [vmem:[%s7911_s3 + $0x108] sm:$0xff]  ;;  %v8336_v51 = vand.u32 4294901760, %v5917_v18  ;;  %v29_v17 = vld [vmem:[%s7912_s1 + $0x38] sm:$0xff] }
  0x3d   :  { %v549_v26 = vand.u32 4294901760, %v548_v21  ;;  %v556_v38 = vand.u32 4294901760, %v555_v37  ;;  %v5992_v63 = vld [vmem:[%s7911_s3 + $0x1a0] sm:$0xff] }
  0x3e   :  { %v563_v36 = vand.u32 4294901760, %v562_v20 }
  0x3f   :  { %v5880_v34 = vpack.c.bf16 %v549_v26, %v542_v1  ;;  %v8331_v26 = vld [vmem:[#allocation2_spill] sm:$0xff] }
  0x40   :  { %v5882_v46 = vpack.c.bf16 %v563_v36, %v556_v38  ;;  %v26_v38 = vld [vmem:[%s7912_s1 + $0x20] sm:$0xff]  ;;  %v28_v36 = vld [vmem:[%s7912_s1 + $0x30] sm:$0xff] }
  0x74   :  { %v39_v30 = vpop.permute.xlu0 %38  ;;  %v51_v20 = vpop.permute.xlu1 %50 }
  0x75   :  { %v57_v37 = vsel %vm56_vm0, %v8331_v26, %v39_v30  ;;  %v27_v26 = vld [vmem:[%s7912_s1 + $0x28] sm:$0xff] }
  0x78   :  { %v45_v1 = vpop.permute.xlu0 %44  ;;  %v41_v21 = vpop.permute.xlu1 %40 }
  0x79   :  { %v60_v35 = vsel %vm59_vm1, %v57_v37, %v45_v1  ;;  %v58_v10 = vsel %vm56_vm0, %v8332_v6, %v41_v21  ;;  %v5950_v1 = vld [vmem:[%s7911_s3 + $0x198] sm:$0xff] }
  0x7a   :  { %v5937_v30 = vsel %vm62_vm2, %v60_v35, %v51_v20  ;;  %v71_v53 = vsub.f32 %v60_v35, %v28_v36  ;;  %v35_v35 = vld [vmem:[%s7912_s1 + $0x68] sm:$0xff] }
  0x7b   :  { %v5953_v37 = vsub.f32 %v5937_v30, %v26_v38  ;;  %v66_v6 = vsub.f32 %v5937_v30, %v23_v45  ;;  %v65_v21 = vsub.f32 %v5937_v30, %v22_v42  ;;  %v25_v38 = vld [vmem:[%s7912_s1 + $0x18] sm:$0xff]  ;;  %v34_v42 = vld [vmem:[%s7912_s1 + $0x60] sm:$0xff] }
  0x7c   :  { %v85_v36 = vmul.f32 %v71_v53, %v71_v53  ;;  %v47_v33 = vpop.permute.xlu0 %46  ;;  %v53_v25 = vpop.permute.xlu1 %52  ;;  %v33_v53 = vld [vmem:[%s7912_s1 + $0x58] sm:$0xff]  ;;  %v68_v55 = vsub.f32 %v5937_v30, %v25_v38 }
  0x7d   :  { %8333 = vst [vmem:[#allocation2_spill] sm:$0xff] %v5953_v37  ;;  %v5970_v37 = vsub.f32 %v5937_v30, %v27_v26  ;;  %v61_v45 = vsel %vm59_vm1, %v58_v10, %v47_v33  ;;  %v80_v20 = vmul.f32 %v66_v6, %v66_v6  ;;  %v5984_v26 = vld [vmem:[%s7911_s3 + $0x118] sm:$0xff]  ;;  %v5997_v6 = vld [vmem:[%s7911_s3 + $0x1a8] sm:$0xff] }
  0x7e   :  { %v5987_v33 = vsel %vm62_vm2, %v85_v36, 0  ;;  %v78_v10 = vsub.f32 %v61_v45, %v35_v35  ;;  %v6000_v56 = vsel %vm62_vm2, %v61_v45, %v53_v25  ;;  %v8337_v36 = vand.u32 4294901760, %v5930_v47  ;;  %v6031_v35 = vld [vmem:[%s7911_s3 + $0x128] sm:$0xff] }
  0x7f   :  { %8334 = vst [vmem:[#allocation3_spill] sm:$0xff] %v5970_v37  ;;  %8335 = vst [vmem:[#allocation50_spill] sm:$0xff] %v5987_v33  ;;  %v79_v37 = vmul.f32 %v65_v21, %v65_v21  ;;  %v30_v21 = vld [vmem:[%s7912_s1 + $0x40] sm:$0xff]  ;;  %v6017_v45 = vsub.f32 %v6000_v56, %v33_v53  ;;  %v6020_v32 = vsub.f32 %v6000_v56, %v34_v42  ;;  %v6033_v38 = vand.u32 4294901760, %v80_v20 }
  0x80   :  { %v6006_v33 = vpack.c.bf16 %v8337_v36, %v8336_v51  ;;  %v92_v25 = vmul.f32 %v78_v10, %v78_v10  ;;  %v6026_v36 = vld [vmem:[%s7911_s3 + $0x120] sm:$0xff]  ;;  %v8342_v53 = vand.u32 4294901760, %v5945_v40  ;;  %v8343_v10 = vand.u32 4294901760, %v5950_v1 }
  0x81   :  { %8339 = vst [vmem:[#allocation52_spill] sm:$0xff] %v6017_v45  ;;  %8340 = vst [vmem:[#allocation53_spill] sm:$0xff] %v6020_v32  ;;  %v6046_v29 = vand.u32 4294901760, %v79_v37  ;;  %v73_v3 = vsub.f32 %v6000_v56, %v30_v21  ;;  %v72_v2 = vsub.f32 %v6000_v56, %v29_v17  ;;  %1007 = vmatprep.mubr.f32.mxu0 %v6033_v38  ;;  %v8348_v45 = vand.u32 4294901760, %v5964_v41  ;;  %v6102_v21 = vld [vmem:[%s7911_s3 + $0x138] sm:$0xff] }
  0x82   :  { %8338 = vst [vmem:[#allocation51_spill] sm:$0xff] %v6006_v33  ;;  %8341 = vst [vmem:[#allocation54_spill] sm:$0xff] %v6033_v38  ;;  %v6039_v42 = vpack.c.bf16 %v8343_v10, %v8342_v53  ;;  %v6044_v32 = vsel %vm62_vm2, %v92_v25, 0  ;;  %v6058_v53 = vld [vmem:[%s7911_s3 + $0x1b8] sm:$0xff]  ;;  %v6062_v25 = vsub.f32 %v80_v20, %v6033_v38  ;;  %v82_v10 = vmul.f32 %v68_v55, %v68_v55 }
  0x83   :  { %8345 = vst [vmem:[#allocation56_spill] sm:$0xff] %v6044_v32  ;;  %8346 = vst [vmem:[#allocation57_spill] sm:$0xff] %v6046_v29  ;;  %1009 = vmatmul.mubr.f32.vlgmr.msra.gmra.mrb[0].mxu0 %v6046_v29  ;;  %v8349_v51 = vand.u32 4294901760, %v5984_v26  ;;  %v87_v9 = vmul.f32 %v73_v3, %v73_v3  ;;  %v86_v58 = vmul.f32 %v72_v2, %v72_v2 }
  0x84   :  { %8344 = vst [vmem:[#allocation55_spill] sm:$0xff] %v6039_v42  ;;  %8347 = vst [vmem:[#allocation58_spill] sm:$0xff] %v6062_v25  ;;  %v6074_v8 = vsub.f32 %v79_v37, %v6046_v29  ;;  %4804 = vmatpush3.bf16.msra.mxu0 %v6006_v33  ;;  %v6078_v20 = vand.u32 4294901760, %v82_v10  ;;  %v8355_v37 = vand.u32 4294901760, %v5992_v63  ;;  %v8358_v33 = vand.u32 4294901760, %v6062_v25 }
  0x85   :  { %v6071_v32 = vpack.c.bf16 %v8349_v51, %v8348_v45  ;;  %v6085_v45 = vld [vmem:[%s7911_s3 + $0x130] sm:$0xff]  ;;  %4806 = vmatprep.subr.bf16.mxu0 %v6039_v42  ;;  %v6088_v3 = vand.u32 4294901760, %v87_v9  ;;  %v6090_v2 = vand.u32 4294901760, %v86_v58  ;;  %v8356_v51 = vand.u32 4294901760, %v5997_v6 }
  0x86   :  { %8351 = vst [vmem:[#allocation60_spill] sm:$0xff] %v6074_v8  ;;  %8352 = vst [vmem:[#allocation61_spill] sm:$0xff] %v6078_v20  ;;  %v24_v42 = vld [vmem:[%s7912_s1 + $0x10] sm:$0xff]  ;;  %v313_v54 = vsub.f32 %v6062_v25, %v8358_v33  ;;  %v6111_v43 = vsub.f32 %v82_v10, %v6078_v20  ;;  %v8363_v12 = vand.u32 4294901760, %v6074_v8 }
  0x87   :  { %8350 = vst [vmem:[#allocation59_spill] sm:$0xff] %v6071_v32  ;;  %8353 = vst [vmem:[#allocation62_spill] sm:$0xff] %v6088_v3  ;;  %v6096_v55 = vpack.c.bf16 %v8356_v51, %v8355_v37  ;;  %v8360_v37 = vand.u32 4294901760, %v6026_v36  ;;  %v8361_v51 = vand.u32 4294901760, %v6031_v35  ;;  %1014 = vmatprep.mubr.f32.mxu0 %v6088_v3  ;;  %v6127_v33 = vsub.f32 %v87_v9, %v6088_v3  ;;  %v6170_v9 = vld [vmem:[%s7911_s3 + $0x1d0] sm:$0xff] }
  0x88   :  { %8354 = vst [vmem:[#allocation63_spill] sm:$0xff] %v6090_v2  ;;  %8359 = vst [vmem:[#allocation65_spill] sm:$0xff] %v6111_v43  ;;  %v319_v19 = vsub.f32 %v6074_v8, %v8363_v12  ;;  %v6130_v10 = vsub.f32 %v86_v58, %v6090_v2  ;;  %4808 = vmatpush3.bf16.msra.mxu0 %v6071_v32  ;;  %v314_v12 = vand.u32 4294901760, %v313_v54  ;;  %v8365_v58 = vand.u32 4294901760, %v6053_v4  ;;  %v6160_v32 = vld [vmem:[%s7911_s3 + $0x148] sm:$0xff] }
  0x89   :  { %8357 = vst [vmem:[#allocation64_spill] sm:$0xff] %v6096_v55  ;;  %v6117_v17 = vpack.c.bf16 %v8361_v51, %v8360_v37  ;;  %v6136_v37 = vld [vmem:[%s7911_s3 + $0x1c0] sm:$0xff]  ;;  %v6141_v51 = vld [vmem:[%s7911_s3 + $0x1c8] sm:$0xff]  ;;  %v8366_v8 = vand.u32 4294901760, %v6058_v53  ;;  %v67_v54 = vsub.f32 %v5937_v30, %v24_v42  ;;  %1016 = vmatmul.mubr.f32.gmra.mrb[2].mxu0 %v6090_v2  ;;  %4810 = vmatprep.subr.bf16.mxu0 %v6096_v55  ;;  %v8368_v42 = vand.u32 4294901760, %v6111_v43 }
  0x8a   :  { %8364 = vst [vmem:[#allocation67_spill] sm:$0xff] %v6130_v10  ;;  %v31_v30 = vld [vmem:[%s7912_s1 + $0x48] sm:$0xff]  ;;  %315 = vmatprep.mubr.f32.mxu1 %v314_v12  ;;  %v8369_v60 = vand.u32 4294901760, %v6127_v33  ;;  %v8370_v49 = vand.u32 4294901760, %v6130_v10 }
  0x8b   :  { %8362 = vst [vmem:[#allocation66_spill] sm:$0xff] %v6117_v17  ;;  %v6149_v20 = vpack.c.bf16 %v8366_v8, %v8365_v58  ;;  %v320_v8 = vand.u32 4294901760, %v319_v19  ;;  %v75_v19 = vsub.f32 %v6000_v56, %v32_v44  ;;  %v1231_v61 = vsub.f32 %v6111_v43, %v8368_v42 }
  0x8c   :  { %v328_v48 = vsub.f32 %v6127_v33, %v8369_v60  ;;  %v334_v25 = vsub.f32 %v6130_v10, %v8370_v49  ;;  %4812 = vmatpush3.bf16.msra.mxu0 %v6117_v17  ;;  %v8371_v42 = vand.u32 4294901760, %v6085_v45  ;;  %v6207_v49 = vld [vmem:[%s7911_s3 + $0x150] sm:$0xff]  ;;  %v8378_v58 = vand.u32 4294901760, %v6160_v32 }
  0x8d   :  { %8367 = vst [vmem:[#allocation68_spill] sm:$0xff] %v6149_v20  ;;  %321 = vmatmul.mubr.f32.vlgmr.msra.gmra.mrb[0].mxu1 %v320_v8  ;;  %v1232_v2 = vand.u32 4294901760, %v1231_v61  ;;  %v8372_v8 = vand.u32 4294901760, %v6102_v21  ;;  %v81_v61 = vmul.f32 %v67_v54, %v67_v54  ;;  %4814 = vmatprep.subr.bf16.mxu0 %v6149_v20  ;;  %v89_v54 = vmul.f32 %v75_v19, %v75_v19 }
  0x8e   :  { %4644 = vmatpush3.bf16.msra.mxu1 %v5801_v13  ;;  %v74_v13 = vsub.f32 %v6000_v56, %v31_v30  ;;  %v329_v12 = vand.u32 4294901760, %v328_v48  ;;  %v335_v44 = vand.u32 4294901760, %v334_v25  ;;  %v6225_v56 = vld [vmem:[%s7911_s3 + $0x1e8] sm:$0xff]  ;;  %v8374_v48 = vand.u32 4294901760, %v6136_v37 }
  0x8f   :  { %v6200_v55 = vpack.c.bf16 %v8372_v8, %v8371_v42  ;;  %4646 = vmatprep.subr.bf16.mxu1 %v5816_v5  ;;  %v6215_v42 = vld [vmem:[%s7911_s3 + $0x158] sm:$0xff]  ;;  %v6220_v8 = vld [vmem:[%s7911_s3 + $0x1e0] sm:$0xff]  ;;  %1233 = vmatprep.mubr.f32.mxu0 %v1232_v2  ;;  %v8375_v5 = vand.u32 4294901760, %v6141_v51  ;;  %v8377_v30 = vand.u32 4294901760, %v6155_v62  ;;  %v8027_v20 = vand.u32 4294901760, %v6207_v49 }
  0x90   :  { %330 = vmatprep.mubr.f32.mxu1 %v329_v12  ;;  %v8026_v2 = vand.u32 4294901760, %v6215_v42  ;;  %v8028_v17 = vand.u32 4294901760, %v6220_v8  ;;  %v8382_v19 = vand.u32 4294901760, %v6175_v59  ;;  %v6257_v12 = vld [vmem:[%s7911_s3 + $0x160] sm:$0xff] }
  0x91   :  { %8373 = vst [vmem:[#allocation69_spill] sm:$0xff] %v6200_v55  ;;  %v6231_v25 = vpack.c.bf16 %v8375_v5, %v8374_v48  ;;  %v6237_v60 = vpack.c.bf16 %v8378_v58, %v8377_v30  ;;  %336 = vmatmul.mubr.f32.gmra.mrb[2].mxu1 %v335_v44  ;;  %4816 = vmatpush3.bf16.msra.mxu0 %v6200_v55  ;;  %v6244_v5 = vand.u32 4294901760, %v81_v61  ;;  %v8381_v58 = vand.u32 4294901760, %v6170_v9  ;;  %v6262_v30 = vld [vmem:[%s7911_s3 + $0x168] sm:$0xff] }
  0x92   :  { %4648 = vmatpush3.bf16.msra.mxu1 %v5811_v57  ;;  %566 = vmatprep.mubr.f32.mxu1 %v6033_v38  ;;  %v88_v48 = vmul.f32 %v74_v13, %v74_v13  ;;  %v6269_v57 = vld [vmem:[%s7911_s3 + $0x1f0] sm:$0xff]  ;;  %v8386_v13 = vand.u32 4294901760, %v6225_v56  ;;  %v8038_v55 = vand.u32 4294901760, %v6257_v12  ;;  %v8037_v38 = vand.u32 4294901760, %v6262_v30 }
  0x93   :  { %8376 = vst [vmem:[#allocation70_spill] sm:$0xff] %v6231_v25  ;;  %8379 = vst [vmem:[#allocation71_spill] sm:$0xff] %v6237_v60  ;;  %v6252_v44 = vpack.c.bf16 %v8382_v19, %v8381_v58  ;;  %4650 = vmatprep.subr.bf16.mxu1 %v5831_v22  ;;  %4818 = vmatprep.subr.bf16.mxu0 %v6231_v25  ;;  %v6274_v58 = vld [vmem:[%s7911_s3 + $0x1f8] sm:$0xff]  ;;  %v6276_v19 = vand.u32 4294901760, %v89_v54  ;;  %v6283_v22 = vpack.c.bf16 %v8026_v2, %v8027_v20 }
  0x94   :  { %8380 = vst [vmem:[#allocation72_spill] sm:$0xff] %v6244_v5  ;;  %v6289_v25 = vpack.c.bf16 %v8386_v13, %v8028_v17  ;;  %v6294_v10 = vsub.f32 %v81_v61, %v6244_v5  ;;  %v6303_v13 = vld [vmem:[%s7911_s3 + $0x170] sm:$0xff]  ;;  %v6308_v17 = vld [vmem:[%s7911_s3 + $0x178] sm:$0xff]  ;;  %v6310_v61 = vand.u32 4294901760, %v88_v48  ;;  %v6321_v20 = vpack.c.bf16 %v8037_v38, %v8038_v55 }
  0x95   :  { %8383 = vst [vmem:[#allocation73_spill] sm:$0xff] %v6252_v44  ;;  %8384 = vst [vmem:[#allocation74_spill] sm:$0xff] %v6276_v19  ;;  %4820 = vmatpush3.bf16.msra.mxu0 %v6237_v60  ;;  %v8396_v55 = vand.u32 4294901760, %v5917_v18 }
  0x96   :  { %8385 = vst [vmem:[#allocation75_spill] sm:$0xff] %v6283_v22  ;;  %8387 = vst [vmem:[#allocation76_spill] sm:$0xff] %v6289_v25  ;;  %4652 = vmatpush3.bf16.msra.mxu1 %v5823_v15  ;;  %4822 = vmatprep.subr.bf16.mxu0 %v6252_v44  ;;  %v6314_v15 = vsub.f32 %v89_v54, %v6276_v19  ;;  %v8393_v54 = vand.u32 4294901760, %v6274_v58  ;;  %v6335_v19 = vsub.f32 %v88_v48, %v6310_v61 }
  0x97   :  { %8388 = vst [vmem:[#allocation77_spill] sm:$0xff] %v6294_v10  ;;  %8389 = vst [vmem:[#allocation78_spill] sm:$0xff] %v6310_v61  ;;  %4654 = vmatprep.subr.bf16.mxu1 %v5843_v39  ;;  %v8392_v39 = vand.u32 4294901760, %v6269_v57  ;;  %v8397_v44 = vand.u32 4294901760, %v5930_v47  ;;  %v8400_v48 = vand.u32 4294901760, %v6308_v17 }
  0x98   :  { %8390 = vst [vmem:[#allocation79_spill] sm:$0xff] %v6314_v15  ;;  %8391 = vst [vmem:[#allocation80_spill] sm:$0xff] %v6321_v20 }
  0x99   :  { %4824 = vmatpush3.bf16.msra.mxu0 %v6283_v22  ;;  %v6331_v60 = vpack.c.bf16 %v8393_v54, %v8392_v39  ;;  %v8039_v22 = vand.u32 4294901760, %v6294_v10  ;;  %8395 = vst [vmem:[#allocation82_spill] sm:$0xff] %v6335_v19  ;;  %v6347_v2 = vsub.f32 %v5930_v47, %v8397_v44  ;;  %v8398_v39 = vand.u32 4294901760, %v5945_v40  ;;  %v8403_v47 = vld [vmem:[#allocation45_spill] sm:$0xff] }
  0x9a   :  { %4656 = vmatpush3.bf16.msra.mxu1 %v5835_v50  ;;  %4826 = vmatprep.subr.bf16.mxu0 %v6289_v25  ;;  %v6342_v50 = vsub.f32 %v5917_v18, %v8396_v55  ;;  %v8402_v18 = vand.u32 4294901760, %v5950_v1  ;;  %v4865_v44 = vpack.c.bf16 %v5781_v0, %v8403_v47 }
  0x9b   :  { %8394 = vst [vmem:[#allocation81_spill] sm:$0xff] %v6331_v60  ;;  %4658 = vmatprep.subr.bf16.mxu1 %v5855_v11  ;;  %v6352_v54 = vsub.f32 %v5945_v40, %v8398_v39  ;;  %v8399_v11 = vand.u32 4294901760, %v6303_v13  ;;  %v1237_v40 = vsub.f32 %v6294_v10, %v8039_v22 }
  0x9c   :  { %v6364_v55 = vsub.f32 %v5950_v1, %v8402_v18  ;;  %v8406_v18 = vand.u32 4294901760, %v5984_v26 }
  0x9d   :  { %4828 = vmatpush3.bf16.msra.mxu0 %v6321_v20  ;;  %v6359_v38 = vpack.c.bf16 %v8400_v48, %v8399_v11  ;;  %v8404_v11 = vand.u32 4294901760, %v6314_v15  ;;  %v8405_v48 = vand.u32 4294901760, %v5964_v41 }
  0x9e   :  { %4660 = vmatpush3.bf16.msra.mxu1 %v5847_v52  ;;  %4830 = vmatprep.subr.bf16.mxu0 %v6331_v60  ;;  %v6386_v22 = vsub.f32 %v5984_v26, %v8406_v18  ;;  %v8407_v60 = vand.u32 4294901760, %v5992_v63  ;;  %v8411_v26 = vand.u32 4294901760, %v6335_v19 }
  0x9f   :  { %8401 = vst [vmem:[#allocation83_spill] sm:$0xff] %v6359_v38  ;;  %4662 = vmatprep.subr.bf16.mxu1 %v5868_v31  ;;  %v1246_v1 = vsub.f32 %v6314_v15, %v8404_v11  ;;  %v6381_v52 = vsub.f32 %v5964_v41, %v8405_v48  ;;  %v4867_v31 = vpack.c.bf16 %v6347_v2, %v6342_v50  ;;  %v8409_v11 = vand.u32 4294901760, %v5997_v6 }
  0xa0   :  { %v6391_v39 = vsub.f32 %v5992_v63, %v8407_v60  ;;  %v1238_v48 = vand.u32 4294901760, %v1237_v40  ;;  %v1252_v18 = vsub.f32 %v6335_v19, %v8411_v26  ;;  %v4869_v63 = vpack.c.bf16 %v6364_v55, %v6352_v54 }
  0xa1   :  { %4832 = vmatpush3.bf16.msra.mxu0 %v6359_v38  ;;  %v6399_v41 = vsub.f32 %v5997_v6, %v8409_v11  ;;  %v1247_v60 = vand.u32 4294901760, %v1246_v1  ;;  %v8412_v38 = vand.u32 4294901760, %v6026_v36  ;;  %v8422_v26 = vand.u32 4294901760, %v6085_v45 }
  0xa2   :  { %8408 = vst [vmem:[#allocation45_spill] sm:$0xff] %v6391_v39  ;;  %4664 = vmatpush3.bf16.msra.mxu1 %v5859_v16  ;;  %4866 = vmatprep.subr.bf16.mxu0 %v4865_v44  ;;  %v8414_v16 = vand.u32 4294901760, %v6031_v35  ;;  %v4871_v44 = vpack.c.bf16 %v6386_v22, %v6381_v52 }
  0xa3   :  { %8410 = vst [vmem:[#allocation84_spill] sm:$0xff] %v6399_v41  ;;  %4666 = vmatprep.subr.bf16.mxu1 %v5880_v34  ;;  %v6411_v6 = vsub.f32 %v6026_v36, %v8412_v38  ;;  %v1253_v34 = vand.u32 4294901760, %v1252_v18  ;;  %v4873_v1 = vpack.c.bf16 %v6399_v41, %v6391_v39  ;;  %v8416_v36 = vand.u32 4294901760, %v6053_v4 }
  0xa4   :  { %1239 = vmatmul.mubr.f32.vlgmr.msra.gmra.mrb[4].mxu0 %v1238_v48  ;;  %v6416_v40 = vsub.f32 %v6031_v35, %v8414_v16  ;;  %v8418_v35 = vand.u32 4294901760, %v6058_v53  ;;  %v8421_v48 = vld [vmem:[#allocation5_spill] sm:$0xff]  ;;  %v6439_v18 = vsub.f32 %v6085_v45, %v8422_v26  ;;  %v8428_v45 = vand.u32 4294901760, %v6136_v37 }
  0xa5   :  { %8413 = vst [vmem:[#allocation85_spill] sm:$0xff] %v6411_v6  ;;  %1248 = vmatprep.mubr.f32.mxu0 %v1247_v60  ;;  %4868 = vmatpush3.bf16.msra.mxu0 %v4867_v31  ;;  %v6426_v38 = vsub.f32 %v6053_v4, %v8416_v36  ;;  %v8420_v31 = vld [vmem:[#allocation4_spill] sm:$0xff]  ;;  %v8427_v60 = vld [vmem:[#allocation7_spill] sm:$0xff]  ;;  %v4677_v36 = vpack.c.bf16 %v5439_v24, %v5437_v23  ;;  %v8436_v23 = vand.u32 4294901760, %v6170_v9  ;;  %v8440_v26 = vand.u32 4294901760, %v6207_v49 }
  0xa6   :  { %8415 = vst [vmem:[#allocation86_spill] sm:$0xff] %v6416_v40  ;;  %4668 = vmatpush3.bf16.msra.mxu1 %v5870_v14  ;;  %4870 = vmatprep.subr.bf16.mxu0 %v4869_v63  ;;  %v6431_v11 = vsub.f32 %v6058_v53, %v8418_v35  ;;  %v4673_v14 = vpack.c.bf16 %v8421_v48, %v8420_v31  ;;  %8423 = vst [vmem:[#allocation4_spill] sm:$0xff] %v6439_v18  ;;  %v8424_v63 = vand.u32 4294901760, %v6102_v21  ;;  %v8426_v53 = vld [vmem:[#allocation6_spill] sm:$0xff] }
  0xa7   :  { %8417 = vst [vmem:[#allocation87_spill] sm:$0xff] %v6426_v38  ;;  %4670 = vmatprep.subr.bf16.mxu1 %v5882_v46  ;;  %v4875_v46 = vpack.c.bf16 %v6416_v40, %v6411_v6  ;;  %v4675_v16 = vpack.c.bf16 %v8427_v60, %v8426_v53  ;;  %v6482_v24 = vsub.f32 %v6170_v9, %v8436_v23  ;;  %v8438_v48 = vand.u32 4294901760, %v6175_v59 }
  0xa8   :  { %8419 = vst [vmem:[#allocation88_spill] sm:$0xff] %v6431_v11  ;;  %1254 = vmatmul.mubr.f32.gmra.mrb[6].mxu0 %v1253_v34  ;;  %v6444_v4 = vsub.f32 %v6102_v21, %v8424_v63  ;;  %v6455_v34 = vsub.f32 %v6136_v37, %v8428_v45  ;;  %v8430_v21 = vand.u32 4294901760, %v6141_v51  ;;  %v8434_v37 = vand.u32 4294901760, %v6160_v32  ;;  %v8450_v45 = vld [vmem:[#allocation11_spill] sm:$0xff] }
  0xa9   :  { %4872 = vmatpush3.bf16.msra.mxu0 %v4871_v44  ;;  %1628 = vmatprep.mubr.f32.mxu0 %v6111_v43  ;;  %8437 = vst [vmem:[#allocation91_spill] sm:$0xff] %v6482_v24  ;;  %v6497_v9 = vsub.f32 %v6207_v49, %v8440_v26  ;;  %v8442_v63 = vand.u32 4294901760, %v6215_v42  ;;  %v8447_v60 = vand.u32 4294901760, %v6225_v56 }
  0xaa   :  { %8425 = vst [vmem:[#allocation5_spill] sm:$0xff] %v6444_v4  ;;  %4672 = vmatpush3.bf16.msra.mxu1 %v5878_v7  ;;  %4874 = vmatprep.subr.bf16.mxu0 %v4873_v1  ;;  %8429 = vst [vmem:[#allocation6_spill] sm:$0xff] %v6455_v34  ;;  %v6460_v44 = vsub.f32 %v6141_v51, %v8430_v21  ;;  %v4877_v7 = vpack.c.bf16 %v6431_v11, %v6426_v38  ;;  %v8432_v1 = vand.u32 4294901760, %v6155_v62  ;;  %v8451_v21 = vld [vmem:[#allocation10_spill] sm:$0xff] }
  0xab   :  { %4674 = vmatprep.subr.bf16.mxu1 %v4673_v14  ;;  %v6474_v31 = vsub.f32 %v6160_v32, %v8434_v37  ;;  %v4879_v51 = vpack.c.bf16 %v6444_v4, %v6439_v18  ;;  %v4679_v32 = vpack.c.bf16 %v5445_v28, %v5443_v27  ;;  %8441 = vst [vmem:[#allocation93_spill] sm:$0xff] %v6497_v9  ;;  %v8445_v28 = vand.u32 4294901760, %v6220_v8 }
  0xac   :  { %8431 = vst [vmem:[#allocation7_spill] sm:$0xff] %v6460_v44  ;;  %v6469_v35 = vsub.f32 %v6155_v62, %v8432_v1  ;;  %v6487_v62 = vsub.f32 %v6175_v59, %v8438_v48  ;;  %v4881_v14 = vpack.c.bf16 %v6460_v44, %v6455_v34  ;;  %v6502_v59 = vsub.f32 %v6215_v42, %v8442_v63  ;;  %v8464_v63 = vld [vmem:[#allocation16_spill] sm:$0xff] }
  0xad   :  { %8435 = vst [vmem:[#allocation90_spill] sm:$0xff] %v6474_v31  ;;  %568 = vmatmul.mubr.f32.vlgmr.msra.gmra.mrb[4].mxu1 %v6046_v29  ;;  %4876 = vmatpush3.bf16.msra.mxu0 %v4875_v46  ;;  %v8444_v46 = vld [vmem:[#allocation63_spill] sm:$0xff]  ;;  %v6510_v53 = vsub.f32 %v6220_v8, %v8445_v28  ;;  %v6515_v49 = vsub.f32 %v6225_v56, %v8447_v60  ;;  %v8455_v1 = vand.u32 4294901760, %v6262_v30  ;;  %v8459_v48 = vand.u32 4294901760, %v6274_v58  ;;  %v6792_v29 = vld [vmem:[%s7911_s3 + $0x2b8] sm:$0xff] }
  0xae   :  { %8433 = vst [vmem:[#allocation89_spill] sm:$0xff] %v6469_v35  ;;  %8439 = vst [vmem:[#allocation92_spill] sm:$0xff] %v6487_v62  ;;  %573 = vmatprep.mubr.f32.mxu1 %v6088_v3  ;;  %4676 = vmatpush3.bf16.msra.mxu1 %v4675_v16  ;;  %v4883_v27 = vpack.c.bf16 %v6474_v31, %v6469_v35  ;;  %v8449_v16 = vld [vmem:[#allocation58_spill] sm:$0xff]  ;;  %v4885_v42 = vpack.c.bf16 %v6487_v62, %v6482_v24 }
  0xaf   :  { %4678 = vmatprep.subr.bf16.mxu1 %v4677_v36  ;;  %4878 = vmatprep.subr.bf16.mxu0 %v4877_v7  ;;  %8443 = vst [vmem:[#allocation94_spill] sm:$0xff] %v6502_v59  ;;  %8446 = vst [vmem:[#allocation95_spill] sm:$0xff] %v6510_v53  ;;  %v8452_v36 = vpack.c.bf16 %v8450_v45, %v8451_v21  ;;  %v8453_v7 = vand.u32 4294901760, %v6257_v12  ;;  %v6531_v56 = vsub.f32 %v6262_v30, %v8455_v1  ;;  %v8471_v21 = vld [vmem:[#allocation20_spill] sm:$0xff] }
  0xb0   :  { %8448 = vst [vmem:[#allocation96_spill] sm:$0xff] %v6515_v49  ;;  %v4887_v37 = vpack.c.bf16 %v6502_v59, %v6497_v9  ;;  %v4889_v30 = vpack.c.bf16 %v6515_v49, %v6510_v53 }
  0xb1   :  { %575 = vmatmul.mubr.f32.gmra.mrb[6].mxu1 %v8444_v46  ;;  %4880 = vmatpush3.bf16.msra.mxu0 %v4879_v51  ;;  %v6526_v8 = vsub.f32 %v6257_v12, %v8453_v7  ;;  %8456 = vst [vmem:[#allocation11_spill] sm:$0xff] %v6531_v56  ;;  %v8457_v51 = vand.u32 4294901760, %v6269_v57  ;;  %v8461_v12 = vld [vmem:[#allocation14_spill] sm:$0xff]  ;;  %v6777_v46 = vld [vmem:[%s7911_s3 + $0x2b0] sm:$0xff] }
  0xb2   :  { %4680 = vmatpush3.bf16.msra.mxu1 %v4679_v32  ;;  %710 = vmatprep.mubr.f32.mxu1 %v8449_v16  ;;  %v6543_v32 = vsub.f32 %v6274_v58, %v8459_v48  ;;  %v8469_v58 = vand.u32 4294901760, %v6308_v17  ;;  %v8474_v48 = vld [vmem:[#allocation23_spill] sm:$0xff] }
  0xb3   :  { %4682 = vmatprep.subr.bf16.mxu1 %v8452_v36  ;;  %4882 = vmatprep.subr.bf16.mxu0 %v4881_v14  ;;  %8454 = vst [vmem:[#allocation58_spill] sm:$0xff] %v6526_v8  ;;  %v6538_v23 = vsub.f32 %v6269_v57, %v8457_v51  ;;  %v8462_v14 = vld [vmem:[#allocation13_spill] sm:$0xff]  ;;  %v8467_v57 = vand.u32 4294901760, %v6303_v13  ;;  %v8472_v36 = vld [vmem:[#allocation18_spill] sm:$0xff]  ;;  %v8058_v51 = vand.u32 4294901760, %v5781_v0 }
  0xb4   :  { %8460 = vst [vmem:[#allocation97_spill] sm:$0xff] %v6543_v32  ;;  %v8463_v26 = vpack.c.bf16 %v8461_v12, %v8462_v14  ;;  %v6561_v45 = vsub.f32 %v6308_v17, %v8469_v58  ;;  %v8473_v7 = vpack.c.bf16 %v8471_v21, %v8472_v36  ;;  %v8475_v12 = vld [vmem:[#allocation22_spill] sm:$0xff]  ;;  %v8057_v14 = vand.u32 4294901760, %v6342_v50  ;;  %v8481_v21 = vld [vmem:[#allocation28_spill] sm:$0xff] }
  0xb5   :  { %4884 = vmatpush3.bf16.msra.mxu0 %v4883_v27  ;;  %8458 = vst [vmem:[#allocation10_spill] sm:$0xff] %v6538_v23  ;;  %v8465_v27 = vld [vmem:[#allocation15_spill] sm:$0xff]  ;;  %v6556_v60 = vsub.f32 %v6303_v13, %v8467_v57  ;;  %v4893_v1 = vpack.c.bf16 %v6543_v32, %v6538_v23  ;;  %v8059_v13 = vand.u32 4294901760, %v8403_v47  ;;  %v8476_v17 = vpack.c.bf16 %v8474_v48, %v8475_v12  ;;  %v8483_v12 = vld [vmem:[#allocation32_spill] sm:$0xff] }
  0xb6   :  { %4684 = vmatpush3.bf16.msra.mxu1 %v8463_v26  ;;  %4886 = vmatprep.subr.bf16.mxu0 %v4885_v42  ;;  %v8466_v28 = vpack.c.bf16 %v8464_v63, %v8465_v27  ;;  %8470 = vst [vmem:[#allocation13_spill] sm:$0xff] %v6561_v45  ;;  %v4891_v42 = vpack.c.bf16 %v6531_v56, %v6526_v8  ;;  %v8048_v26 = vand.u32 4294901760, %v6347_v2  ;;  %v8478_v63 = vld [vmem:[#allocation25_spill] sm:$0xff]  ;;  %v8045_v57 = vand.u32 4294901760, %v6352_v54 }
  0xb7   :  { %8468 = vst [vmem:[#allocation14_spill] sm:$0xff] %v6556_v60  ;;  %v8044_v58 = vand.u32 4294901760, %v6364_v55  ;;  %v8046_v48 = vand.u32 4294901760, %v6386_v22  ;;  %v8513_v20 = vand.u32 4294901760, %v6543_v32 }
  0xb8   :  { %4686 = vmatprep.subr.bf16.mxu1 %v8466_v28  ;;  %v4929_v28 = vpack.c.bf16 %v8058_v51, %v8059_v13  ;;  %v8068_v51 = vand.u32 4294901760, %v6502_v59  ;;  %v8504_v13 = vld [vmem:[#allocation17_spill] sm:$0xff]  ;;  %v8516_v59 = vld [vmem:[#allocation34_spill] sm:$0xff] }
  0xb9   :  { %4888 = vmatpush3.bf16.msra.mxu0 %v4887_v37  ;;  %v4895_v37 = vpack.c.bf16 %v6561_v45, %v6556_v60 }
  0xba   :  { %4688 = vmatpush3.bf16.msra.mxu1 %v8473_v7  ;;  %4890 = vmatprep.subr.bf16.mxu0 %v4889_v30  ;;  %v8477_v30 = vld [vmem:[#allocation26_spill] sm:$0xff]  ;;  %v4931_v7 = vpack.c.bf16 %v8048_v26, %v8057_v14  ;;  %v8495_v26 = vld [vmem:[#allocation61_spill] sm:$0xff]  ;;  %v8069_v14 = vand.u32 4294901760, %v6497_v9 }
  0xbb   :  { %4690 = vmatprep.subr.bf16.mxu1 %v8476_v17  ;;  %v8479_v27 = vpack.c.bf16 %v8477_v30, %v8478_v63  ;;  %v8484_v17 = vld [vmem:[#allocation30_spill] sm:$0xff]  ;;  %v4933_v63 = vpack.c.bf16 %v8044_v58, %v8045_v57  ;;  %v8490_v58 = vld [vmem:[#allocation37_spill] sm:$0xff] }
  0xbc   :  { %v8485_v30 = vpack.c.bf16 %v8483_v12, %v8484_v17  ;;  %v8051_v12 = vand.u32 4294901760, %v6411_v6  ;;  %v8050_v17 = vand.u32 4294901760, %v6416_v40  ;;  %v6844_v40 = vld [vmem:[%s7911_s3 + $0x2d0] sm:$0xff] }
  0xbd   :  { %4892 = vmatpush3.bf16.msra.mxu0 %v4891_v42  ;;  %v8480_v42 = vld [vmem:[#allocation29_spill] sm:$0xff] }
  0xbe   :  { %4692 = vmatpush3.bf16.msra.mxu1 %v8479_v27  ;;  %4894 = vmatprep.subr.bf16.mxu0 %v4893_v1  ;;  %v8482_v36 = vpack.c.bf16 %v8480_v42, %v8481_v21  ;;  %v8047_v1 = vand.u32 4294901760, %v6381_v52  ;;  %v8049_v27 = vand.u32 4294901760, %v6399_v41  ;;  %v8486_v42 = vld [vmem:[#allocation35_spill] sm:$0xff]  ;;  %v8487_v21 = vld [vmem:[#allocation33_spill] sm:$0xff]  ;;  %8529 = vst [vmem:[#allocation29_spill] sm:$0xff] %v6844_v40  ;;  %v8541_v41 = vand.u32 4294901760, %v6777_v46 }
  0xc0   :  { %4694 = vmatprep.subr.bf16.mxu1 %v8482_v36  ;;  %v8488_v36 = vpack.c.bf16 %v8486_v42, %v8487_v21  ;;  %v8493_v21 = vld [vmem:[#allocation39_spill] sm:$0xff] }
  0xc1   :  { %4896 = vmatpush3.bf16.msra.mxu0 %v4895_v37  ;;  %v8054_v37 = vand.u32 4294901760, %v6391_v39 }
  0xc2   :  { %4696 = vmatpush3.bf16.msra.mxu1 %v8485_v30  ;;  %4930 = vmatprep.subr.bf16.mxu0 %v4929_v28  ;;  %v4935_v28 = vpack.c.bf16 %v8046_v48, %v8047_v1  ;;  %v8489_v30 = vld [vmem:[#allocation38_spill] sm:$0xff]  ;;  %v8053_v48 = vand.u32 4294901760, %v6426_v38  ;;  %v8052_v1 = vand.u32 4294901760, %v6431_v11  ;;  %v6797_v11 = vld [vmem:[%s7911_s3 + $0x230] sm:$0xff]  ;;  %v6839_v38 = vld [vmem:[%s7911_s3 + $0x248] sm:$0xff] }
  0xc3   :  { %4698 = vmatprep.subr.bf16.mxu1 %v8488_v36  ;;  %v8491_v57 = vpack.c.bf16 %v8489_v30, %v8490_v58  ;;  %v4937_v42 = vpack.c.bf16 %v8049_v27, %v8054_v37  ;;  %v8056_v58 = vand.u32 4294901760, %v6439_v18  ;;  %v8496_v30 = vld [vmem:[#allocation44_spill] sm:$0xff]  ;;  %v8061_v27 = vand.u32 4294901760, %v6455_v34  ;;  %8528 = vst [vmem:[#allocation25_spill] sm:$0xff] %v6839_v38 }
  0xc4   :  { %1631 = vmatmul.mubr.f32.vlgmr.msra.gmra.mrb[8].mxu0 %v6294_v10  ;;  %v8502_v37 = vld [vmem:[#allocation12_spill] sm:$0xff]  ;;  %v8512_v10 = vand.u32 4294901760, %v6538_v23 }
  0xc5   :  { %1637 = vmatprep.mubr.f32.mxu0 %v6314_v15  ;;  %4932 = vmatpush3.bf16.msra.mxu0 %v4931_v7  ;;  %v8492_v7 = vld [vmem:[#allocation41_spill] sm:$0xff]  ;;  %v8509_v15 = vld [vmem:[#allocation24_spill] sm:$0xff] }
  0xc6   :  { %4700 = vmatpush3.bf16.msra.mxu1 %v8491_v57  ;;  %4934 = vmatprep.subr.bf16.mxu0 %v4933_v63  ;;  %v8494_v36 = vpack.c.bf16 %v8492_v7, %v8493_v21  ;;  %v4939_v57 = vpack.c.bf16 %v8050_v17, %v8051_v12  ;;  %v8055_v63 = vand.u32 4294901760, %v6444_v4  ;;  %v8497_v7 = vld [vmem:[#allocation42_spill] sm:$0xff]  ;;  %v8060_v17 = vand.u32 4294901760, %v6460_v44  ;;  %v8500_v12 = vld [vmem:[#allocation60_spill] sm:$0xff] }
  0xc7   :  { %v8498_v21 = vpack.c.bf16 %v8496_v30, %v8497_v7  ;;  %v8063_v7 = vand.u32 4294901760, %v6474_v31  ;;  %v4957_v25 = vpack.c.bf16 %v8513_v20, %v8512_v10  ;;  %v176_v20 = vld [vmem:[%s7911_s3 + $0x298] sm:$0xff] }
  0xc8   :  { %4702 = vmatprep.subr.bf16.mxu1 %v8494_v36  ;;  %1640 = vmatmul.mubr.f32.gmra.mrb[10].mxu0 %v6335_v19  ;;  %v8499_v36 = vld [vmem:[#allocation8_spill] sm:$0xff]  ;;  %v4943_v30 = vpack.c.bf16 %v8055_v63, %v8056_v58  ;;  %v8503_v63 = vld [vmem:[#allocation67_spill] sm:$0xff] }
  0xc9   :  { %4936 = vmatpush3.bf16.msra.mxu0 %v4935_v28  ;;  %1925 = vmatprep.mubr.f32.mxu0 %v8495_v26  ;;  %v4941_v28 = vpack.c.bf16 %v8052_v1, %v8053_v48  ;;  %v8066_v1 = vand.u32 4294901760, %v6482_v24  ;;  %v8065_v48 = vand.u32 4294901760, %v6487_v62  ;;  %v8506_v19 = vld [vmem:[#allocation19_spill] sm:$0xff]  ;;  %v8520_v24 = vld [vmem:[#allocation40_spill] sm:$0xff] }
  0xca   :  { %4704 = vmatpush3.bf16.msra.mxu1 %v8498_v21  ;;  %4938 = vmatprep.subr.bf16.mxu0 %v4937_v42  ;;  %v8064_v42 = vand.u32 4294901760, %v6469_v35  ;;  %v8501_v21 = vld [vmem:[#allocation9_spill] sm:$0xff]  ;;  %v6767_v35 = vld [vmem:[%s7911_s3 + $0x220] sm:$0xff] }
  0xcb   :  { %4706 = vmatprep.subr.bf16.mxu1 %v8499_v36 }
  0xcc   :  { %v4947_v58 = vpack.c.bf16 %v8063_v7, %v8064_v42  ;;  %v8507_v7 = vld [vmem:[#allocation3_spill] sm:$0xff] }
  0xcd   :  { %713 = vmatmul.mubr.f32.vlgmr.msra.gmra.mrb[8].mxu1 %v8500_v12  ;;  %4940 = vmatpush3.bf16.msra.mxu0 %v4939_v57  ;;  %v4945_v57 = vpack.c.bf16 %v8060_v17, %v8061_v27  ;;  %v4949_v17 = vpack.c.bf16 %v8065_v48, %v8066_v1  ;;  %v8070_v27 = vand.u32 4294901760, %v6515_v49  ;;  %v84_v42 = vmul.f32 %v8507_v7, %v8507_v7  ;;  %v8508_v1 = vld [vmem:[#allocation21_spill] sm:$0xff]  ;;  %v8511_v7 = vld [vmem:[#allocation27_spill] sm:$0xff] }
  0xce   :  { %719 = vmatprep.mubr.f32.mxu1 %v6127_v33  ;;  %4708 = vmatpush3.bf16.msra.mxu1 %v8501_v21  ;;  %v8080_v48 = vand.u32 4294901760, %v6531_v56 }
  0xcf   :  { %4710 = vmatprep.subr.bf16.mxu1 %v8502_v37  ;;  %4942 = vmatprep.subr.bf16.mxu0 %v4941_v28  ;;  %v8505_v28 = vand.u32 4294901760, %v8449_v16  ;;  %v4951_v16 = vpack.c.bf16 %v8068_v51, %v8069_v14  ;;  %v173_v51 = vld [vmem:[%s7911_s3 + $0x280] sm:$0xff]  ;;  %v174_v14 = vld [vmem:[%s7911_s3 + $0x288] sm:$0xff] }
  0xd0   :  { %v2099_v43 = vand.u32 4294901760, %v173_v51  ;;  %v2102_v49 = vand.u32 4294901760, %v174_v14 }
  0xd1   :  { %722 = vmatmul.mubr.f32.gmra.mrb[10].mxu1 %v8503_v63  ;;  %4944 = vmatpush3.bf16.msra.mxu0 %v4943_v30  ;;  %v8071_v30 = vand.u32 4294901760, %v6510_v53  ;;  %v6741_v53 = vld [vmem:[%s7911_s3 + $0x218] sm:$0xff] }
  0xd2   :  { %4712 = vmatpush3.bf16.msra.mxu1 %v8504_v13  ;;  %826 = vmatprep.mubr.f32.mxu1 %v8505_v28  ;;  %v8081_v28 = vand.u32 4294901760, %v6526_v8  ;;  %v159_v8 = vld [vmem:[%s7911_s3 + $0x210] sm:$0xff]  ;;  %v6780_v44 = vsub.f32 %v173_v51, %v2099_v43  ;;  %v6782_v34 = vsub.f32 %v174_v14, %v2102_v49  ;;  %v6816_v14 = vld [vmem:[%s7911_s3 + $0x2c0] sm:$0xff] }
  0xd3   :  { %4714 = vmatprep.subr.bf16.mxu1 %v8506_v19  ;;  %4946 = vmatprep.subr.bf16.mxu0 %v4945_v57  ;;  %v4953_v57 = vpack.c.bf16 %v8070_v27, %v8071_v30  ;;  %v8099_v30 = vand.u32 4294901760, %v6556_v60  ;;  %v6754_v60 = vld [vmem:[%s7911_s3 + $0x2a8] sm:$0xff]  ;;  %v2057_v9 = vand.u32 4294901760, %v159_v8 }
  0xd4   :  { %v4955_v27 = vpack.c.bf16 %v8080_v48, %v8081_v28  ;;  %v158_v48 = vld [vmem:[%s7911_s3 + $0x208] sm:$0xff]  ;;  %v2114_v31 = vand.u32 4294901760, %v6754_v60 }
  0xd5   :  { %4948 = vmatpush3.bf16.msra.mxu0 %v4947_v58  ;;  %v8098_v58 = vand.u32 4294901760, %v6561_v45  ;;  %v8514_v28 = vld [vmem:[#allocation31_spill] sm:$0xff]  ;;  %v2054_v56 = vand.u32 4294901760, %v158_v48  ;;  %v8518_v45 = vld [vmem:[#allocation36_spill] sm:$0xff] }
  0xd6   :  { %4716 = vmatpush3.bf16.msra.mxu1 %v8508_v1  ;;  %4950 = vmatprep.subr.bf16.mxu0 %v4949_v17  ;;  %v6702_v17 = vand.u32 4294901760, %v84_v42  ;;  %v6894_v39 = vsub.f32 %v6754_v60, %v2114_v31 }
  0xd7   :  { %4718 = vmatprep.subr.bf16.mxu1 %v8509_v15  ;;  %v4959_v32 = vpack.c.bf16 %v8098_v58, %v8099_v30  ;;  %v177_v30 = vld [vmem:[%s7911_s3 + $0x2a0] sm:$0xff] }
  0xd8   :  { %8510 = vst [vmem:[#allocation16_spill] sm:$0xff] %v6702_v17  ;;  %v6729_v10 = vsub.f32 %v84_v42, %v6702_v17  ;;  %v2108_v17 = vand.u32 4294901760, %v176_v20  ;;  %v2111_v26 = vand.u32 4294901760, %v177_v30 }
  0xd9   :  { %4952 = vmatpush3.bf16.msra.mxu0 %v4951_v16  ;;  %v157_v16 = vld [vmem:[%s7911_s3 + $0x200] sm:$0xff] }
  0xda   :  { %4720 = vmatpush3.bf16.msra.mxu1 %v8511_v7  ;;  %4954 = vmatprep.subr.bf16.mxu0 %v4953_v57  ;;  %v175_v57 = vld [vmem:[%s7911_s3 + $0x290] sm:$0xff]  ;;  %8515 = vst [vmem:[#allocation15_spill] sm:$0xff] %v6729_v10  ;;  %v2051_v23 = vand.u32 4294901760, %v157_v16  ;;  %v8523_v18 = vand.u32 4294901760, %v6729_v10 }
  0xdb   :  { %4722 = vmatprep.subr.bf16.mxu1 %v8514_v28  ;;  %v2105_v42 = vand.u32 4294901760, %v175_v57 }
  0xdc   :  { %v6757_v62 = vpack.c.bf16 %v2054_v56, %v2051_v23  ;;  %v6784_v4 = vsub.f32 %v157_v16, %v2051_v23  ;;  %v2149_v3 = vsub.f32 %v6729_v10, %v8523_v18  ;;  %v6809_v23 = vsub.f32 %v176_v20, %v2108_v17  ;;  %v6821_v16 = vld [vmem:[%s7911_s3 + $0x2c8] sm:$0xff]  ;;  %v8540_v10 = vld [vmem:[#allocation49_spill] sm:$0xff] }
  0xdd   :  { %4956 = vmatpush3.bf16.msra.mxu0 %v4955_v27  ;;  %v6744_v27 = vpack.c.bf16 %v2102_v49, %v2099_v43  ;;  %v6761_v58 = vpack.c.bf16 %v2108_v17, %v2105_v42  ;;  %v6802_v43 = vld [vmem:[%s7911_s3 + $0x238] sm:$0xff]  ;;  %v6805_v49 = vsub.f32 %v158_v48, %v2054_v56  ;;  %v6807_v18 = vsub.f32 %v175_v57, %v2105_v42  ;;  %v6826_v56 = vld [vmem:[%s7911_s3 + $0x240] sm:$0xff] }
  0xde   :  { %4724 = vmatpush3.bf16.msra.mxu1 %v8516_v59  ;;  %4958 = vmatprep.subr.bf16.mxu0 %v4957_v25  ;;  %v2060_v25 = vand.u32 4294901760, %v6741_v53  ;;  %8519 = vst [vmem:[#allocation18_spill] sm:$0xff] %v6757_v62  ;;  %8525 = vst [vmem:[#allocation26_spill] sm:$0xff] %v6821_v16  ;;  %v8526_v48 = vld [vmem:[#allocation2_spill] sm:$0xff]  ;;  %v6832_v20 = vsub.f32 %v159_v8, %v2057_v9  ;;  %v6853_v8 = vpack.c.bf16 %v2114_v31, %v2111_v26  ;;  %v6870_v42 = vld [vmem:[%s7911_s3 + $0x258] sm:$0xff] }
  0xdf   :  { %8517 = vst [vmem:[#allocation20_spill] sm:$0xff] %v6744_v27  ;;  %4726 = vmatprep.subr.bf16.mxu1 %v8518_v45  ;;  %8521 = vst [vmem:[#allocation23_spill] sm:$0xff] %v6761_v58  ;;  %v83_v17 = vmul.f32 %v8526_v48, %v8526_v48  ;;  %v8527_v57 = vld [vmem:[#allocation74_spill] sm:$0xff]  ;;  %v6849_v48 = vld [vmem:[%s7911_s3 + $0x2d8] sm:$0xff]  ;;  %v2150_v6 = vand.u32 4294901760, %v2149_v3  ;;  %v8544_v31 = vand.u32 4294901760, %v6797_v11 }
  0xe0   :  { %v6811_v51 = vpack.c.bf16 %v2060_v25, %v2057_v9  ;;  %8530 = vst [vmem:[#allocation28_spill] sm:$0xff] %v6849_v48  ;;  %v8531_v9 = vld [vmem:[#allocation46_spill] sm:$0xff]  ;;  %8532 = vst [vmem:[#allocation32_spill] sm:$0xff] %v6853_v8  ;;  %v8545_v60 = vand.u32 4294901760, %v6802_v43 }
  0xe1   :  { %4960 = vmatpush3.bf16.msra.mxu0 %v4959_v32  ;;  %v6772_v32 = vld [vmem:[%s7911_s3 + $0x228] sm:$0xff]  ;;  %8535 = vst [vmem:[#allocation35_spill] sm:$0xff] %v6870_v42 }
  0xe2   :  { %4728 = vmatpush3.bf16.msra.mxu1 %v8520_v24  ;;  %4994 = vmatprep.subr.bf16.mxu0 %v6744_v27  ;;  %v8522_v27 = vld [vmem:[#allocation43_spill] sm:$0xff]  ;;  %8524 = vst [vmem:[#allocation22_spill] sm:$0xff] %v6811_v51  ;;  %v8538_v3 = vand.u32 4294901760, %v6772_v32 }
  0xe3   :  { %4730 = vmatprep.subr.bf16.mxu1 %v8522_v27 }
  0xe4   :  { %1927 = vmatmul.mubr.f32.vlgmr.msra.gmra.mrb[12].mxu0 %v6244_v5  ;;  %v6881_v5 = vsub.f32 %v6741_v53, %v2060_v25  ;;  %v8542_v53 = vand.u32 4294901760, %v6792_v29  ;;  %v6914_v25 = vpack.c.bf16 %v8545_v60, %v8544_v31  ;;  %v8551_v31 = vand.u32 4294901760, %v6839_v38 }
  0xe5   :  { %1932 = vmatprep.mubr.f32.mxu0 %v8527_v57  ;;  %4996 = vmatpush3.bf16.msra.mxu0 %v6757_v62  ;;  %v8533_v57 = vld [vmem:[#allocation48_spill] sm:$0xff]  ;;  %v6877_v62 = vand.u32 4294901760, %v83_v17  ;;  %v8567_v38 = vand.u32 4294901760, %v8503_v63  ;;  %v7010_v63 = vld [vmem:[%s7911_s3 + $0x2f8] sm:$0xff] }
  0xe6   :  { %4732 = vmatpush3.bf16.msra.mxu1 %v8531_v9  ;;  %4998 = vmatprep.subr.bf16.mxu0 %v6761_v58  ;;  %v6865_v58 = vld [vmem:[%s7911_s3 + $0x250] sm:$0xff]  ;;  %8546 = vst [vmem:[#allocation41_spill] sm:$0xff] %v6914_v25 }
  0xe7   :  { %4734 = vmatprep.subr.bf16.mxu1 %v8533_v57  ;;  %8534 = vst [vmem:[#allocation30_spill] sm:$0xff] %v6865_v58  ;;  %8536 = vst [vmem:[#allocation33_spill] sm:$0xff] %v6877_v62  ;;  %v6883_v57 = vsub.f32 %v177_v30, %v2111_v26  ;;  %v6925_v30 = vld [vmem:[%s7911_s3 + $0x2e8] sm:$0xff]  ;;  %v6944_v26 = vsub.f32 %v83_v17, %v6877_v62 }
  0xe8   :  { %1934 = vmatmul.mubr.f32.gmra.mrb[14].mxu0 %v6310_v61  ;;  %v8537_v61 = vand.u32 4294901760, %v6767_v35 }
  0xe9   :  { %5000 = vmatpush3.bf16.msra.mxu0 %v6811_v51  ;;  %2151 = vmatprep.mubr.f32.mxu0 %v2150_v6  ;;  %v6900_v6 = vpack.c.bf16 %v8542_v53, %v8541_v41  ;;  %v8547_v41 = vand.u32 4294901760, %v6816_v14  ;;  %v8553_v51 = vand.u32 4294901760, %v6844_v40  ;;  %8556 = vst [vmem:[#allocation8_spill] sm:$0xff] %v6944_v26 }
  0xea   :  { %v6889_v9 = vpack.c.bf16 %v8538_v3, %v8537_v61  ;;  %4736 = vmatpush3.bf16.msra.mxu1 %v8540_v10  ;;  %5002 = vmatprep.subr.bf16.mxu0 %v6853_v8  ;;  %v6907_v61 = vld [vmem:[%s7911_s3 + $0x2e0] sm:$0xff]  ;;  %v8548_v3 = vand.u32 4294901760, %v6821_v16  ;;  %v8550_v8 = vand.u32 4294901760, %v6826_v56  ;;  %v8559_v16 = vand.u32 4294901760, %v6782_v34 }
  0xeb   :  { %8543 = vst [vmem:[#allocation37_spill] sm:$0xff] %v6900_v6  ;;  %4770 = vmatprep.subr.bf16.mxu1 %v8499_v36  ;;  %v8557_v36 = vand.u32 4294901760, %v8500_v12  ;;  %v8560_v12 = vand.u32 4294901760, %v6127_v33 }
  0xec   :  { %8539 = vst [vmem:[#allocation38_spill] sm:$0xff] %v6889_v9  ;;  %v6920_v53 = vpack.c.bf16 %v8548_v3, %v8547_v41  ;;  %v6933_v60 = vpack.c.bf16 %v8551_v31, %v8550_v8  ;;  %v8554_v41 = vand.u32 4294901760, %v6849_v48  ;;  %v6953_v31 = vld [vmem:[%s7911_s3 + $0x260] sm:$0xff]  ;;  %v2300_v17 = vsub.f32 %v6782_v34, %v8559_v16 }
  0xed   :  { %830 = vmatmul.mubr.f32.vlgmr.msra.gmra.mrb[12].mxu1 %v8557_v36  ;;  %5004 = vmatpush3.bf16.msra.mxu0 %v6889_v9  ;;  %v8561_v36 = vand.u32 4294901760, %v6865_v58  ;;  %v8562_v8 = vand.u32 4294901760, %v6870_v42  ;;  %v8564_v16 = vand.u32 4294901760, %v6784_v4  ;;  %v8168_v9 = vand.u32 4294901760, %v6807_v18 }
  0xee   :  { %8549 = vst [vmem:[#allocation39_spill] sm:$0xff] %v6920_v53  ;;  %8552 = vst [vmem:[#allocation44_spill] sm:$0xff] %v6933_v60  ;;  %v6939_v3 = vpack.c.bf16 %v8554_v41, %v8553_v51  ;;  %v8558_v51 = vand.u32 4294901760, %v6780_v44  ;;  %837 = vmatprep.mubr.f32.mxu1 %v8560_v12  ;;  %4772 = vmatpush3.bf16.msra.mxu1 %v8501_v21  ;;  %v8565_v12 = vand.u32 4294901760, %v6805_v49  ;;  %v2301_v42 = vand.u32 4294901760, %v2300_v17  ;;  %v8570_v17 = vld [vmem:[#allocation54_spill] sm:$0xff] }
  0xef   :  { %v6968_v10 = vpack.c.bf16 %v8562_v8, %v8561_v36  ;;  %v2181_v33 = vsub.f32 %v6784_v4, %v8564_v16  ;;  %4774 = vmatprep.subr.bf16.mxu1 %v8502_v37  ;;  %5006 = vmatprep.subr.bf16.mxu0 %v6900_v6  ;;  %v8566_v8 = vld [vmem:[#allocation53_spill] sm:$0xff]  ;;  %v8169_v48 = vand.u32 4294901760, %v6809_v23  ;;  %v8573_v37 = vand.u32 4294901760, %v6907_v61 }
  0xf0   :  { %8555 = vst [vmem:[#allocation42_spill] sm:$0xff] %v6939_v3  ;;  %v2293_v41 = vsub.f32 %v6780_v44, %v8558_v51  ;;  %v6974_v51 = vld [vmem:[%s7911_s3 + $0x268] sm:$0xff]  ;;  %v2188_v21 = vsub.f32 %v6805_v49, %v8565_v12  ;;  %v91_v36 = vmul.f32 %v8566_v8, %v8566_v8  ;;  %v8568_v12 = vld [vmem:[#allocation52_spill] sm:$0xff] }
  0xf1   :  { %8563 = vst [vmem:[#allocation60_spill] sm:$0xff] %v6968_v10  ;;  %v2182_v16 = vand.u32 4294901760, %v2181_v33  ;;  %841 = vmatmul.mubr.f32.gmra.mrb[14].mxu1 %v8567_v38  ;;  %5008 = vmatpush3.bf16.msra.mxu0 %v6914_v25  ;;  %v90_v8 = vmul.f32 %v8568_v12, %v8568_v12  ;;  %v7005_v38 = vld [vmem:[%s7911_s3 + $0x2f0] sm:$0xff]  ;;  %v8172_v12 = vand.u32 4294901760, %v6883_v57  ;;  %v8581_v25 = vand.u32 4294901760, %v6953_v31 }
  0xf2   :  { %v2294_v62 = vand.u32 4294901760, %v2293_v41  ;;  %v2189_v40 = vand.u32 4294901760, %v2188_v21  ;;  %v2307_v41 = vsub.f32 %v6807_v18, %v8168_v9  ;;  %4776 = vmatpush3.bf16.msra.mxu1 %v8504_v13  ;;  %1118 = vmatprep.mubr.f32.mxu1 %v8570_v17  ;;  %v2314_v13 = vsub.f32 %v6809_v23, %v8169_v48 }
  0xf3   :  { %4778 = vmatprep.subr.bf16.mxu1 %v8506_v19  ;;  %5010 = vmatprep.subr.bf16.mxu0 %v6920_v53  ;;  %v7021_v21 = vand.u32 4294901760, %v91_v36 }
  0xf4   :  { %v6995_v6 = vpack.c.bf16 %v2301_v42, %v2294_v62  ;;  %v8171_v62 = vand.u32 4294901760, %v6832_v20  ;;  %v8170_v42 = vand.u32 4294901760, %v6881_v5  ;;  %v7014_v33 = vpack.c.bf16 %v2189_v40, %v2182_v16 }
  0xf5   :  { %8572 = vst [vmem:[#allocation67_spill] sm:$0xff] %v7021_v21  ;;  %v2308_v9 = vand.u32 4294901760, %v2307_v41  ;;  %v8574_v40 = vand.u32 4294901760, %v6925_v30  ;;  %v2315_v58 = vand.u32 4294901760, %v2314_v13  ;;  %5012 = vmatpush3.bf16.msra.mxu0 %v6933_v60  ;;  %v8576_v13 = vand.u32 4294901760, %v6894_v39 }
  0xf6   :  { %8569 = vst [vmem:[#allocation9_spill] sm:$0xff] %v6995_v6  ;;  %8571 = vst [vmem:[#allocation12_spill] sm:$0xff] %v7014_v33  ;;  %v2195_v19 = vsub.f32 %v6832_v20, %v8171_v62  ;;  %v2202_v48 = vsub.f32 %v6881_v5, %v8170_v42  ;;  %4780 = vmatpush3.bf16.msra.mxu1 %v8508_v1  ;;  %5014 = vmatprep.subr.bf16.mxu0 %v6939_v3  ;;  %v7051_v42 = vld [vmem:[%s7911_s3 + $0x270] sm:$0xff]  ;;  %v7056_v62 = vld [vmem:[%s7911_s3 + $0x278] sm:$0xff]  ;;  %v7058_v41 = vand.u32 4294901760, %v90_v8 }
  0xf7   :  { %v7029_v16 = vpack.c.bf16 %v8574_v40, %v8573_v37  ;;  %v2321_v37 = vsub.f32 %v6883_v57, %v8172_v12  ;;  %v2328_v40 = vsub.f32 %v6894_v39, %v8576_v13  ;;  %v7060_v12 = vpack.c.bf16 %v2315_v58, %v2308_v9  ;;  %4782 = vmatprep.subr.bf16.mxu1 %v8509_v15 }
  0xf8   :  { %8577 = vst [vmem:[#allocation19_spill] sm:$0xff] %v7058_v41  ;;  %v2196_v17 = vand.u32 4294901760, %v2195_v19  ;;  %v2203_v13 = vand.u32 4294901760, %v2202_v48  ;;  %v7064_v1 = vsub.f32 %v91_v36, %v7021_v21  ;;  %v8582_v33 = vand.u32 4294901760, %v6974_v51 }
  0xf9   :  { %8575 = vst [vmem:[#allocation17_spill] sm:$0xff] %v7029_v16  ;;  %8578 = vst [vmem:[#allocation3_spill] sm:$0xff] %v7060_v12  ;;  %v2322_v3 = vand.u32 4294901760, %v2321_v37  ;;  %v2329_v60 = vand.u32 4294901760, %v2328_v40  ;;  %5016 = vmatpush3.bf16.msra.mxu0 %v6968_v10  ;;  %v8184_v58 = vand.u32 4294901760, %v7051_v42  ;;  %v8182_v48 = vand.u32 4294901760, %v7056_v62 }
  0xfa   :  { %8579 = vst [vmem:[#allocation21_spill] sm:$0xff] %v7064_v1  ;;  %v7066_v53 = vpack.c.bf16 %v2203_v13, %v2196_v17  ;;  %v7073_v6 = vpack.c.bf16 %v8582_v33, %v8581_v25  ;;  %4784 = vmatpush3.bf16.msra.mxu1 %v8511_v7  ;;  %5018 = vmatprep.subr.bf16.mxu0 %v7029_v16  ;;  %v8585_v9 = vand.u32 4294901760, %v7005_v38  ;;  %v8586_v36 = vand.u32 4294901760, %v7010_v63 }
  0xfb   :  { %v7077_v15 = vpack.c.bf16 %v2329_v60, %v2322_v3  ;;  %v8181_v19 = vand.u32 4294901760, %v6944_v26  ;;  %v7089_v25 = vsub.f32 %v90_v8, %v7058_v41  ;;  %4786 = vmatprep.subr.bf16.mxu1 %v8514_v28  ;;  %v8183_v60 = vand.u32 4294901760, %v7064_v1 }
  0xfc   :  { %8580 = vst [vmem:[#allocation24_spill] sm:$0xff] %v7066_v53  ;;  %8583 = vst [vmem:[#allocation27_spill] sm:$0xff] %v7073_v6  ;;  %v7085_v17 = vpack.c.bf16 %v8586_v36, %v8585_v9  ;;  %v7098_v7 = vpack.c.bf16 %v8182_v48, %v8184_v58  ;;  %v5057_v28 = vpack.c.bf16 %v6782_v34, %v6780_v44  ;;  %v8590_v33 = vand.u32 4294901760, %v8403_v47 }
  0xfd   :  { %8584 = vst [vmem:[#allocation31_spill] sm:$0xff] %v7077_v15  ;;  %8588 = vst [vmem:[#allocation36_spill] sm:$0xff] %v7089_v25  ;;  %5020 = vmatpush3.bf16.msra.mxu0 %v7073_v6  ;;  %v2155_v3 = vsub.f32 %v6944_v26, %v8181_v19  ;;  %v8187_v8 = vand.u32 4294901760, %v7089_v25  ;;  %v8591_v40 = vand.u32 4294901760, %v5781_v0  ;;  %v8592_v9 = vand.u32 4294901760, %v6767_v35 }
  0xfe   :  { %8587 = vst [vmem:[#allocation34_spill] sm:$0xff] %v7085_v17  ;;  %8589 = vst [vmem:[#allocation40_spill] sm:$0xff] %v7098_v7  ;;  %4788 = vmatpush3.bf16.msra.mxu1 %v8516_v59  ;;  %5022 = vmatprep.subr.bf16.mxu0 %v7085_v17  ;;  %v1375_v37 = vsub.f32 %v8403_v47, %v8590_v33  ;;  %v2164_v59 = vsub.f32 %v7064_v1, %v8183_v60  ;;  %v8593_v19 = vand.u32 4294901760, %v6772_v32  ;;  %v8621_v17 = vld [vmem:[#allocation29_spill] sm:$0xff] }
  0xff   :  { %4790 = vmatprep.subr.bf16.mxu1 %v8518_v45  ;;  %v1382_v13 = vsub.f32 %v5781_v0, %v8591_v40  ;;  %v7121_v36 = vsub.f32 %v6767_v35, %v8592_v9  ;;  %v8594_v47 = vand.u32 4294901760, %v6777_v46  ;;  %v5059_v0 = vpack.c.bf16 %v6805_v49, %v6784_v4 }
 0x100   :  { %v7126_v48 = vsub.f32 %v6772_v32, %v8593_v19  ;;  %v5061_v33 = vpack.c.bf16 %v6809_v23, %v6807_v18  ;;  %v8595_v35 = vand.u32 4294901760, %v6342_v50  ;;  %v2156_v32 = vand.u32 4294901760, %v2155_v3 }
 0x101   :  { %v7131_v45 = vsub.f32 %v6777_v46, %v8594_v47  ;;  %5024 = vmatpush3.bf16.msra.mxu0 %v7098_v7  ;;  %v2170_v46 = vsub.f32 %v7089_v25, %v8187_v8  ;;  %v1376_v19 = vand.u32 4294901760, %v1375_v37  ;;  %v8596_v9 = vand.u32 4294901760, %v6347_v2 }
 0x102   :  { %v1263_v40 = vsub.f32 %v6342_v50, %v8595_v35  ;;  %4792 = vmatpush3.bf16.msra.mxu1 %v8520_v24  ;;  %5058 = vmatprep.subr.bf16.mxu0 %v5057_v28  ;;  %v2165_v60 = vand.u32 4294901760, %v2164_v59  ;;  %v1383_v58 = vand.u32 4294901760, %v1382_v13  ;;  %v8597_v7 = vand.u32 4294901760, %v6352_v54 }
 0x103   :  { %v1270_v47 = vsub.f32 %v6347_v2, %v8596_v9  ;;  %4794 = vmatprep.subr.bf16.mxu1 %v8522_v27  ;;  %v8598_v24 = vand.u32 4294901760, %v6364_v55  ;;  %v8599_v28 = vand.u32 4294901760, %v6792_v29  ;;  %v8600_v35 = vand.u32 4294901760, %v6797_v11 }
 0x104   :  { %v1389_v50 = vsub.f32 %v6352_v54, %v8597_v7  ;;  %v8601_v27 = vand.u32 4294901760, %v6802_v43  ;;  %2157 = vmatmul.mubr.f32.vlgmr.msra.gmra.mrb[16].mxu0 %v2156_v32  ;;  %v5063_v54 = vpack.c.bf16 %v6881_v5, %v6832_v20  ;;  %v8602_v7 = vand.u32 4294901760, %v6381_v52 }
 0x105   :  { %v1396_v3 = vsub.f32 %v6364_v55, %v8598_v24  ;;  %v7158_v37 = vsub.f32 %v6792_v29, %v8599_v28  ;;  %v7163_v2 = vsub.f32 %v6797_v11, %v8600_v35  ;;  %2166 = vmatprep.mubr.f32.mxu0 %v2165_v60  ;;  %5060 = vmatpush3.bf16.msra.mxu0 %v5059_v0  ;;  %v1264_v55 = vand.u32 4294901760, %v1263_v40  ;;  %v8605_v28 = vld [vmem:[#allocation45_spill] sm:$0xff]  ;;  %v8607_v35 = vld [vmem:[#allocation84_spill] sm:$0xff] }
 0x106   :  { %v7168_v59 = vsub.f32 %v6802_v43, %v8601_v27  ;;  %v5065_v29 = vpack.c.bf16 %v6894_v39, %v6883_v57  ;;  %v1277_v11 = vsub.f32 %v6381_v52, %v8602_v7  ;;  %v8603_v13 = vand.u32 4294901760, %v6386_v22  ;;  %v8604_v43 = vld [vmem:[#allocation46_spill] sm:$0xff]  ;;  %5062 = vmatprep.subr.bf16.mxu0 %v5061_v33  ;;  %v8610_v7 = vld [vmem:[#allocation48_spill] sm:$0xff] }
 0x107   :  { %4796 = vmatpush3.bf16.msra.mxu1 %v8604_v43  ;;  %v2171_v32 = vand.u32 4294901760, %v2170_v46  ;;  %v1271_v24 = vand.u32 4294901760, %v1270_v47  ;;  %v8606_v60 = vand.u32 4294901760, %v8605_v28  ;;  %v8608_v27 = vand.u32 4294901760, %v8607_v35  ;;  %v8611_v33 = vld [vmem:[#allocation26_spill] sm:$0xff] }
 0x108   :  { %v1284_v9 = vsub.f32 %v6386_v22, %v8603_v13  ;;  %v8609_v8 = vand.u32 4294901760, %v6816_v14  ;;  %4798 = vmatprep.subr.bf16.mxu1 %v8610_v7  ;;  %v4833_v22 = vpack.c.bf16 %v1383_v58, %v1376_v19  ;;  %v1390_v13 = vand.u32 4294901760, %v1389_v50 }
 0x109   :  { %v1403_v0 = vsub.f32 %v8605_v28, %v8606_v60  ;;  %v1410_v40 = vsub.f32 %v8607_v35, %v8608_v27  ;;  %v1397_v46 = vand.u32 4294901760, %v1396_v3  ;;  %v8612_v47 = vand.u32 4294901760, %v8611_v33  ;;  %v8614_v35 = vld [vmem:[#allocation25_spill] sm:$0xff]  ;;  %2172 = vmatmul.mubr.f32.gmra.mrb[18].mxu0 %v2171_v32 }
 0x10a   :  { %v7190_v52 = vsub.f32 %v6816_v14, %v8609_v8  ;;  %v8613_v28 = vand.u32 4294901760, %v6826_v56  ;;  %v8615_v27 = vand.u32 4294901760, %v8614_v35  ;;  %v5067_v58 = vpack.c.bf16 %v7126_v48, %v7121_v36  ;;  %5064 = vmatpush3.bf16.msra.mxu0 %v5063_v54  ;;  %v8616_v8 = vld [vmem:[#allocation15_spill] sm:$0xff]  ;;  %v8617_v3 = vld [vmem:[#allocation85_spill] sm:$0xff] }
 0x10b   :  { %v7196_v43 = vsub.f32 %v8611_v33, %v8612_v47  ;;  %2546 = vmatprep.mubr.f32.mxu0 %v8616_v8  ;;  %v1278_v19 = vand.u32 4294901760, %v1277_v11  ;;  %v1285_v50 = vand.u32 4294901760, %v1284_v9  ;;  %v8618_v7 = vand.u32 4294901760, %v8617_v3  ;;  %5066 = vmatprep.subr.bf16.mxu0 %v5065_v29 }
 0x10c   :  { %v7201_v60 = vsub.f32 %v6826_v56, %v8613_v28  ;;  %v7206_v14 = vsub.f32 %v8614_v35, %v8615_v27  ;;  %v8619_v56 = vld [vmem:[#allocation86_spill] sm:$0xff]  ;;  %v8622_v35 = vand.u32 4294901760, %v8621_v17  ;;  %v8624_v27 = vld [vmem:[#allocation49_spill] sm:$0xff]  ;;  %v4835_v54 = vpack.c.bf16 %v1271_v24, %v1264_v55 }
 0x10d   :  { %v1291_v33 = vsub.f32 %v8617_v3, %v8618_v7  ;;  %v8620_v47 = vand.u32 4294901760, %v8619_v56  ;;  %4800 = vmatpush3.bf16.msra.mxu1 %v8624_v27  ;;  %v1404_v6 = vand.u32 4294901760, %v1403_v0  ;;  %v1411_v11 = vand.u32 4294901760, %v1410_v40  ;;  %v8625_v7 = vld [vmem:[#allocation87_spill] sm:$0xff]  ;;  %v8632_v55 = vld [vmem:[#allocation30_spill] sm:$0xff] }
 0x10e   :  { %v7220_v32 = vsub.f32 %v8621_v17, %v8622_v35  ;;  %4834 = vmatprep.subr.bf16.mxu1 %v4833_v22  ;;  %v4837_v9 = vpack.c.bf16 %v1397_v46, %v1390_v13  ;;  %v5069_v3 = vpack.c.bf16 %v7158_v37, %v7131_v45  ;;  %v8626_v16 = vand.u32 4294901760, %v8625_v7  ;;  %v8629_v35 = vld [vmem:[#allocation28_spill] sm:$0xff]  ;;  %v8635_v40 = vld [vmem:[#allocation35_spill] sm:$0xff]  ;;  %v8638_v46 = vld [vmem:[#allocation57_spill] sm:$0xff]  ;;  %5068 = vmatpush3.bf16.msra.mxu0 %v5067_v58 }
 0x10f   :  { %v1298_v28 = vsub.f32 %v8619_v56, %v8620_v47  ;;  %v8627_v47 = vld [vmem:[#allocation88_spill] sm:$0xff]  ;;  %v8630_v8 = vand.u32 4294901760, %v8629_v35  ;;  %v8633_v24 = vand.u32 4294901760, %v8632_v55  ;;  %v8636_v22 = vand.u32 4294901760, %v8635_v40 }
 0x110   :  { %8623 = vst [vmem:[#allocation43_spill] sm:$0xff] %v7220_v32  ;;  %v1417_v56 = vsub.f32 %v8625_v7, %v8626_v16  ;;  %v8628_v10 = vand.u32 4294901760, %v8627_v47  ;;  %v5071_v16 = vpack.c.bf16 %v7168_v59, %v7163_v2  ;;  %1120 = vmatmul.mubr.f32.vlgmr.msra.gmra.mrb[16].mxu1 %v8638_v46  ;;  %v1292_v27 = vand.u32 4294901760, %v1291_v33  ;;  %5070 = vmatprep.subr.bf16.mxu0 %v5069_v3 }
 0x111   :  { %v7234_v29 = vsub.f32 %v8629_v35, %v8630_v8  ;;  %v7239_v0 = vsub.f32 %v8632_v55, %v8633_v24  ;;  %v7244_v13 = vsub.f32 %v8635_v40, %v8636_v22  ;;  %v5073_v8 = vpack.c.bf16 %v7196_v43, %v7190_v52  ;;  %4836 = vmatpush3.bf16.msra.mxu1 %v4835_v54  ;;  %v8640_v55 = vld [vmem:[#allocation4_spill] sm:$0xff]  ;;  %v8642_v22 = vld [vmem:[#allocation5_spill] sm:$0xff] }
 0x112   :  { %v1424_v17 = vsub.f32 %v8627_v47, %v8628_v10  ;;  %v4839_v10 = vpack.c.bf16 %v1285_v50, %v1278_v19  ;;  %v1299_v7 = vand.u32 4294901760, %v1298_v28  ;;  %v8639_v47 = vld [vmem:[#allocation62_spill] sm:$0xff]  ;;  %v4841_v35 = vpack.c.bf16 %v1411_v11, %v1404_v6  ;;  %4838 = vmatprep.subr.bf16.mxu1 %v4837_v9  ;;  %v8646_v28 = vld [vmem:[#allocation7_spill] sm:$0xff]  ;;  %5072 = vmatpush3.bf16.msra.mxu0 %v5071_v16 }
 0x113   :  { %8631 = vst [vmem:[#allocation2_spill] sm:$0xff] %v7234_v29  ;;  %8634 = vst [vmem:[#allocation53_spill] sm:$0xff] %v7239_v0  ;;  %1125 = vmatprep.mubr.f32.mxu1 %v8639_v47  ;;  %v8641_v24 = vand.u32 4294901760, %v8640_v55  ;;  %v8643_v15 = vand.u32 4294901760, %v8642_v22  ;;  %v1418_v58 = vand.u32 4294901760, %v1417_v56  ;;  %v8644_v50 = vld [vmem:[#allocation6_spill] sm:$0xff]  ;;  %v5075_v9 = vpack.c.bf16 %v7206_v14, %v7201_v60  ;;  %5074 = vmatprep.subr.bf16.mxu0 %v5073_v8 }
 0x114   :  { %8637 = vst [vmem:[#allocation52_spill] sm:$0xff] %v7244_v13  ;;  %v1425_v19 = vand.u32 4294901760, %v1424_v17  ;;  %v8645_v46 = vand.u32 4294901760, %v8644_v50  ;;  %v8647_v47 = vand.u32 4294901760, %v8646_v28  ;;  %v8648_v54 = vand.u32 4294901760, %v6907_v61  ;;  %v8652_v56 = vld [vmem:[#allocation63_spill] sm:$0xff] }
 0x115   :  { %v1305_v40 = vsub.f32 %v8640_v55, %v8641_v24  ;;  %v1312_v53 = vsub.f32 %v8642_v22, %v8643_v15  ;;  %v8650_v55 = vand.u32 4294901760, %v6925_v30  ;;  %v5077_v3 = vpack.c.bf16 %v7234_v29, %v7220_v32  ;;  %1127 = vmatmul.mubr.f32.gmra.mrb[18].mxu1 %v8652_v56  ;;  %v8653_v24 = vld [vmem:[#allocation89_spill] sm:$0xff]  ;;  %v8660_v56 = vld [vmem:[#allocation92_spill] sm:$0xff] }
 0x116   :  { %v1431_v33 = vsub.f32 %v8644_v50, %v8645_v46  ;;  %v1438_v6 = vsub.f32 %v8646_v28, %v8647_v47  ;;  %v7267_v11 = vsub.f32 %v6907_v61, %v8648_v54  ;;  %v4843_v17 = vpack.c.bf16 %v1299_v7, %v1292_v27  ;;  %v8655_v50 = vld [vmem:[#allocation90_spill] sm:$0xff]  ;;  %4840 = vmatpush3.bf16.msra.mxu1 %v4839_v10 }
 0x117   :  { %v7272_v15 = vsub.f32 %v6925_v30, %v8650_v55  ;;  %v8654_v22 = vand.u32 4294901760, %v8653_v24  ;;  %v8656_v46 = vand.u32 4294901760, %v8655_v50  ;;  %v8657_v30 = vld [vmem:[#allocation61_spill] sm:$0xff]  ;;  %v1306_v47 = vand.u32 4294901760, %v1305_v40  ;;  %v8658_v55 = vld [vmem:[#allocation91_spill] sm:$0xff]  ;;  %4842 = vmatprep.subr.bf16.mxu1 %v4841_v35  ;;  %5076 = vmatpush3.bf16.msra.mxu0 %v5075_v9 }
 0x118   :  { %8649 = vst [vmem:[#allocation54_spill] sm:$0xff] %v7267_v11  ;;  %1484 = vmatprep.mubr.f32.mxu1 %v8657_v30  ;;  %v1313_v54 = vand.u32 4294901760, %v1312_v53  ;;  %v8659_v12 = vand.u32 4294901760, %v8658_v55  ;;  %v8661_v16 = vand.u32 4294901760, %v8660_v56  ;;  %v8662_v7 = vand.u32 4294901760, %v6953_v31  ;;  %5078 = vmatprep.subr.bf16.mxu0 %v5077_v3 }
 0x119   :  { %8651 = vst [vmem:[#allocation46_spill] sm:$0xff] %v7272_v15  ;;  %v1319_v61 = vsub.f32 %v8653_v24, %v8654_v22  ;;  %v1326_v28 = vsub.f32 %v8655_v50, %v8656_v46  ;;  %v4845_v10 = vpack.c.bf16 %v1425_v19, %v1418_v58  ;;  %v1432_v22 = vand.u32 4294901760, %v1431_v33  ;;  %v8670_v19 = vld [vmem:[#allocation93_spill] sm:$0xff] }
 0x11a   :  { %v1445_v41 = vsub.f32 %v8658_v55, %v8659_v12  ;;  %v1452_v27 = vsub.f32 %v8660_v56, %v8661_v16  ;;  %v7295_v24 = vsub.f32 %v6953_v31, %v8662_v7  ;;  %v1439_v50 = vand.u32 4294901760, %v1438_v6  ;;  %v8672_v6 = vld [vmem:[#allocation94_spill] sm:$0xff]  ;;  %4844 = vmatpush3.bf16.msra.mxu1 %v4843_v17 }
 0x11b   :  { %v8664_v53 = vand.u32 4294901760, %v6974_v51  ;;  %v8666_v12 = vand.u32 4294901760, %v7005_v38  ;;  %v8668_v55 = vand.u32 4294901760, %v7010_v63  ;;  %v5079_v8 = vpack.c.bf16 %v7244_v13, %v7239_v0  ;;  %4846 = vmatprep.subr.bf16.mxu1 %v4845_v10 }
 0x11c   :  { %8663 = vst [vmem:[#allocation45_spill] sm:$0xff] %v7295_v24  ;;  %v1320_v35 = vand.u32 4294901760, %v1319_v61  ;;  %v1327_v58 = vand.u32 4294901760, %v1326_v28  ;;  %v8671_v33 = vand.u32 4294901760, %v8670_v19  ;;  %v8673_v56 = vand.u32 4294901760, %v8672_v6  ;;  %v8674_v61 = vld [vmem:[#allocation95_spill] sm:$0xff] }
 0x11d   :  { %v7300_v40 = vsub.f32 %v6974_v51, %v8664_v53  ;;  %v7305_v46 = vsub.f32 %v7005_v38, %v8666_v12  ;;  %v7310_v31 = vsub.f32 %v7010_v63, %v8668_v55  ;;  %v4847_v16 = vpack.c.bf16 %v1313_v54, %v1306_v47  ;;  %v8676_v55 = vld [vmem:[#allocation96_spill] sm:$0xff]  ;;  %5080 = vmatpush3.bf16.msra.mxu0 %v5079_v8 }
 0x11e   :  { %v1333_v51 = vsub.f32 %v8670_v19, %v8671_v33  ;;  %v1340_v38 = vsub.f32 %v8672_v6, %v8673_v56  ;;  %v5081_v63 = vpack.c.bf16 %v7272_v15, %v7267_v11  ;;  %v1446_v7 = vand.u32 4294901760, %v1445_v41 }
 0x11f   :  { %8665 = vst [vmem:[#allocation84_spill] sm:$0xff] %v7300_v40  ;;  %8667 = vst [vmem:[#allocation48_spill] sm:$0xff] %v7305_v46  ;;  %v1453_v53 = vand.u32 4294901760, %v1452_v27  ;;  %v4849_v9 = vpack.c.bf16 %v1439_v50, %v1432_v22  ;;  %v8675_v28 = vand.u32 4294901760, %v8674_v61  ;;  %v8677_v19 = vand.u32 4294901760, %v8676_v55  ;;  %4848 = vmatpush3.bf16.msra.mxu1 %v4847_v16 }
 0x120   :  { %8669 = vst [vmem:[#allocation26_spill] sm:$0xff] %v7310_v31  ;;  %v8678_v6 = vand.u32 4294901760, %v7051_v42  ;;  %v8680_v17 = vand.u32 4294901760, %v7056_v62  ;;  %v5083_v47 = vpack.c.bf16 %v7300_v40, %v7295_v24  ;;  %v4851_v54 = vpack.c.bf16 %v1327_v58, %v1320_v35  ;;  %5082 = vmatprep.subr.bf16.mxu0 %v5081_v63  ;;  %v8686_v35 = vld [vmem:[#allocation10_spill] sm:$0xff] }
 0x121   :  { %v1459_v12 = vsub.f32 %v8674_v61, %v8675_v28  ;;  %v1466_v33 = vsub.f32 %v8676_v55, %v8677_v19  ;;  %v5085_v27 = vpack.c.bf16 %v7310_v31, %v7305_v46  ;;  %v1334_v10 = vand.u32 4294901760, %v1333_v51  ;;  %v8684_v28 = vld [vmem:[#allocation11_spill] sm:$0xff]  ;;  %4850 = vmatprep.subr.bf16.mxu1 %v4849_v9  ;;  %v8688_v51 = vld [vmem:[#allocation97_spill] sm:$0xff] }
 0x122   :  { %v7331_v3 = vsub.f32 %v7051_v42, %v8678_v6  ;;  %v7336_v41 = vsub.f32 %v7056_v62, %v8680_v17  ;;  %v1341_v22 = vand.u32 4294901760, %v1340_v38  ;;  %v4853_v50 = vpack.c.bf16 %v1453_v53, %v1446_v7  ;;  %v8682_v42 = vld [vmem:[#allocation58_spill] sm:$0xff]  ;;  %5084 = vmatpush3.bf16.msra.mxu0 %v5083_v47 }
 0x123   :  { %v8683_v56 = vand.u32 4294901760, %v8682_v42  ;;  %v8685_v62 = vand.u32 4294901760, %v8684_v28  ;;  %v1460_v19 = vand.u32 4294901760, %v1459_v12  ;;  %v1467_v8 = vand.u32 4294901760, %v1466_v33  ;;  %4852 = vmatpush3.bf16.msra.mxu1 %v4851_v54  ;;  %5086 = vmatprep.subr.bf16.mxu0 %v5085_v27 }
 0x124   :  { %8679 = vst [vmem:[#allocation25_spill] sm:$0xff] %v7331_v3  ;;  %8681 = vst [vmem:[#allocation85_spill] sm:$0xff] %v7336_v41  ;;  %v8687_v58 = vand.u32 4294901760, %v8686_v35  ;;  %v8689_v38 = vand.u32 4294901760, %v8688_v51  ;;  %v4855_v63 = vpack.c.bf16 %v1341_v22, %v1334_v10  ;;  %v5087_v7 = vpack.c.bf16 %v7336_v41, %v7331_v3  ;;  %4854 = vmatprep.subr.bf16.mxu1 %v4853_v50 }
 0x125   :  { %v1347_v61 = vsub.f32 %v8682_v42, %v8683_v56  ;;  %v1354_v55 = vsub.f32 %v8684_v28, %v8685_v62  ;;  %v8690_v53 = vand.u32 4294901760, %v6780_v44  ;;  %v8691_v17 = vand.u32 4294901760, %v6782_v34  ;;  %v8692_v42 = vld [vmem:[#allocation14_spill] sm:$0xff]  ;;  %v8694_v62 = vld [vmem:[#allocation13_spill] sm:$0xff] }
 0x126   :  { %v1473_v6 = vsub.f32 %v8686_v35, %v8687_v58  ;;  %v1480_v16 = vsub.f32 %v8688_v51, %v8689_v38  ;;  %v8693_v56 = vand.u32 4294901760, %v8692_v42  ;;  %v8695_v35 = vand.u32 4294901760, %v8694_v62  ;;  %5088 = vmatpush3.bf16.msra.mxu0 %v5087_v7 }
 0x127   :  { %v5121_v9 = vpack.c.bf16 %v8691_v17, %v8690_v53  ;;  %v1348_v12 = vand.u32 4294901760, %v1347_v61  ;;  %v1355_v33 = vand.u32 4294901760, %v1354_v55  ;;  %v4857_v10 = vpack.c.bf16 %v1467_v8, %v1460_v19  ;;  %4856 = vmatpush3.bf16.msra.mxu1 %v4855_v63 }
 0x128   :  { %v1361_v28 = vsub.f32 %v8692_v42, %v8693_v56  ;;  %v1368_v47 = vsub.f32 %v8694_v62, %v8695_v35  ;;  %v1474_v22 = vand.u32 4294901760, %v1473_v6  ;;  %v1481_v58 = vand.u32 4294901760, %v1480_v16  ;;  %v8706_v56 = vld [vmem:[#allocation72_spill] sm:$0xff] }
 0x129   :  { %v8696_v34 = vand.u32 4294901760, %v6784_v4  ;;  %v8697_v44 = vand.u32 4294901760, %v6805_v49  ;;  %5122 = vmatprep.subr.bf16.mxu0 %v5121_v9  ;;  %v4859_v27 = vpack.c.bf16 %v1355_v33, %v1348_v12  ;;  %v8698_v61 = vand.u32 4294901760, %v6807_v18  ;;  %4858 = vmatprep.subr.bf16.mxu1 %v4857_v10  ;;  %v8705_v9 = vld [vmem:[#allocation47_spill] sm:$0xff] }
 0x12a   :  { %v8699_v55 = vand.u32 4294901760, %v6809_v23  ;;  %v1362_v38 = vand.u32 4294901760, %v1361_v28  ;;  %v1369_v53 = vand.u32 4294901760, %v1368_v47  ;;  %v4861_v50 = vpack.c.bf16 %v1481_v58, %v1474_v22  ;;  %2549 = vmatmul.mubr.f32.vlgmr.msra.gmra.mrb[20].mxu0 %v6944_v26  ;;  %v8707_v47 = vld [vmem:[#allocation74_spill] sm:$0xff]  ;;  %v8708_v10 = vld [vmem:[#allocation51_spill] sm:$0xff] }
 0x12b   :  { %v5123_v54 = vpack.c.bf16 %v8697_v44, %v8696_v34  ;;  %2555 = vmatprep.mubr.f32.mxu0 %v7064_v1  ;;  %v8700_v4 = vand.u32 4294901760, %v6832_v20  ;;  %v8701_v49 = vand.u32 4294901760, %v6881_v5  ;;  %v8219_v8 = vand.u32 4294901760, %v7121_v36  ;;  %4860 = vmatpush3.bf16.msra.mxu1 %v4859_v27  ;;  %v8704_v5 = vld [vmem:[#allocation16_spill] sm:$0xff]  ;;  %v8709_v34 = vld [vmem:[#allocation55_spill] sm:$0xff] }
 0x12c   :  { %v5125_v51 = vpack.c.bf16 %v8699_v55, %v8698_v61  ;;  %v8218_v18 = vand.u32 4294901760, %v7126_v48  ;;  %v4863_v23 = vpack.c.bf16 %v1369_v53, %v1362_v38  ;;  %v8702_v6 = vand.u32 4294901760, %v6883_v57  ;;  %4862 = vmatprep.subr.bf16.mxu1 %v4861_v50  ;;  %v8712_v38 = vld [vmem:[#allocation65_spill] sm:$0xff] }
 0x12d   :  { %5124 = vmatpush3.bf16.msra.mxu0 %v5123_v54  ;;  %v5127_v19 = vpack.c.bf16 %v8701_v49, %v8700_v4  ;;  %v8703_v16 = vand.u32 4294901760, %v6894_v39  ;;  %v8217_v7 = vand.u32 4294901760, %v7131_v45  ;;  %v8216_v20 = vand.u32 4294901760, %v7158_v37  ;;  %v8710_v54 = vld [vmem:[#allocation78_spill] sm:$0xff] }
 0x12e   :  { %5126 = vmatprep.subr.bf16.mxu0 %v5125_v51  ;;  %2558 = vmatmul.mubr.f32.gmra.mrb[22].mxu0 %v7089_v25  ;;  %v5131_v17 = vpack.c.bf16 %v8218_v18, %v8219_v8  ;;  %v8213_v57 = vand.u32 4294901760, %v7163_v2  ;;  %v8212_v39 = vand.u32 4294901760, %v7168_v59  ;;  %v8211_v33 = vand.u32 4294901760, %v7190_v52  ;;  %v8711_v51 = vld [vmem:[#allocation59_spill] sm:$0xff]  ;;  %v8727_v8 = vld [vmem:[#allocation33_spill] sm:$0xff] }
 0x12f   :  { %v5129_v63 = vpack.c.bf16 %v8703_v16, %v8702_v6  ;;  %2843 = vmatprep.mubr.f32.mxu0 %v8704_v5  ;;  %4864 = vmatpush3.bf16.msra.mxu1 %v4863_v23  ;;  %v5133_v12 = vpack.c.bf16 %v8216_v20, %v8217_v7  ;;  %v8210_v42 = vand.u32 4294901760, %v7196_v43  ;;  %v8205_v62 = vand.u32 4294901760, %v7201_v60  ;;  %v8726_v7 = vld [vmem:[#allocation76_spill] sm:$0xff]  ;;  %v196_v25 = vld [vmem:[%s7911_s3 + $0x338] sm:$0xff] }
 0x130   :  { %4898 = vmatprep.subr.bf16.mxu1 %v8705_v9  ;;  %v5135_v28 = vpack.c.bf16 %v8212_v39, %v8213_v57  ;;  %v8204_v35 = vand.u32 4294901760, %v7206_v14  ;;  %v8203_v22 = vand.u32 4294901760, %v7220_v32  ;;  %v8202_v58 = vand.u32 4294901760, %v7234_v29  ;;  %v194_v57 = vld [vmem:[%s7911_s3 + $0x328] sm:$0xff] }
 0x131   :  { %5128 = vmatpush3.bf16.msra.mxu0 %v5127_v19  ;;  %v5137_v44 = vpack.c.bf16 %v8210_v42, %v8211_v33  ;;  %v8201_v61 = vand.u32 4294901760, %v7239_v0  ;;  %v8200_v55 = vand.u32 4294901760, %v7244_v13  ;;  %v8713_v53 = vand.u32 4294901760, %v8712_v38  ;;  %v8714_v19 = vld [vmem:[#allocation64_spill] sm:$0xff]  ;;  %v8723_v33 = vld [vmem:[#allocation73_spill] sm:$0xff] }
 0x132   :  { %5130 = vmatprep.subr.bf16.mxu0 %v5129_v63  ;;  %1486 = vmatmul.mubr.f32.vlgmr.msra.gmra.mrb[20].mxu1 %v8706_v56  ;;  %v5139_v27 = vpack.c.bf16 %v8204_v35, %v8205_v62  ;;  %v5141_v50 = vpack.c.bf16 %v8202_v58, %v8203_v22  ;;  %v8199_v4 = vand.u32 4294901760, %v7267_v11  ;;  %v8198_v49 = vand.u32 4294901760, %v7272_v15  ;;  %v8715_v63 = vld [vmem:[#allocation66_spill] sm:$0xff]  ;;  %v8717_v38 = vld [vmem:[#allocation68_spill] sm:$0xff] }
 0x133   :  { %1491 = vmatprep.mubr.f32.mxu1 %v8707_v47  ;;  %4900 = vmatpush3.bf16.msra.mxu1 %v8708_v10  ;;  %v5143_v23 = vpack.c.bf16 %v8200_v55, %v8201_v61  ;;  %v8209_v6 = vand.u32 4294901760, %v7295_v24  ;;  %v8206_v16 = vand.u32 4294901760, %v7300_v40  ;;  %v8214_v55 = vand.u32 4294901760, %v7336_v41  ;;  %v8718_v61 = vld [vmem:[#allocation69_spill] sm:$0xff]  ;;  %v8720_v62 = vld [vmem:[#allocation70_spill] sm:$0xff]  ;;  %v8728_v41 = vld [vmem:[#allocation80_spill] sm:$0xff] }
 0x134   :  { %4902 = vmatprep.subr.bf16.mxu1 %v8709_v34  ;;  %v2984_v20 = vand.u32 4294901760, %v194_v57  ;;  %v8730_v40 = vld [vmem:[#allocation56_spill] sm:$0xff] }
 0x135   :  { %5132 = vmatpush3.bf16.msra.mxu0 %v5131_v17  ;;  %v5145_v17 = vpack.c.bf16 %v8198_v49, %v8199_v4  ;;  %v5147_v49 = vpack.c.bf16 %v8206_v16, %v8209_v6  ;;  %v8215_v4 = vand.u32 4294901760, %v7331_v3  ;;  %v191_v16 = vld [vmem:[%s7911_s3 + $0x310] sm:$0xff] }
 0x136   :  { %5134 = vmatprep.subr.bf16.mxu0 %v5133_v12  ;;  %1493 = vmatmul.mubr.f32.gmra.mrb[22].mxu1 %v8710_v54  ;;  %v8208_v12 = vand.u32 4294901760, %v7305_v46  ;;  %v2975_v6 = vand.u32 4294901760, %v191_v16  ;;  %v2990_v46 = vand.u32 4294901760, %v196_v25 }
 0x137   :  { %4904 = vmatpush3.bf16.msra.mxu1 %v8711_v51  ;;  %1744 = vmatprep.mubr.f32.mxu1 %v8713_v53  ;;  %v189_v53 = vld [vmem:[%s7911_s3 + $0x300] sm:$0xff] }
 0x138   :  { %4906 = vmatprep.subr.bf16.mxu1 %v8714_v19  ;;  %v2969_v22 = vand.u32 4294901760, %v189_v53 }
 0x139   :  { %5136 = vmatpush3.bf16.msra.mxu0 %v5135_v28  ;;  %v8207_v28 = vand.u32 4294901760, %v7310_v31 }
 0x13a   :  { %5138 = vmatprep.subr.bf16.mxu0 %v5137_v44  ;;  %v8716_v44 = vld [vmem:[#allocation50_spill] sm:$0xff]  ;;  %v7511_v1 = vsub.f32 %v189_v53, %v2969_v22 }
 0x13b   :  { %4908 = vmatpush3.bf16.msra.mxu1 %v8715_v63  ;;  %v5149_v58 = vpack.c.bf16 %v8207_v28, %v8208_v12  ;;  %v5151_v28 = vpack.c.bf16 %v8214_v55, %v8215_v4  ;;  %v8721_v12 = vld [vmem:[#allocation71_spill] sm:$0xff]  ;;  %v197_v53 = vld [vmem:[%s7911_s3 + $0x340] sm:$0xff] }
 0x13c   :  { %4910 = vmatprep.subr.bf16.mxu1 %v8717_v38  ;;  %v8724_v55 = vld [vmem:[#allocation75_spill] sm:$0xff]  ;;  %v2993_v11 = vand.u32 4294901760, %v197_v53 }
 0x13d   :  { %5140 = vmatpush3.bf16.msra.mxu0 %v5139_v27  ;;  %v7450_v27 = vand.u32 4294901760, %v8716_v44 }
 0x13e   :  { %5142 = vmatprep.subr.bf16.mxu0 %v5141_v50  ;;  %v190_v50 = vld [vmem:[%s7911_s3 + $0x308] sm:$0xff] }
 0x13f   :  { %4912 = vmatpush3.bf16.msra.mxu1 %v8718_v61  ;;  %v2972_v35 = vand.u32 4294901760, %v190_v50 }
 0x140   :  { %4914 = vmatprep.subr.bf16.mxu1 %v8720_v62 }
 0x141   :  { %5144 = vmatpush3.bf16.msra.mxu0 %v5143_v23  ;;  %v7472_v23 = vsub.f32 %v8716_v44, %v7450_v27  ;;  %v7486_v44 = vpack.c.bf16 %v2972_v35, %v2969_v22  ;;  %v7513_v26 = vsub.f32 %v190_v50, %v2972_v35  ;;  %v7523_v22 = vand.u32 4294901760, %v8730_v40  ;;  %v8732_v35 = vld [vmem:[#allocation19_spill] sm:$0xff] }
 0x142   :  { %5146 = vmatprep.subr.bf16.mxu0 %v5145_v17  ;;  %v192_v17 = vld [vmem:[%s7911_s3 + $0x318] sm:$0xff]  ;;  %v198_v50 = vld [vmem:[%s7911_s3 + $0x348] sm:$0xff] }
 0x143   :  { %8719 = vst [vmem:[#allocation86_spill] sm:$0xff] %v7472_v23  ;;  %4916 = vmatpush3.bf16.msra.mxu1 %v8721_v12  ;;  %8722 = vst [vmem:[#allocation29_spill] sm:$0xff] %v7486_v44  ;;  %v2978_v42 = vand.u32 4294901760, %v192_v17  ;;  %v8225_v39 = vand.u32 4294901760, %v7472_v23  ;;  %v2996_v13 = vand.u32 4294901760, %v198_v50 }
 0x144   :  { %4918 = vmatprep.subr.bf16.mxu1 %v8723_v33  ;;  %8731 = vst [vmem:[#allocation87_spill] sm:$0xff] %v7523_v22 }
 0x145   :  { %5148 = vmatpush3.bf16.msra.mxu0 %v5147_v49  ;;  %v193_v49 = vld [vmem:[%s7911_s3 + $0x320] sm:$0xff]  ;;  %v3048_v18 = vsub.f32 %v7472_v23, %v8225_v39  ;;  %v7537_v24 = vsub.f32 %v192_v17, %v2978_v42  ;;  %v8735_v17 = vld [vmem:[#allocation77_spill] sm:$0xff] }
 0x146   :  { %5150 = vmatprep.subr.bf16.mxu0 %v5149_v58  ;;  %v7498_v58 = vpack.c.bf16 %v2978_v42, %v2975_v6  ;;  %v2981_v4 = vand.u32 4294901760, %v193_v49  ;;  %v7556_v42 = vsub.f32 %v8730_v40, %v7523_v22  ;;  %v7571_v40 = vsub.f32 %v194_v57, %v2984_v20  ;;  %v8737_v22 = vld [vmem:[#allocation79_spill] sm:$0xff]  ;;  %v8739_v57 = vld [vmem:[#allocation82_spill] sm:$0xff] }
 0x147   :  { %4920 = vmatpush3.bf16.msra.mxu1 %v8724_v55  ;;  %v3049_v3 = vand.u32 4294901760, %v3048_v18  ;;  %v7535_v18 = vsub.f32 %v191_v16, %v2975_v6  ;;  %v8734_v6 = vand.u32 4294901760, %v7513_v26  ;;  %v8259_v23 = vand.u32 4294901760, %v7537_v24 }
 0x148   :  { %8725 = vst [vmem:[#allocation49_spill] sm:$0xff] %v7498_v58  ;;  %4922 = vmatprep.subr.bf16.mxu1 %v8726_v7  ;;  %v7519_v39 = vpack.c.bf16 %v2984_v20, %v2981_v4  ;;  %v7569_v29 = vsub.f32 %v193_v49, %v2981_v4  ;;  %v8738_v32 = vand.u32 4294901760, %v8737_v22  ;;  %v3057_v4 = vand.u32 4294901760, %v7556_v42 }
 0x149   :  { %5152 = vmatpush3.bf16.msra.mxu0 %v5151_v28  ;;  %v195_v28 = vld [vmem:[%s7911_s3 + $0x330] sm:$0xff]  ;;  %v3076_v16 = vsub.f32 %v7513_v26, %v8734_v6  ;;  %v8260_v0 = vand.u32 4294901760, %v7535_v18  ;;  %v8261_v22 = vand.u32 4294901760, %v7571_v40 }
 0x14a   :  { %5186 = vmatprep.subr.bf16.mxu0 %v7486_v44  ;;  %v2987_v31 = vand.u32 4294901760, %v195_v28 }
 0x14b   :  { %4924 = vmatpush3.bf16.msra.mxu1 %v8728_v41  ;;  %v3077_v20 = vand.u32 4294901760, %v3076_v16  ;;  %v7600_v16 = vsub.f32 %v196_v25, %v2990_v46  ;;  %v3104_v25 = vsub.f32 %v7571_v40, %v8261_v22 }
 0x14c   :  { %2845 = vmatmul.mubr.f32.vlgmr.msra.gmra.mrb[24].mxu0 %v8727_v8  ;;  %v8729_v8 = vld [vmem:[#allocation81_spill] sm:$0xff]  ;;  %v7542_v15 = vpack.c.bf16 %v2990_v46, %v2987_v31 }
 0x14d   :  { %2850 = vmatprep.mubr.f32.mxu0 %v7021_v21  ;;  %5188 = vmatpush3.bf16.msra.mxu0 %v7486_v44  ;;  %v8258_v21 = vand.u32 4294901760, %v7511_v1  ;;  %v7547_v44 = vld [vmem:[%s7911_s3 + $0x350] sm:$0xff] }
 0x14e   :  { %5190 = vmatprep.subr.bf16.mxu0 %v7498_v58  ;;  %4926 = vmatprep.subr.bf16.mxu1 %v8729_v8  ;;  %v2999_v6 = vand.u32 4294901760, %v7547_v44 }
 0x150   :  { %2852 = vmatmul.mubr.f32.gmra.mrb[26].mxu0 %v8732_v35  ;;  %v8733_v35 = vld [vmem:[#allocation83_spill] sm:$0xff] }
 0x151   :  { %5192 = vmatpush3.bf16.msra.mxu0 %v7498_v58  ;;  %4471 = vmatprep.mubr.f32.mxu0 %v3049_v3  ;;  %v7552_v3 = vld [vmem:[%s7911_s3 + $0x358] sm:$0xff]  ;;  %v8736_v58 = vand.u32 4294901760, %v8735_v17 }
 0x152   :  { %4928 = vmatpush3.bf16.msra.mxu1 %v8733_v35  ;;  %5194 = vmatprep.subr.bf16.mxu0 %v7519_v39  ;;  %v3002_v17 = vand.u32 4294901760, %v7552_v3 }
 0x153   :  { %4962 = vmatprep.subr.bf16.mxu1 %v8705_v9  ;;  %v3069_v9 = vsub.f32 %v7511_v1, %v8258_v21  ;;  %v8740_v21 = vand.u32 4294901760, %v8739_v57  ;;  %v3058_v57 = vsub.f32 %v7556_v42, %v3057_v4 }
 0x155   :  { %1748 = vmatmul.mubr.f32.vlgmr.msra.gmra.mrb[24].mxu1 %v8736_v58  ;;  %5196 = vmatpush3.bf16.msra.mxu0 %v7519_v39  ;;  %v7580_v58 = vpack.c.bf16 %v2996_v13, %v2993_v11  ;;  %v3070_v49 = vand.u32 4294901760, %v3069_v9  ;;  %v7596_v9 = vpack.c.bf16 %v3002_v17, %v2999_v6 }
 0x156   :  { %1755 = vmatprep.mubr.f32.mxu1 %v8738_v32  ;;  %4964 = vmatpush3.bf16.msra.mxu1 %v8708_v10  ;;  %v3083_v32 = vsub.f32 %v7535_v18, %v8260_v0  ;;  %v3090_v10 = vsub.f32 %v7537_v24, %v8259_v23 }
 0x157   :  { %4966 = vmatprep.subr.bf16.mxu1 %v8709_v34  ;;  %5198 = vmatprep.subr.bf16.mxu0 %v7542_v15  ;;  %v8262_v34 = vand.u32 4294901760, %v7569_v29  ;;  %v5209_v23 = vpack.c.bf16 %v3077_v20, %v3070_v49  ;;  %v3863_v49 = vpop.f32.mrb[0].mxu0  ;;  %v3059_v20 = vand.u32 4294901760, %v3058_v57 }
 0x158   :  { %v3091_v0 = vand.u32 4294901760, %v3090_v10 }
 0x159   :  { %1759 = vmatmul.mubr.f32.gmra.mrb[26].mxu1 %v8740_v21  ;;  %5200 = vmatpush3.bf16.msra.mxu0 %v7542_v15  ;;  %v7598_v21 = vsub.f32 %v195_v28, %v2987_v31  ;;  %v3117_v31 = vand.u32 4294901760, %v7600_v16  ;;  %v7620_v28 = vsub.f32 %v198_v50, %v2996_v13 }
 0x15a   :  { %4968 = vmatpush3.bf16.msra.mxu1 %v8711_v51  ;;  %2036 = vmatprep.mubr.f32.mxu1 %v8657_v30  ;;  %v3084_v51 = vand.u32 4294901760, %v3083_v32  ;;  %v3097_v30 = vsub.f32 %v7569_v29, %v8262_v34  ;;  %v3864_v32 = vpop.f32.mrb[1].mxu0  ;;  %v3105_v34 = vand.u32 4294901760, %v3104_v25 }
 0x15b   :  { %4970 = vmatprep.subr.bf16.mxu1 %v8714_v19  ;;  %5202 = vmatprep.subr.bf16.mxu0 %v7580_v58  ;;  %v3110_v46 = vand.u32 4294901760, %v7598_v21  ;;  %v7618_v19 = vsub.f32 %v197_v53, %v2993_v11  ;;  %v7623_v10 = vadd.f32 %v3864_v32, %v3863_v49  ;;  %v3118_v11 = vsub.f32 %v7600_v16, %v3117_v31 }
 0x15c   :  { %v3098_v22 = vand.u32 4294901760, %v3097_v30  ;;  %v3131_v53 = vand.u32 4294901760, %v7620_v28  ;;  %v3866_v57 = vpop.f32.mrb[2].mxu0 }
 0x15d   :  { %5204 = vmatpush3.bf16.msra.mxu0 %v7580_v58  ;;  %v3111_v13 = vsub.f32 %v7598_v21, %v3110_v46  ;;  %v3119_v30 = vand.u32 4294901760, %v3118_v11 }
 0x15e   :  { %4972 = vmatpush3.bf16.msra.mxu1 %v8715_v63  ;;  %5206 = vmatprep.subr.bf16.mxu0 %v7596_v9  ;;  %v5213_v63 = vpack.c.bf16 %v3091_v0, %v3084_v51  ;;  %v7637_v0 = vsub.f32 %v7547_v44, %v2999_v6  ;;  %v5217_v50 = vpack.c.bf16 %v3105_v34, %v3098_v22 }
 0x15f   :  { %4974 = vmatprep.subr.bf16.mxu1 %v8717_v38  ;;  %v3124_v38 = vand.u32 4294901760, %v7618_v19  ;;  %v3112_v51 = vand.u32 4294901760, %v3111_v13  ;;  %v3132_v44 = vsub.f32 %v7620_v28, %v3131_v53 }
 0x160   :  { %v3711_v6 = vpop.f32.mrb[0].mxu1 }
 0x161   :  { %5208 = vmatpush3.bf16.msra.mxu0 %v7596_v9  ;;  %v3712_v34 = vpop.f32.mrb[1].mxu1  ;;  %v5221_v25 = vpack.c.bf16 %v3119_v30, %v3112_v51  ;;  %v8741_v51 = vand.u32 4294901760, %v7121_v36 }
 0x162   :  { %4976 = vmatpush3.bf16.msra.mxu1 %v8718_v61  ;;  %5210 = vmatprep.subr.bf16.mxu0 %v5209_v23  ;;  %v7640_v61 = vsub.f32 %v7552_v3, %v3002_v17  ;;  %v3867_v3 = vpop.f32.mrb[3].mxu0  ;;  %v7655_v22 = vadd.f32 %v3712_v34, %v3711_v6  ;;  %v8745_v6 = vand.u32 4294901760, %v7158_v37 }
 0x163   :  { %4978 = vmatprep.subr.bf16.mxu1 %v8720_v62  ;;  %v3125_v62 = vsub.f32 %v7618_v19, %v3124_v38  ;;  %v2209_v30 = vsub.f32 %v7121_v36, %v8741_v51  ;;  %v8746_v36 = vand.u32 4294901760, %v7163_v2 }
 0x164   :  { %4472 = vmatmul.mubr.f32.vlgmr.msra.gmra.mrb[28].mxu0 %v3059_v20  ;;  %v3145_v17 = vand.u32 4294901760, %v7640_v61  ;;  %v3133_v20 = vand.u32 4294901760, %v3132_v44  ;;  %v3714_v13 = vpop.f32.mrb[2].mxu1 }
 0x165   :  { %5212 = vmatpush3.bf16.msra.mxu0 %v5209_v23  ;;  %4498 = vmatprep.mubr.f32.mxu0 %v7450_v27  ;;  %v3138_v23 = vand.u32 4294901760, %v7637_v0  ;;  %v3126_v49 = vand.u32 4294901760, %v3125_v62  ;;  %v3715_v11 = vpop.f32.mrb[3].mxu1  ;;  %v8743_v62 = vld [vmem:[#allocation9_spill] sm:$0xff]  ;;  %v2223_v34 = vsub.f32 %v7163_v2, %v8746_v36  ;;  %v8750_v2 = vand.u32 4294901760, %v7190_v52 }
 0x166   :  { %4980 = vmatpush3.bf16.msra.mxu1 %v8721_v12  ;;  %5214 = vmatprep.subr.bf16.mxu0 %v5213_v63  ;;  %v7653_v12 = vadd.f32 %v3867_v3, %v3866_v57  ;;  %v3146_v32 = vsub.f32 %v7640_v61, %v3145_v17  ;;  %v8744_v3 = vand.u32 4294901760, %v7131_v45 }
 0x167   :  { %4982 = vmatprep.subr.bf16.mxu1 %v8723_v33  ;;  %v3139_v33 = vsub.f32 %v7637_v0, %v3138_v23 }
 0x168   :  { %v3147_v57 = vand.u32 4294901760, %v3146_v32 }
 0x169   :  { %5216 = vmatpush3.bf16.msra.mxu0 %v5213_v63  ;;  %v7666_v63 = vadd.f32 %v3715_v11, %v3714_v13  ;;  %v2349_v13 = vsub.f32 %v7190_v52, %v8750_v2  ;;  %v5237_v11 = vpack.c.bf16 %v7537_v24, %v7535_v18  ;;  %v8762_v2 = vld [vmem:[#allocation53_spill] sm:$0xff] }
 0x16a   :  { %4984 = vmatpush3.bf16.msra.mxu1 %v8724_v55  ;;  %5218 = vmatprep.subr.bf16.mxu0 %v5217_v50  ;;  %v5225_v55 = vpack.c.bf16 %v3133_v20, %v3126_v49  ;;  %v8748_v49 = vld [vmem:[#allocation12_spill] sm:$0xff]  ;;  %v2210_v20 = vand.u32 4294901760, %v2209_v30  ;;  %v8753_v30 = vand.u32 4294901760, %v7206_v14 }
 0x16b   :  { %4986 = vmatprep.subr.bf16.mxu1 %v8726_v7  ;;  %v3140_v7 = vand.u32 4294901760, %v3139_v33  ;;  %v8749_v33 = vld [vmem:[#allocation3_spill] sm:$0xff] }
 0x16c   :  { %v2244_v52 = vsub.f32 %v7206_v14, %v8753_v30  ;;  %v8760_v14 = vld [vmem:[#allocation87_spill] sm:$0xff]  ;;  %v8768_v30 = vld [vmem:[#allocation46_spill] sm:$0xff] }
 0x16d   :  { %5220 = vmatpush3.bf16.msra.mxu0 %v5217_v50  ;;  %v8742_v50 = vand.u32 4294901760, %v7126_v48  ;;  %v5229_v44 = vpack.c.bf16 %v3147_v57, %v3140_v7  ;;  %v8752_v57 = vand.u32 4294901760, %v7201_v60 }
 0x16e   :  { %4988 = vmatpush3.bf16.msra.mxu1 %v8728_v41  ;;  %5222 = vmatprep.subr.bf16.mxu0 %v5221_v25 }
 0x16f   :  { %4990 = vmatprep.subr.bf16.mxu1 %v8729_v8  ;;  %v2216_v41 = vsub.f32 %v7126_v48, %v8742_v50  ;;  %v2335_v8 = vsub.f32 %v7131_v45, %v8744_v3  ;;  %v8747_v48 = vand.u32 4294901760, %v7168_v59  ;;  %v5233_v45 = vpack.c.bf16 %v7513_v26, %v7511_v1  ;;  %v8754_v50 = vld [vmem:[#allocation24_spill] sm:$0xff] }
 0x170   :  { %v2237_v51 = vsub.f32 %v7201_v60, %v8752_v57 }
 0x171   :  { %5224 = vmatpush3.bf16.msra.mxu0 %v5221_v25  ;;  %v2230_v25 = vsub.f32 %v7168_v59, %v8747_v48  ;;  %v8751_v59 = vand.u32 4294901760, %v7196_v43 }
 0x172   :  { %4992 = vmatpush3.bf16.msra.mxu1 %v8733_v35  ;;  %5226 = vmatprep.subr.bf16.mxu0 %v5225_v55  ;;  %v2342_v35 = vsub.f32 %v7158_v37, %v8745_v6  ;;  %v2217_v37 = vand.u32 4294901760, %v2216_v41  ;;  %v8755_v41 = vld [vmem:[#allocation43_spill] sm:$0xff] }
 0x173   :  { %5026 = vmatprep.subr.bf16.mxu1 %v8743_v62  ;;  %v2231_v7 = vand.u32 4294901760, %v2230_v25  ;;  %v8756_v62 = vand.u32 4294901760, %v8755_v41  ;;  %v8759_v6 = vld [vmem:[#allocation31_spill] sm:$0xff]  ;;  %v5241_v25 = vpack.c.bf16 %v7571_v40, %v7569_v29 }
 0x174   :  { %v2343_v32 = vand.u32 4294901760, %v2342_v35  ;;  %v2350_v35 = vand.u32 4294901760, %v2349_v13 }
 0x175   :  { %2038 = vmatmul.mubr.f32.vlgmr.msra.gmra.mrb[28].mxu1 %v8706_v56  ;;  %5228 = vmatpush3.bf16.msra.mxu0 %v5225_v55  ;;  %v2336_v56 = vand.u32 4294901760, %v2335_v8  ;;  %v2224_v55 = vand.u32 4294901760, %v2223_v34  ;;  %v8761_v34 = vld [vmem:[#allocation86_spill] sm:$0xff] }
 0x176   :  { %2043 = vmatprep.mubr.f32.mxu1 %v8707_v47  ;;  %5028 = vmatpush3.bf16.msra.mxu1 %v8748_v49  ;;  %v2356_v47 = vsub.f32 %v7196_v43, %v8751_v59  ;;  %v5035_v43 = vpack.c.bf16 %v2217_v37, %v2210_v20  ;;  %v2238_v49 = vand.u32 4294901760, %v2237_v51  ;;  %v2245_v20 = vand.u32 4294901760, %v2244_v52 }
 0x177   :  { %5030 = vmatprep.subr.bf16.mxu1 %v8749_v33  ;;  %5230 = vmatprep.subr.bf16.mxu0 %v5229_v44  ;;  %v5037_v60 = vpack.c.bf16 %v2343_v32, %v2336_v56  ;;  %v5039_v48 = vpack.c.bf16 %v2231_v7, %v2224_v55  ;;  %v8763_v59 = vand.u32 4294901760, %v8762_v2  ;;  %v8764_v32 = vld [vmem:[#allocation52_spill] sm:$0xff]  ;;  %v8766_v7 = vld [vmem:[#allocation54_spill] sm:$0xff]  ;;  %v8769_v52 = vand.u32 4294901760, %v8768_v30 }
 0x178   :  { %v2357_v36 = vand.u32 4294901760, %v2356_v47  ;;  %v8765_v13 = vand.u32 4294901760, %v8764_v32  ;;  %v3939_v47 = vpop.f32.mrb[4].mxu0  ;;  %v8767_v57 = vand.u32 4294901760, %v8766_v7 }
 0x179   :  { %2045 = vmatmul.mubr.f32.gmra.mrb[30].mxu1 %v8710_v54  ;;  %5232 = vmatpush3.bf16.msra.mxu0 %v5229_v44  ;;  %v2363_v54 = vsub.f32 %v8755_v41, %v8756_v62  ;;  %v8757_v44 = vld [vmem:[#allocation2_spill] sm:$0xff]  ;;  %v2251_v56 = vsub.f32 %v8762_v2, %v8763_v59  ;;  %v5043_v62 = vpack.c.bf16 %v2245_v20, %v2238_v49  ;;  %v8774_v20 = vld [vmem:[#allocation48_spill] sm:$0xff] }
 0x17a   :  { %5032 = vmatpush3.bf16.msra.mxu1 %v8754_v50  ;;  %2402 = vmatprep.mubr.f32.mxu1 %v8704_v5  ;;  %v8758_v3 = vand.u32 4294901760, %v8757_v44  ;;  %v5041_v55 = vpack.c.bf16 %v2357_v36, %v2350_v35  ;;  %v2377_v51 = vsub.f32 %v8766_v7, %v8767_v57  ;;  %v2384_v50 = vsub.f32 %v8768_v30, %v8769_v52  ;;  %v8776_v7 = vld [vmem:[#allocation26_spill] sm:$0xff] }
 0x17b   :  { %5034 = vmatprep.subr.bf16.mxu1 %v8759_v6  ;;  %5234 = vmatprep.subr.bf16.mxu0 %v5233_v45  ;;  %v2364_v37 = vand.u32 4294901760, %v2363_v54  ;;  %v8770_v54 = vld [vmem:[#allocation45_spill] sm:$0xff]  ;;  %v5245_v36 = vpack.c.bf16 %v7600_v16, %v7598_v21  ;;  %v2252_v2 = vand.u32 4294901760, %v2251_v56  ;;  %v8777_v57 = vand.u32 4294901760, %v8776_v7 }
 0x17c   :  { %v2370_v8 = vsub.f32 %v8757_v44, %v8758_v3  ;;  %4499 = vmatmul.mubr.f32.vlgmr.msra.gmra.mrb[28].mxu0 %v8760_v14  ;;  %v8771_v44 = vand.u32 4294901760, %v8770_v54  ;;  %v2385_v49 = vand.u32 4294901760, %v2384_v50  ;;  %v5297_v21 = vpack.c.bf16 %v3131_v53, %v3124_v38 }
 0x17d   :  { %5236 = vmatpush3.bf16.msra.mxu0 %v5233_v45  ;;  %4525 = vmatprep.mubr.f32.mxu0 %v8761_v34  ;;  %v2258_v45 = vsub.f32 %v8764_v32, %v8765_v13  ;;  %v8775_v13 = vand.u32 4294901760, %v8774_v20  ;;  %v2398_v30 = vsub.f32 %v8776_v7, %v8777_v57 }
 0x17e   :  { %5036 = vmatpush3.bf16.msra.mxu1 %v5035_v43  ;;  %5238 = vmatprep.subr.bf16.mxu0 %v5237_v11  ;;  %v2371_v33 = vand.u32 4294901760, %v2370_v8  ;;  %v3940_v43 = vpop.f32.mrb[5].mxu0  ;;  %v2265_v3 = vsub.f32 %v8770_v54, %v8771_v44  ;;  %v8772_v8 = vld [vmem:[#allocation84_spill] sm:$0xff] }
 0x17f   :  { %5038 = vmatprep.subr.bf16.mxu1 %v5037_v60  ;;  %v7735_v41 = vadd.f32 %v3940_v43, %v3939_v47  ;;  %v8773_v6 = vand.u32 4294901760, %v8772_v8  ;;  %v2259_v59 = vand.u32 4294901760, %v2258_v45  ;;  %v3942_v32 = vpop.f32.mrb[6].mxu0  ;;  %v2391_v47 = vsub.f32 %v8774_v20, %v8775_v13  ;;  %v8780_v43 = vld [vmem:[#allocation85_spill] sm:$0xff] }
 0x180   :  { %v5045_v35 = vpack.c.bf16 %v2371_v33, %v2364_v37  ;;  %v5249_v37 = vpack.c.bf16 %v7620_v28, %v7618_v19  ;;  %v2266_v33 = vand.u32 4294901760, %v2265_v3  ;;  %v8781_v54 = vand.u32 4294901760, %v8780_v43 }
 0x181   :  { %5240 = vmatpush3.bf16.msra.mxu0 %v5237_v11  ;;  %v2272_v60 = vsub.f32 %v8772_v8, %v8773_v6  ;;  %v2378_v11 = vand.u32 4294901760, %v2377_v51  ;;  %v5047_v45 = vpack.c.bf16 %v2259_v59, %v2252_v2  ;;  %v2392_v6 = vand.u32 4294901760, %v2391_v47 }
 0x182   :  { %5040 = vmatpush3.bf16.msra.mxu1 %v5039_v48  ;;  %5242 = vmatprep.subr.bf16.mxu0 %v5241_v25  ;;  %v3943_v48 = vpop.f32.mrb[7].mxu0  ;;  %v2286_v44 = vsub.f32 %v8780_v43, %v8781_v54  ;;  %v2399_v3 = vand.u32 4294901760, %v2398_v30  ;;  %v5253_v59 = vpack.c.bf16 %v7640_v61, %v7637_v0  ;;  %v8791_v43 = vld [vmem:[#allocation22_spill] sm:$0xff]  ;;  %v8792_v54 = vld [vmem:[#allocation15_spill] sm:$0xff] }
 0x183   :  { %5042 = vmatprep.subr.bf16.mxu1 %v5041_v55  ;;  %v7751_v52 = vadd.f32 %v3943_v48, %v3942_v32  ;;  %v2273_v56 = vand.u32 4294901760, %v2272_v60  ;;  %v8778_v55 = vld [vmem:[#allocation25_spill] sm:$0xff]  ;;  %v5049_v8 = vpack.c.bf16 %v2385_v49, %v2378_v11  ;;  %v3749_v60 = vpop.f32.mrb[4].mxu1 }
 0x184   :  { %v8779_v51 = vand.u32 4294901760, %v8778_v55  ;;  %v2287_v7 = vand.u32 4294901760, %v2286_v44  ;;  %v5053_v57 = vpack.c.bf16 %v2399_v3, %v2392_v6  ;;  %v8793_v44 = vand.u32 4294901760, %v8792_v54  ;;  %v8796_v6 = vld [vmem:[#allocation37_spill] sm:$0xff] }
 0x185   :  { %5244 = vmatpush3.bf16.msra.mxu0 %v5241_v25  ;;  %v3678_v25 = vld [vmem:[%s7913_s4] ss:$0 sm:$0xff]  ;;  %v5051_v2 = vpack.c.bf16 %v2273_v56, %v2266_v33  ;;  %v8783_v33 = vld [vmem:[#allocation20_spill] sm:$0xff]  ;;  %v8784_v56 = vld [vmem:[#allocation33_spill] sm:$0xff]  ;;  %v8804_v54 = vand.u32 4294901760, %v7535_v18  ;;  %v8808_v18 = vand.u32 4294901760, %v7569_v29 }
 0x186   :  { %5044 = vmatpush3.bf16.msra.mxu1 %v5043_v62  ;;  %5246 = vmatprep.subr.bf16.mxu0 %v5245_v36  ;;  %v2279_v50 = vsub.f32 %v8778_v55, %v8779_v51  ;;  %v3750_v62 = vpop.f32.mrb[5].mxu1  ;;  %v323_v32 = vadd.f32 %v7655_v22, %v3678_v25  ;;  %v338_v47 = vadd.f32 %v7666_v63, %v3678_v25  ;;  %v8782_v22 = vld [vmem:[#allocation29_spill] sm:$0xff]  ;;  %v8786_v63 = vld [vmem:[#allocation18_spill] sm:$0xff]  ;;  %v8788_v55 = vld [vmem:[#allocation23_spill] sm:$0xff] }
 0x187   :  { %5046 = vmatprep.subr.bf16.mxu1 %v5045_v35  ;;  %v3751_v20 = vadd.f32 %v3750_v62, %v3749_v60  ;;  %v3752_v11 = vpop.f32.mrb[6].mxu1  ;;  %v8789_v51 = vld [vmem:[#allocation49_spill] sm:$0xff]  ;;  %v8794_v25 = vld [vmem:[#allocation32_spill] sm:$0xff] }
 0x188   :  { %v2280_v13 = vand.u32 4294901760, %v2279_v50  ;;  %v3753_v49 = vpop.f32.mrb[7].mxu1  ;;  %v8790_v50 = vld [vmem:[#allocation19_spill] sm:$0xff]  ;;  %v8797_v62 = vld [vmem:[#allocation41_spill] sm:$0xff] }
 0x189   :  { %5248 = vmatpush3.bf16.msra.mxu0 %v5245_v36  ;;  %v570_v35 = vadd.f32 %v3751_v20, %v323_v32  ;;  %v3754_v36 = vadd.f32 %v3753_v49, %v3752_v11  ;;  %v8802_v49 = vld [vmem:[#allocation42_spill] sm:$0xff]  ;;  %v8814_v29 = vld [vmem:[#allocation21_spill] sm:$0xff] }
 0x18a   :  { %5048 = vmatpush3.bf16.msra.mxu1 %v5047_v45  ;;  %5250 = vmatprep.subr.bf16.mxu0 %v5249_v37  ;;  %v5055_v30 = vpack.c.bf16 %v2287_v7, %v2280_v13  ;;  %v8787_v45 = vand.u32 4294901760, %v8761_v34  ;;  %v8795_v34 = vld [vmem:[#allocation38_spill] sm:$0xff]  ;;  %v8799_v13 = vld [vmem:[#allocation44_spill] sm:$0xff]  ;;  %v8800_v7 = vand.u32 4294901760, %v7511_v1 }
 0x18b   :  { %5050 = vmatprep.subr.bf16.mxu1 %v5049_v8  ;;  %v577_v48 = vadd.f32 %v3754_v36, %v338_v47 }
 0x18d   :  { %5252 = vmatpush3.bf16.msra.mxu0 %v5249_v37  ;;  %v8785_v37 = vld [vmem:[#allocation67_spill] sm:$0xff] }
 0x18e   :  { %5052 = vmatpush3.bf16.msra.mxu1 %v5051_v2  ;;  %5254 = vmatprep.subr.bf16.mxu0 %v5253_v59 }
 0x18f   :  { %5054 = vmatprep.subr.bf16.mxu1 %v5053_v57  ;;  %v8801_v57 = vand.u32 4294901760, %v7513_v26 }
 0x191   :  { %5256 = vmatpush3.bf16.msra.mxu0 %v5253_v59  ;;  %v8798_v59 = vld [vmem:[#allocation39_spill] sm:$0xff]  ;;  %v5281_v11 = vpack.c.bf16 %v8801_v57, %v8800_v7 }
 0x192   :  { %5056 = vmatpush3.bf16.msra.mxu1 %v5055_v30  ;;  %5258 = vmatprep.subr.bf16.mxu0 %v8782_v22  ;;  %v8807_v7 = vld [vmem:[#allocation27_spill] sm:$0xff] }
 0x193   :  { %5090 = vmatprep.subr.bf16.mxu1 %v8783_v33 }
 0x194   :  { %4526 = vmatmul.mubr.f32.vlgmr.msra.gmra.mrb[28].mxu0 %v7556_v42  ;;  %v5293_v42 = vpack.c.bf16 %v3117_v31, %v3110_v46  ;;  %v5301_v46 = vpack.c.bf16 %v3145_v17, %v3138_v23 }
 0x195   :  { %2404 = vmatmul.mubr.f32.vlgmr.msra.gmra.mrb[32].mxu1 %v8784_v56  ;;  %5260 = vmatpush3.bf16.msra.mxu0 %v8782_v22 }
 0x196   :  { %2409 = vmatprep.mubr.f32.mxu1 %v8785_v37  ;;  %5092 = vmatpush3.bf16.msra.mxu1 %v8786_v63 }
 0x197   :  { %4552 = vmatprep.mubr.f32.mxu0 %v8787_v45  ;;  %5094 = vmatprep.subr.bf16.mxu1 %v8788_v55  ;;  %v4015_v8 = vpop.f32.mrb[8].mxu0  ;;  %v8803_v45 = vld [vmem:[#allocation60_spill] sm:$0xff] }
 0x198   :  { %5262 = vmatprep.subr.bf16.mxu0 %v8789_v51  ;;  %v4016_v3 = vpop.f32.mrb[9].mxu0 }
 0x199   :  { %2411 = vmatmul.mubr.f32.gmra.mrb[34].mxu1 %v8790_v50  ;;  %5264 = vmatpush3.bf16.msra.mxu0 %v8789_v51  ;;  %v7790_v60 = vadd.f32 %v4016_v3, %v4015_v8  ;;  %v8806_v3 = vld [vmem:[#allocation17_spill] sm:$0xff] }
 0x19a   :  { %5096 = vmatpush3.bf16.msra.mxu1 %v8791_v43  ;;  %2662 = vmatprep.mubr.f32.mxu1 %v8793_v44  ;;  %v8805_v44 = vand.u32 4294901760, %v7537_v24  ;;  %v8809_v24 = vand.u32 4294901760, %v7571_v40  ;;  %v8815_v40 = vand.u32 4294901760, %v8814_v29 }
 0x19b   :  { %5098 = vmatprep.subr.bf16.mxu1 %v8794_v25  ;;  %5266 = vmatprep.subr.bf16.mxu0 %v7519_v39  ;;  %v4018_v2 = vpop.f32.mrb[10].mxu0 }
 0x19c   :  { %v4019_v32 = vpop.f32.mrb[11].mxu0  ;;  %v5285_v8 = vpack.c.bf16 %v8805_v44, %v8804_v54  ;;  %v5289_v57 = vpack.c.bf16 %v8809_v24, %v8808_v18 }
 0x19d   :  { %5268 = vmatpush3.bf16.msra.mxu0 %v7519_v39  ;;  %v7796_v20 = vadd.f32 %v4019_v32, %v4018_v2 }
 0x19e   :  { %5100 = vmatpush3.bf16.msra.mxu1 %v8795_v34  ;;  %5270 = vmatprep.subr.bf16.mxu0 %v7542_v15 }
 0x19f   :  { %5102 = vmatprep.subr.bf16.mxu1 %v8796_v6 }
 0x1a0   :  { %v3787_v47 = vpop.f32.mrb[8].mxu1 }
 0x1a1   :  { %5272 = vmatpush3.bf16.msra.mxu0 %v7542_v15  ;;  %v3788_v36 = vpop.f32.mrb[9].mxu1 }
 0x1a2   :  { %5104 = vmatpush3.bf16.msra.mxu1 %v8797_v62  ;;  %5274 = vmatprep.subr.bf16.mxu0 %v7580_v58  ;;  %v3789_v30 = vadd.f32 %v3788_v36, %v3787_v47  ;;  %v8810_v47 = vld [vmem:[#allocation34_spill] sm:$0xff]  ;;  %v8811_v36 = vld [vmem:[#allocation40_spill] sm:$0xff] }
 0x1a3   :  { %5106 = vmatprep.subr.bf16.mxu1 %v8798_v59 }
 0x1a4   :  { %v715_v1 = vadd.f32 %v3789_v30, %v570_v35  ;;  %v3790_v26 = vpop.f32.mrb[10].mxu1 }
 0x1a5   :  { %5276 = vmatpush3.bf16.msra.mxu0 %v7580_v58  ;;  %v3791_v2 = vpop.f32.mrb[11].mxu1 }
 0x1a6   :  { %5108 = vmatpush3.bf16.msra.mxu1 %v8799_v13  ;;  %5278 = vmatprep.subr.bf16.mxu0 %v7596_v9  ;;  %v3792_v32 = vadd.f32 %v3791_v2, %v3790_v26 }
 0x1a7   :  { %5110 = vmatprep.subr.bf16.mxu1 %v8802_v49 }
 0x1a8   :  { %v724_v35 = vadd.f32 %v3792_v32, %v577_v48  ;;  %v8816_v48 = vld [vmem:[#allocation36_spill] sm:$0xff] }
 0x1a9   :  { %5280 = vmatpush3.bf16.msra.mxu0 %v7596_v9  ;;  %v8817_v16 = vand.u32 4294901760, %v8816_v48 }
 0x1aa   :  { %5112 = vmatpush3.bf16.msra.mxu1 %v8803_v45  ;;  %5282 = vmatprep.subr.bf16.mxu0 %v5281_v11 }
 0x1ab   :  { %5114 = vmatprep.subr.bf16.mxu1 %v8806_v3 }
 0x1ac   :  { %4553 = vmatmul.mubr.f32.vlgmr.msra.gmra.mrb[28].mxu0 %v3057_v4  ;;  %v8812_v4 = vld [vmem:[#allocation8_spill] sm:$0xff] }
 0x1ad   :  { %5284 = vmatpush3.bf16.msra.mxu0 %v5281_v11  ;;  %4579 = vmatprep.mubr.f32.mxu0 %v7450_v27  ;;  %v8813_v11 = vand.u32 4294901760, %v8812_v4 }
 0x1ae   :  { %5116 = vmatpush3.bf16.msra.mxu1 %v8807_v7  ;;  %5286 = vmatprep.subr.bf16.mxu0 %v5285_v8 }
 0x1af   :  { %5118 = vmatprep.subr.bf16.mxu1 %v8810_v47 }
 0x1b1   :  { %5288 = vmatpush3.bf16.msra.mxu0 %v5285_v8 }
 0x1b2   :  { %5120 = vmatpush3.bf16.msra.mxu1 %v8811_v36  ;;  %5290 = vmatprep.subr.bf16.mxu0 %v5289_v57 }
 0x1b3   :  { %5154 = vmatprep.subr.bf16.mxu1 %v8783_v33 }
 0x1b5   :  { %2666 = vmatmul.mubr.f32.vlgmr.msra.gmra.mrb[36].mxu1 %v8813_v11  ;;  %5292 = vmatpush3.bf16.msra.mxu0 %v5289_v57 }
 0x1b6   :  { %2673 = vmatprep.mubr.f32.mxu1 %v8815_v40  ;;  %5156 = vmatpush3.bf16.msra.mxu1 %v8786_v63 }
 0x1b7   :  { %5158 = vmatprep.subr.bf16.mxu1 %v8788_v55  ;;  %5294 = vmatprep.subr.bf16.mxu0 %v5293_v42  ;;  %v4091_v31 = vpop.f32.mrb[12].mxu0 }
 0x1b8   :  { %v4092_v19 = vpop.f32.mrb[13].mxu0 }
 0x1b9   :  { %2677 = vmatmul.mubr.f32.gmra.mrb[38].mxu1 %v8817_v16  ;;  %5296 = vmatpush3.bf16.msra.mxu0 %v5293_v42  ;;  %v7849_v28 = vadd.f32 %v4092_v19, %v4091_v31 }
 0x1ba   :  { %5160 = vmatpush3.bf16.msra.mxu1 %v8791_v43  ;;  %2954 = vmatprep.mubr.f32.mxu1 %v8704_v5 }
 0x1bb   :  { %5162 = vmatprep.subr.bf16.mxu1 %v8794_v25  ;;  %5298 = vmatprep.subr.bf16.mxu0 %v5297_v21  ;;  %v4094_v5 = vpop.f32.mrb[14].mxu0 }
 0x1bc   :  { %v4095_v38 = vpop.f32.mrb[15].mxu0 }
 0x1bd   :  { %5300 = vmatpush3.bf16.msra.mxu0 %v5297_v21  ;;  %v7855_v53 = vadd.f32 %v4095_v38, %v4094_v5 }
 0x1be   :  { %5164 = vmatpush3.bf16.msra.mxu1 %v8795_v34  ;;  %5302 = vmatprep.subr.bf16.mxu0 %v5301_v46 }
 0x1bf   :  { %5166 = vmatprep.subr.bf16.mxu1 %v8796_v6 }
 0x1c0   :  { %v3825_v0 = vpop.f32.mrb[12].mxu1 }
 0x1c1   :  { %5304 = vmatpush3.bf16.msra.mxu0 %v5301_v46  ;;  %v3826_v61 = vpop.f32.mrb[13].mxu1 }
 0x1c2   :  { %5168 = vmatpush3.bf16.msra.mxu1 %v8797_v62  ;;  %5306 = vmatprep.subr.bf16.mxu0 %v8782_v22  ;;  %v3827_v23 = vadd.f32 %v3826_v61, %v3825_v0 }
 0x1c3   :  { %5170 = vmatprep.subr.bf16.mxu1 %v8798_v59 }
 0x1c4   :  { %4580 = vmatmul.mubr.f32.vlgmr.msra.gmra.mrb[28].mxu0 %v8760_v14  ;;  %v832_v17 = vadd.f32 %v3827_v23, %v715_v1 }
 0x1c5   :  { %5308 = vmatpush3.bf16.msra.mxu0 %v8782_v22  ;;  %4606 = vmatprep.mubr.f32.mxu0 %v7450_v27  ;;  %v3828_v22 = vpop.f32.mrb[14].mxu1 }
 0x1c6   :  { %5172 = vmatpush3.bf16.msra.mxu1 %v8799_v13  ;;  %5310 = vmatprep.subr.bf16.mxu0 %v8789_v51  ;;  %v3829_v27 = vpop.f32.mrb[15].mxu1  ;;  %v1011_v63 = vadd.f32 %v7623_v10, %v832_v17 }
 0x1c7   :  { %5174 = vmatprep.subr.bf16.mxu1 %v8802_v49  ;;  %v3830_v33 = vadd.f32 %v3829_v27, %v3828_v22 }
 0x1c9   :  { %5312 = vmatpush3.bf16.msra.mxu0 %v8789_v51  ;;  %v843_v55 = vadd.f32 %v3830_v33, %v724_v35 }
 0x1ca   :  { %5176 = vmatpush3.bf16.msra.mxu1 %v8803_v45  ;;  %5314 = vmatprep.subr.bf16.mxu0 %v7519_v39 }
 0x1cb   :  { %5178 = vmatprep.subr.bf16.mxu1 %v8806_v3  ;;  %v1018_v51 = vadd.f32 %v7653_v12, %v843_v55 }
 0x1cd   :  { %5316 = vmatpush3.bf16.msra.mxu0 %v7519_v39 }
 0x1ce   :  { %5180 = vmatpush3.bf16.msra.mxu1 %v8807_v7  ;;  %5318 = vmatprep.subr.bf16.mxu0 %v7542_v15 }
 0x1cf   :  { %5182 = vmatprep.subr.bf16.mxu1 %v8810_v47 }
 0x1d1   :  { %5320 = vmatpush3.bf16.msra.mxu0 %v7542_v15 }
 0x1d2   :  { %5184 = vmatpush3.bf16.msra.mxu1 %v8811_v36  ;;  %5322 = vmatprep.subr.bf16.mxu0 %v7580_v58 }
 0x1d5   :  { %2956 = vmatmul.mubr.f32.vlgmr.msra.gmra.mrb[40].mxu1 %v8784_v56  ;;  %5324 = vmatpush3.bf16.msra.mxu0 %v7580_v58 }
 0x1d6   :  { %2961 = vmatprep.mubr.f32.mxu1 %v8785_v37  ;;  %5326 = vmatprep.subr.bf16.mxu0 %v7596_v9 }
 0x1d7   :  { %v4167_v15 = vpop.f32.mrb[16].mxu0 }
 0x1d8   :  { %v4168_v39 = vpop.f32.mrb[17].mxu0 }
 0x1d9   :  { %2963 = vmatmul.mubr.f32.gmra.mrb[42].mxu1 %v8790_v50  ;;  %5328 = vmatpush3.bf16.msra.mxu0 %v7596_v9  ;;  %v4169_v10 = vadd.f32 %v4168_v39, %v4167_v15 }
 0x1dc   :  { %4607 = vmatmul.mubr.f32.vlgmr.msra.gmra.mrb[28].mxu0 %v8760_v14  ;;  %v4170_v43 = vpop.f32.mrb[18].mxu0 }
 0x1dd   :  { %v4171_v25 = vpop.f32.mrb[19].mxu0 }
 0x1de   :  { %v4172_v12 = vadd.f32 %v4171_v25, %v4170_v43 }
 0x1e3   :  { %v3901_v34 = vpop.f32.mrb[16].mxu1 }
 0x1e4   :  { %v3902_v56 = vpop.f32.mrb[17].mxu1 }
 0x1e5   :  { %v3903_v6 = vadd.f32 %v3902_v56, %v3901_v34 }
 0x1e7   :  { %v1122_v58 = vadd.f32 %v3903_v6, %v1011_v63 }
 0x1e8   :  { %v3904_v62 = vpop.f32.mrb[18].mxu1 }
 0x1e9   :  { %v3905_v37 = vpop.f32.mrb[19].mxu1  ;;  %v1241_v13 = vadd.f32 %v7735_v41, %v1122_v58 }
 0x1ea   :  { %v3906_v59 = vadd.f32 %v3905_v37, %v3904_v62 }
 0x1ec   :  { %v1129_v50 = vadd.f32 %v3906_v59, %v1018_v51 }
 0x1ee   :  { %v1256_v9 = vadd.f32 %v7751_v52, %v1129_v50 }
 0x1fd   :  { %v4243_v49 = vpop.f32.mrb[20].mxu0 }
 0x1fe   :  { %v4244_v14 = vpop.f32.mrb[21].mxu0 }
 0x1ff   :  { %v4245_v30 = vadd.f32 %v4244_v14, %v4243_v49 }
 0x201   :  { %v4246_v45 = vpop.f32.mrb[22].mxu0 }
 0x202   :  { %v4247_v54 = vpop.f32.mrb[23].mxu0 }
 0x203   :  { %v4248_v44 = vadd.f32 %v4247_v54, %v4246_v45 }
 0x205   :  { %v3977_v8 = vpop.f32.mrb[20].mxu1 }
 0x206   :  { %v3978_v3 = vpop.f32.mrb[21].mxu1 }
 0x207   :  { %v3979_v1 = vadd.f32 %v3978_v3, %v3977_v8 }
 0x209   :  { %v1488_v26 = vadd.f32 %v3979_v1, %v1241_v13  ;;  %v3980_v2 = vpop.f32.mrb[22].mxu1 }
 0x20a   :  { %v3981_v32 = vpop.f32.mrb[23].mxu1 }
 0x20b   :  { %v3982_v7 = vadd.f32 %v3981_v32, %v3980_v2  ;;  %v1633_v18 = vadd.f32 %v7790_v60, %v1488_v26 }
 0x20d   :  { %v1495_v24 = vadd.f32 %v3982_v7, %v1256_v9  ;;  %v3624_v7 = vld [vmem:[%s7914_s2 + $0x8] sm:$0xff] }
 0x20f   :  { %v1642_v41 = vadd.f32 %v7796_v20, %v1495_v24 }
 0x21f   :  { %v4319_v57 = vpop.f32.mrb[24].mxu0 }
 0x220   :  { %v4320_v52 = vpop.f32.mrb[25].mxu0 }
 0x221   :  { %v4321_v47 = vadd.f32 %v4320_v52, %v4319_v57 }
 0x223   :  { %v4322_v35 = vpop.f32.mrb[26].mxu0 }
 0x224   :  { %v4323_v36 = vpop.f32.mrb[27].mxu0 }
 0x225   :  { %v4324_v42 = vadd.f32 %v4323_v36, %v4322_v35 }
 0x228   :  { %v4053_v4 = vpop.f32.mrb[24].mxu1 }
 0x229   :  { %v4054_v11 = vpop.f32.mrb[25].mxu1 }
 0x22a   :  { %v4055_v29 = vadd.f32 %v4054_v11, %v4053_v4 }
 0x22c   :  { %v1750_v40 = vadd.f32 %v4055_v29, %v1633_v18  ;;  %v4056_v21 = vpop.f32.mrb[26].mxu1  ;;  %v3623_v18 = vld [vmem:[%s7914_s2] sm:$0xff] }
 0x22d   :  { %v4057_v48 = vpop.f32.mrb[27].mxu1 }
 0x22e   :  { %v4058_v16 = vadd.f32 %v4057_v48, %v4056_v21  ;;  %v1929_v46 = vadd.f32 %v7849_v28, %v1750_v40 }
 0x230   :  { %v1761_v31 = vadd.f32 %v4058_v16, %v1642_v41 }
 0x232   :  { %v1936_v60 = vadd.f32 %v7855_v53, %v1761_v31 }
 0x248   :  { %v4129_v19 = vpop.f32.mrb[28].mxu1 }
 0x249   :  { %v4130_v20 = vpop.f32.mrb[29].mxu1 }
 0x24a   :  { %v4131_v5 = vadd.f32 %v4130_v20, %v4129_v19 }
 0x24c   :  { %v2040_v38 = vadd.f32 %v4131_v5, %v1929_v46  ;;  %v4132_v0 = vpop.f32.mrb[30].mxu1 }
 0x24d   :  { %v4133_v61 = vpop.f32.mrb[31].mxu1 }
 0x24e   :  { %v4134_v23 = vadd.f32 %v4133_v61, %v4132_v0  ;;  %v2159_v17 = vadd.f32 %v4169_v10, %v2040_v38 }
 0x250   :  { %v2047_v22 = vadd.f32 %v4134_v23, %v1936_v60 }
 0x252   :  { %v2174_v27 = vadd.f32 %v4172_v12, %v2047_v22 }
 0x268   :  { %v4205_v33 = vpop.f32.mrb[32].mxu1 }
 0x269   :  { %v4206_v63 = vpop.f32.mrb[33].mxu1 }
 0x26a   :  { %v4207_v55 = vadd.f32 %v4206_v63, %v4205_v33 }
 0x26c   :  { %v2406_v51 = vadd.f32 %v4207_v55, %v2159_v17  ;;  %v4208_v15 = vpop.f32.mrb[34].mxu1 }
 0x26d   :  { %v4209_v39 = vpop.f32.mrb[35].mxu1 }
 0x26e   :  { %v4210_v28 = vadd.f32 %v4209_v39, %v4208_v15  ;;  %v2551_v43 = vadd.f32 %v4245_v30, %v2406_v51 }
 0x270   :  { %v2413_v25 = vadd.f32 %v4210_v28, %v2174_v27 }
 0x272   :  { %v2560_v53 = vadd.f32 %v4248_v44, %v2413_v25 }
 0x288   :  { %v4281_v34 = vpop.f32.mrb[36].mxu1 }
 0x289   :  { %v4282_v56 = vpop.f32.mrb[37].mxu1 }
 0x28a   :  { %v4283_v6 = vadd.f32 %v4282_v56, %v4281_v34 }
 0x28c   :  { %v2668_v58 = vadd.f32 %v4283_v6, %v2551_v43  ;;  %v4284_v62 = vpop.f32.mrb[38].mxu1 }
 0x28d   :  { %v4285_v37 = vpop.f32.mrb[39].mxu1 }
 0x28e   :  { %v4286_v59 = vadd.f32 %v4285_v37, %v4284_v62  ;;  %v2847_v10 = vadd.f32 %v4321_v47, %v2668_v58 }
 0x290   :  { %v2679_v13 = vadd.f32 %v4286_v59, %v2560_v53 }
 0x292   :  { %v2854_v12 = vadd.f32 %v4324_v42, %v2679_v13 }
 0x2a8   :  { %v4357_v50 = vpop.f32.mrb[40].mxu1 }
 0x2a9   :  { %v4358_v9 = vpop.f32.mrb[41].mxu1 }
 0x2aa   :  { %v4359_v49 = vadd.f32 %v4358_v9, %v4357_v50 }
 0x2ac   :  { %v4360_v14 = vpop.f32.mrb[42].mxu1  ;;  %v2958_v45 = vadd.f32 %v4359_v49, %v2847_v10 }
 0x2ad   :  { %v4361_v54 = vpop.f32.mrb[43].mxu1 }
 0x2ae   :  { %v4362_v8 = vadd.f32 %v4361_v54, %v4360_v14 }
 0x2af   :  { %v4608_v30 = vpop.f32.mrb[28].mxu0 }
 0x2b0   :  { %v2965_v3 = vadd.f32 %v4362_v8, %v2854_v12  ;;  %v3590_v44 = vpop.f32.mrb[29].mxu0 }
 0x2b1   :  { %v5330_v1 = vadd.f32 %v3590_v44, %v2958_v45 }
 0x2b2   :  { %v5329_v26 = vadd.f32 %v4608_v30, %v2965_v3 }
 0x2b3   :  { %v3601_v2 = vsel %vm3600_vm3, %v5330_v1, -inf }
 0x2b4   :  { %3602 = vmax.xlane.f32.xlu0 %v3601_v2  ;;  %v3604_v32 = vsel %vm3600_vm3, %v5329_v26, -inf }
 0x2b5   :  { %3605 = vmax.xlane.f32.xlu1 %v3604_v32 }
 0x2c6   :  { %3637 = vrot.lane.b32.xlu1 %v3624_v7, %s5357_s6 }
 0x2ca   :  { %3635 = vrot.lane.b32.xlu0 %v3623_v18, %s5357_s6  ;;  %3651 = vrot.lane.b32.xlu1 %v3624_v7, %s5358_s9 }
 0x2ce   :  { %3649 = vrot.lane.b32.xlu0 %v3623_v18, %s5358_s9 }
 0x341   :  { %v3603_v24 = vpop.xlane.xlu0 %3602 }
 0x342   :  { %v3607_v41 = vsub.f32 %v5330_v1, %v3603_v24  ;;  %v3606_v57 = vpop.xlane.xlu1 %3605 }
 0x343   :  { %v3608_v52 = vsub.f32 %v5329_v26, %v3606_v57 }
 0x344   :  { %v3609_v47 = vmul.f32 1.442695, %v3607_v41 }
 0x345   :  { %v3611_v35 = vmul.f32 1.442695, %v3608_v52  ;;  %v3636_v36 = vpop.permute.xlu0 %3635 }
 0x346   :  { %5346 = vpow2.f32 %v3609_v47  ;;  %v3638_v16 = vpop.permute.xlu1 %3637 }
 0x347   :  { %5348 = vpow2.f32 %v3611_v35 }
 0x349   :  { %v3650_v48 = vpop.permute.xlu0 %3649 }
 0x34a   :  { %v3652_v38 = vpop.permute.xlu1 %3651 }
 0x350   :  { %v5347_v42 = vpop.eup %5346 }
 0x351   :  { %v5349_v4 = vpop.eup %5348  ;;  %v3613_v11 = vsel %vm3600_vm3, %v5347_v42, 0.0  ;;  %v3625_v29 = vmul.f32 %v5347_v42, %v3623_v18  ;;  %v3641_v40 = vmul.f32 %v5347_v42, %v3636_v36  ;;  %v3655_v60 = vmul.f32 %v5347_v42, %v3650_v48 }
 0x352   :  { %3614 = vadd.xlane.f32.xlu0 %v3613_v11  ;;  %v3616_v21 = vsel %vm3600_vm3, %v5349_v4, 0.0  ;;  %v3626_v31 = vmul.f32 %v5349_v4, %v3624_v7  ;;  %v3642_v20 = vmul.f32 %v5349_v4, %v3638_v16  ;;  %v3656_v61 = vmul.f32 %v5349_v4, %v3652_v38 }
 0x353   :  { %3617 = vadd.xlane.f32.xlu1 %v3616_v21  ;;  %v3627_v46 = vsel %vm3600_vm3, %v3625_v29, 0.0  ;;  %v3643_v19 = vsel %vm3600_vm3, %v3641_v40, 0.0  ;;  %v3657_v0 = vsel %vm3600_vm3, %v3655_v60, 0.0 }
 0x354   :  { %v3630_v5 = vsel %vm3600_vm3, %v3626_v31, 0.0  ;;  %v3646_v23 = vsel %vm3600_vm3, %v3642_v20, 0.0  ;;  %v3660_v17 = vsel %vm3600_vm3, %v3656_v61, 0.0 }
 0x356   :  { %3628 = vadd.xlane.f32.xlu0 %v3627_v46 }
 0x357   :  { %3644 = vadd.xlane.f32.xlu1 %v3643_v19 }
 0x35a   :  { %3631 = vadd.xlane.f32.xlu0 %v3630_v5 }
 0x35b   :  { %3658 = vadd.xlane.f32.xlu1 %v3657_v0 }
 0x35e   :  { %3647 = vadd.xlane.f32.xlu0 %v3646_v23 }
 0x362   :  { %3661 = vadd.xlane.f32.xlu0 %v3660_v17 }
 0x3df   :  { %v3615_v22 = vpop.xlane.xlu0 %3614 }
 0x3e0   :  { %5350 = vrcp.f32 %v3615_v22  ;;  %v3618_v27 = vpop.xlane.xlu1 %3617 }
 0x3e1   :  { %5352 = vrcp.f32 %v3618_v27 }
 0x3e3   :  { %v3629_v33 = vpop.xlane.xlu0 %3628 }
 0x3e4   :  { %v3645_v63 = vpop.xlane.xlu1 %3644 }
 0x3e5   :  { %v3664_v15 = vsel %vm3663_vm4, %v3629_v33, %v3645_v63 }
 0x3e7   :  { %v3632_v55 = vpop.xlane.xlu0 %3631 }
 0x3e8   :  { %v3659_v51 = vpop.xlane.xlu1 %3658 }
 0x3e9   :  { %v3667_v28 = vsel %vm3666_vm5, %v3664_v15, %v3659_v51 }
 0x3ea   :  { %v5351_v39 = vpop.eup %5350 }
 0x3eb   :  { %v3669_v43 = vmul.f32 %v5351_v39, %v3667_v28  ;;  %v3648_v25 = vpop.xlane.xlu0 %3647  ;;  %v5353_v56 = vpop.eup %5352 }
 0x3ec   :  { %v3665_v53 = vsel %vm3663_vm4, %v3632_v55, %v3648_v25 }
 0x3ed   :  { %3672 = vst.msk [vmem:[%s7915_s5] sm:$0xff] %vm3671_vm6, %v3669_v43 }
 0x3ef   :  { %v3662_v34 = vpop.xlane.xlu0 %3661 }
 0x3f0   :  { %v3668_v6 = vsel %vm3666_vm5, %v3665_v53, %v3662_v34 }
 0x3f1   :  { %v3670_v58 = vmul.f32 %v5353_v56, %v3668_v6 }
 0x3f3   :  { %3673 = vst.msk [vmem:[%s7915_s5 + $0x8] sm:$0xff] %vm3671_vm6, %v3670_v58 }

</bundles_post_ra>
